<compile_context>
chip_gen: v5e
topology: v5e:2x2
jax: 0.10.0
libtpu: 0.0.40
codegen_flags: <defaults>
</compile_context>

<pallas_src>
import functools

import numpy as np
import jax
import jax.numpy as jnp
from jax.experimental import pallas as pl
from jax.experimental.pallas import tpu as pltpu


def _round_up(x, m):
    return -(-x // m) * m


# ---------------------------------------------------------------------------
# Deterministic bark filterbank (torchaudio barkscale_fbanks, "traunmuller").
# ---------------------------------------------------------------------------
def _hz_to_bark(freq):
    bark = 26.81 * freq / (1960.0 + freq) - 0.53
    bark = np.where(bark < 2.0, bark + 0.15 * (2.0 - bark), bark)
    bark = np.where(bark > 20.1, bark + 0.22 * (bark - 20.1), bark)
    return bark


def _bark_to_hz(bark):
    bark = np.where(bark < 2.0, (bark - 0.3) / 0.85, bark)
    bark = np.where(bark > 20.1, (bark + 4.422) / 1.22, bark)
    return 1960.0 * (bark + 0.53) / (26.28 - bark)


def barkscale_fbanks(n_freqs, f_min, f_max, n_barks, sample_rate):
    all_freqs = np.linspace(0.0, sample_rate // 2, n_freqs)
    m_min = _hz_to_bark(np.asarray(f_min, dtype=np.float64))
    m_max = _hz_to_bark(np.asarray(f_max, dtype=np.float64))
    m_pts = np.linspace(m_min, m_max, n_barks + 2)
    f_pts = _bark_to_hz(m_pts)
    f_diff = f_pts[1:] - f_pts[:-1]
    slopes = f_pts[None, :] - all_freqs[:, None]
    down = (-1.0 * slopes[:, :-2]) / f_diff[:-1]
    up = slopes[:, 2:] / f_diff[1:]
    fb = np.maximum(0.0, np.minimum(down, up))
    return fb.astype(np.float32)                      # (n_freqs, n_barks)


# ---------------------------------------------------------------------------
# TPU-generation dependent knobs (2 TCs + 64 MiB VMEM on v7x; 1 TC + 128 MiB on v5e/v6e)
# ---------------------------------------------------------------------------
def _tpu_generation_config():
    npar, vmem_budget, freq_cap = 1, 64 * 1024 * 1024, 4096     # v5e / v6e defaults
    kind = ""
    try:
        kind = jax.devices()[0].device_kind.lower()
    except Exception:
        pass
    vmem_cap = 128 * 1024 * 1024
    try:
        vmem_cap = int(getattr(pltpu.get_tpu_info(), "vmem_capacity_bytes", vmem_cap))
    except Exception:
        pass
    if ("v7" in kind) or (vmem_cap <= 64 * 1024 * 1024):
        npar, vmem_budget, freq_cap = 2, 48 * 1024 * 1024, 2048  # v7x: leave VMEM headroom
    return npar, vmem_budget, freq_cap


# ---------------------------------------------------------------------------
# Pallas kernel 1: time-domain statistics (seq-tiled, accumulated in VMEM scratch)
# ---------------------------------------------------------------------------
def _time_stats_kernel(x_ref, e_ref, p_ref, c_ref, e_sc, p_sc, c_sc, *, b2):
    i = pl.program_id(0)

    @pl.when(i == 0)
    def _init():
        e_sc[...] = jnp.zeros_like(e_sc)
        c_sc[...] = jnp.zeros_like(c_sc)
        p_sc[...] = jnp.zeros_like(p_sc)

    x = x_ref[...]                                    # (2*b2, Ts): rows [:b2]=L, [b2:]=R
    e_sc[...] += jnp.sum(x * x, axis=-1, keepdims=True)
    p_sc[...] = jnp.maximum(p_sc[...], jnp.max(jnp.abs(x), axis=-1, keepdims=True))
    c_sc[...] += jnp.sum(x[:b2] * x[b2:], axis=-1, keepdims=True)

    @pl.when(i == pl.num_programs(0) - 1)
    def _done():
        e_ref[...] = e_sc[...]
        p_ref[...] = p_sc[...]
        c_ref[...] = c_sc[...]


def time_stats(x_lr, b2, seq, tile=8192):
    """x_lr: (2*b2, seq) channel-major packed audio.  Returns (sum_sq, peak, cross_sum)."""
    rows = x_lr.shape[0]                              # 2*b2
    ts = min(tile, _round_up(seq, 128))
    seq_pad = _round_up(seq, ts)
    if seq_pad != seq:                                # zero tail: does not change any stat
        x_lr = jnp.pad(x_lr, ((0, 0), (0, seq_pad - seq)))
    nblk = seq_pad // ts
    kernel = functools.partial(_time_stats_kernel, b2=b2)
    sum_sq, peak, cross = pl.pallas_call(
        kernel,
        grid=(nblk,),
        in_specs=[pl.BlockSpec((rows, ts), lambda i: (0, i))],
        out_specs=(pl.BlockSpec((rows, 1), lambda i: (0, 0)),
                   pl.BlockSpec((rows, 1), lambda i: (0, 0)),
                   pl.BlockSpec((b2, 1), lambda i: (0, 0))),
        out_shape=(jax.ShapeDtypeStruct((rows, 1), jnp.float32),
                   jax.ShapeDtypeStruct((rows, 1), jnp.float32),
                   jax.ShapeDtypeStruct((b2, 1), jnp.float32)),
        scratch_shapes=[pltpu.VMEM((rows, 1), jnp.float32),
                        pltpu.VMEM((rows, 1), jnp.float32),
                        pltpu.VMEM((b2, 1), jnp.float32)],
        compiler_params=pltpu.CompilerParams(dimension_semantics=("arbitrary",)),
        cost_estimate=pl.CostEstimate(flops=4 * rows * seq_pad, transcendentals=0,
                                      bytes_accessed=rows * seq_pad * 4),
    )(x_lr)
    return sum_sq[:, 0], peak[:, 0], cross[:, 0]


# ---------------------------------------------------------------------------
# Pallas kernel 2: mid/side |STFT| accumulation (frame + frequency tiled, pipelined)
# ---------------------------------------------------------------------------
def _bark_accum_kernel(main_ref, ovl_ref, wc_ref, ws_ref, acc_ref, *,
                       tf, n_inner, n_frames, b2, hop):
    p = pl.program_id(0)
    t = pl.program_id(2)

    @pl.when(t == 0)
    def _init():
        acc_ref[...] = jnp.zeros_like(acc_ref)

    t0 = (p * n_inner + t) * tf                       # first global frame of this tile
    n_sig = 2 * b2
    half = b2 * tf
    fbw = acc_ref.shape[-1]                           # frequency-block width

    # this tile's hop-sized chunks plus the 8-chunk overlap tail -> (n_sig, tf+8, hop)
    win = jnp.concatenate([main_ref[...], ovl_ref[...]], axis=1)

    # K-decomposed windowed DFT: frame f = chunks f..f+3, so
    #   dft = sum_q  chunks[:, q:q+tf, :] @ W[q*hop:(q+1)*hop, :]
    # accumulated in f32 -- no (M, fft) frame matrix is ever materialized in VMEM.
    dre = None
    dim = None
    for q in range(4):
        part = win[:, q:q + tf, :].reshape(n_sig * tf, hop).astype(jnp.bfloat16)
        cre = jnp.dot(part, wc_ref[q * hop:(q + 1) * hop, :],
                      preferred_element_type=jnp.float32)
        cim = jnp.dot(part, ws_ref[q * hop:(q + 1) * hop, :],
                      preferred_element_type=jnp.float32)
        dre = cre if dre is None else dre + cre
        dim = cim if dim is None else dim + cim

    # mid/side via DFT linearity; row layout of M is [L signals x tf | R signals x tf]
    re_l, re_r = dre[:half], dre[half:]
    im_l, im_r = dim[:half], dim[half:]
    re_m, im_m = re_l + re_r, im_l + im_r
    re_s, im_s = re_l - re_r, im_l - im_r
    mag_m = jnp.sqrt(re_m * re_m + im_m * im_m + 1e-24).reshape(b2, tf, fbw)
    mag_s = jnp.sqrt(re_s * re_s + im_s * im_s + 1e-24).reshape(b2, tf, fbw)

    def _accumulate(mask):
        if mask is None:
            upd_m = jnp.sum(mag_m, axis=1)
            upd_s = jnp.sum(mag_s, axis=1)
        else:
            upd_m = jnp.sum(jnp.where(mask, mag_m, 0.0), axis=1)
            upd_s = jnp.sum(jnp.where(mask, mag_s, 0.0), axis=1)
        acc_ref[...] += jnp.concatenate([upd_m, upd_s], axis=0)   # [mid rows | side rows]

    # mask only the tile(s) that can contain frames >= n_frames (reflect/zero tail frames)
    tile_is_full = (t0 + tf) <= n_frames

    @pl.when(tile_is_full)
    def _unmasked():
        _accumulate(None)

    @pl.when(jnp.logical_not(tile_is_full))
    def _masked():
        fidx = jax.lax.broadcasted_iota(jnp.int32, (b2, tf, fbw), 1)
        _accumulate((t0 + fidx) < n_frames)


def bark_spectrum_features(x_lr, b2, seq, fft_size, n_bands, sample_rate,
                           f_min=20.0, f_max=20000.0, n_partitions=1,
                           vmem_limit_bytes=64 * 1024 * 1024, freq_block_cap=4096):
    """Mid/side log-bark spectrum.  x_lr: (2*b2, seq), L rows then R rows.
    Returns (b2, n_bands, 2) with [...,0]=mid, [...,1]=side."""
    n_sig = 2 * b2
    hop = fft_size // 4
    pad = fft_size // 2
    n_freqs = fft_size // 2 + 1
    n_frames = 1 + seq // hop                         # torch.stft(center=True) frame count

    # reflect pad exactly like torch.stft(center=True, pad_mode="reflect"); mid/side is
    # formed inside the kernel from L/R via DFT linearity -> no mid/side HBM materialization.
    sig = jnp.pad(x_lr, ((0, 0), (pad, pad)), mode="reflect")

    # frame tiling: M = n_sig*tf targeted at a multiple of 256 for the 256x256 MXUs
    tf = max(8, _round_up(max(1, 256 // n_sig), 8))
    n_tiles = -(-n_frames // tf)
    npar = max(1, min(n_partitions, n_tiles))
    n_inner = -(-n_tiles // npar)
    # chunk layout (n_sig, n_chunks, hop): frame f = chunks f..f+3.  The 8-chunk overlap
    # tail (only 3 are strictly needed) keeps the second-to-last block dim a multiple of 8.
    n_chunks = npar * n_inner * tf + 8
    sig = jnp.pad(sig, ((0, 0), (0, n_chunks * hop - sig.shape[-1])))   # zero tail (masked)
    sig_chunks = sig.reshape(n_sig, n_chunks, hop)    # free reshape, no HBM transpose

    # ---- host-side constants: bark filterbank + windowed one-sided DFT matrices ----
    fb_full = barkscale_fbanks(n_freqs, f_min, f_max, n_bands, sample_rate)
    nz = np.nonzero(fb_full.sum(axis=1) > 0.0)[0]
    n_used = int(nz[-1]) + 1 if nz.size else 1
    n_kp = min(_round_up(max(128, n_used), 128), _round_up(n_freqs, 128))
    # frequency blocking (N axis of the DFT matmul); one slab resident per freq grid step
    n_fblk = max(1, -(-n_kp // freq_block_cap))
    fbw = _round_up(-(-n_kp // n_fblk), 128)
    n_kp = fbw * n_fblk

    k_idx = np.arange(n_kp)
    col_ok = (k_idx < n_freqs).astype(np.float64)
    n_t = np.arange(fft_size)
    window = 0.5 - 0.5 * np.cos(2.0 * np.pi * n_t / fft_size)           # periodic hann
    ang = 2.0 * np.pi * np.outer(n_t, k_idx) / fft_size
    w_cos = jnp.asarray((window[:, None] * np.cos(ang) * col_ok[None, :]).astype(np.float32),
                        dtype=jnp.bfloat16)                             # (fft, n_kp)
    w_sin = jnp.asarray((-window[:, None] * np.sin(ang) * col_ok[None, :]).astype(np.float32),
                        dtype=jnp.bfloat16)
    fb_kp = np.zeros((n_kp, n_bands), np.float32)
    ncopy = min(n_kp, n_freqs)
    fb_kp[:ncopy] = fb_full[:ncopy]
    fb_kp = jnp.asarray(fb_kp)

    kernel = functools.partial(_bark_accum_kernel, tf=tf, n_inner=n_inner,
                               n_frames=n_frames, b2=b2, hop=hop)

    m_rows = n_sig * tf
    flops = 2 * m_rows * hop * fbw * 8 * npar * n_fblk * n_inner
    bytes_accessed = (npar * n_fblk * n_inner * n_sig * (tf + 8) * hop * 4   # audio chunks
                      + n_fblk * fft_size * fbw * 2 * 2                      # W (once per blk)
                      + npar * n_fblk * n_sig * fbw * 4)                     # acc writeback

    # TODO(synk): for the production fft_size=32768 the DFT matrices must additionally be
    # streamed in hop-row slabs (extra K grid axis + per-tile dft scratch) to fit v7x VMEM.
    acc = pl.pallas_call(
        kernel,
        grid=(npar, n_fblk, n_inner),
        in_specs=[
            # tf hop-chunks of every signal for this frame tile (streamed / pipelined)
            pl.BlockSpec((n_sig, tf, hop), lambda p, f, t: (0, p * n_inner + t, 0)),
            # 8-chunk overlap tail from the next tile (block units of 8 chunks)
            pl.BlockSpec((n_sig, 8, hop),
                         lambda p, f, t: (0, (p * n_inner + t + 1) * (tf // 8), 0)),
            # windowed cos / sin DFT slabs, resident across all frame tiles of a freq block
            pl.BlockSpec((fft_size, fbw), lambda p, f, t: (0, f)),
            pl.BlockSpec((fft_size, fbw), lambda p, f, t: (0, f)),
        ],
        out_specs=pl.BlockSpec((None, n_sig, fbw), lambda p, f, t: (p, 0, f)),
        out_shape=jax.ShapeDtypeStruct((npar, n_sig, n_kp), jnp.float32),
        compiler_params=pltpu.CompilerParams(
            dimension_semantics=("parallel", "arbitrary", "arbitrary"),
            vmem_limit_bytes=vmem_limit_bytes,
        ),
        cost_estimate=pl.CostEstimate(flops=flops, transcendentals=0,
                                      bytes_accessed=bytes_accessed),
    )(sig_chunks, sig_chunks, w_cos, w_sin)

    mean_mag = jnp.sum(acc, axis=0) * (1.0 / float(n_frames))   # (2*b2, n_kp): mid rows, side rows
    bark = jnp.log(mean_mag @ fb_kp + 1e-8)                     # (2*b2, n_bands)
    # match torch cat(dim=-1): (b2, n_bands, 2) with [...,0]=mid, [...,1]=side
    return jnp.stack([bark[:b2], bark[b2:]], axis=-1)


# ---------------------------------------------------------------------------
# AudioFeatureLoss
# ---------------------------------------------------------------------------
class AudioFeatureLoss:
    """JAX/Pallas port of AudioFeatureLoss (single 'mix' stem)."""

    def __init__(self, weights, sample_rate, fft_size=256, n_bands=24):
        assert len(weights) == 5
        self.weights = list(weights)
        self.sample_rate = sample_rate
        self.fft_size = fft_size       # torch default is 32768; kept small for the toy run
        self.n_bands = n_bands
        self.sources_list = ["mix"]
        self.source_weights = [1.0]
        self.names = ["rms", "crest_factor", "stereo_width", "stereo_imbalance", "barkspectrum"]
        self.n_partitions, self.vmem_limit_bytes, self.freq_block_cap = _tpu_generation_config()
        self._forward = jax.jit(self._forward_impl)

    def _forward_impl(self, input, target):
        bs, ch, seq = input.shape
        assert ch == 2, "Input must be stereo"
        b2 = 2 * bs
        # channel-major packing of the fused input+target batch:
        #   rows [0, b2)   = left  channels (input batch, then target batch)
        #   rows [b2, 2b2) = right channels (same order)
        x_lr = jnp.concatenate([input[:, 0, :], target[:, 0, :],
                                input[:, 1, :], target[:, 1, :]], axis=0)

        sum_sq, peak_rows, cross_sum = time_stats(x_lr, b2, seq)
        inv_n = 1.0 / float(seq)
        e_rows = sum_sq * inv_n                                   # per-row mean(x^2)
        e_l, e_r = e_rows[:b2], e_rows[b2:]
        cross = cross_sum * inv_n                                 # mean(l*r)
        energy = jnp.stack([e_l, e_r], axis=-1)                   # (b2, 2)
        peak = jnp.stack([peak_rows[:b2], peak_rows[b2:]], axis=-1)

        rms = jnp.sqrt(jnp.maximum(energy, 1e-8))                                 # (b2, 2)
        crest = 20.0 * jnp.log10(jnp.maximum(peak / jnp.maximum(rms, 1e-8), 1e-8))
        imbalance = (e_r - e_l) / jnp.maximum(e_r + e_l, 1e-8)                    # (b2,)
        sum_e = e_l + e_r + 2.0 * cross                           # == mean((l+r)^2)
        diff_e = e_l + e_r - 2.0 * cross                          # == mean((l-r)^2)
        width = diff_e / jnp.maximum(sum_e, 1e-8)                                 # (b2,)

        bark = bark_spectrum_features(
            x_lr, b2, seq, self.fft_size, self.n_bands, self.sample_rate,
            n_partitions=self.n_partitions, vmem_limit_bytes=self.vmem_limit_bytes,
            freq_block_cap=self.freq_block_cap)                                   # (b2, nb, 2)

        losses = {}
        feats = [rms, crest, width, imbalance, bark]
        for name, w, feat in zip(self.names, self.weights, feats):
            key = f"{self.sources_list[0]}-{name}"
            losses[key] = w * jnp.mean((feat[:bs] - feat[bs:]) ** 2) * self.source_weights[0]
        return losses

    def __call__(self, input, target):
        return self._forward(input, target)


if __name__ == "__main__":
    key = jax.random.PRNGKey(0)
    k1, k2 = jax.random.split(key)
    bs, ch, seq = 2, 2, 4096
    inp = 0.1 * jax.random.normal(k1, (bs, ch, seq), dtype=jnp.float32)
    tgt = 0.1 * jax.random.normal(k2, (bs, ch, seq), dtype=jnp.float32)

    loss_fn = AudioFeatureLoss(weights=[0.1, 0.001, 1.0, 1.0, 0.1], sample_rate=44100)
    losses = loss_fn(inp, tgt)
    losses = {k: jax.block_until_ready(v) for k, v in losses.items()}
    assert all(np.isfinite(np.asarray(v)) for v in losses.values())
    print("KERNEL_OK")
</pallas_src>

<mosaic_0001>
module attributes {stable_mosaic.version = 11 : i64} {
  func.func @_time_stats_kernel(%arg0: i32, %arg1: memref<8x4096xf32, #tpu.memory_space<vmem>>, %arg2: memref<8x1xf32, #tpu.memory_space<vmem>>, %arg3: memref<8x1xf32, #tpu.memory_space<vmem>>, %arg4: memref<4x1xf32, #tpu.memory_space<vmem>>, %arg5: memref<8x1xf32, #tpu.memory_space<vmem>>, %arg6: memref<8x1xf32, #tpu.memory_space<vmem>>, %arg7: memref<4x1xf32, #tpu.memory_space<vmem>>) attributes {dimension_semantics = [#tpu.dimension_semantics<arbitrary>], iteration_bounds = array<i64: 1>, scalar_prefetch = 0 : i64, scratch_operands = 3 : i64, tpu.core_type = #tpu.core_type<tc>, window_params = [{transform_indices = @transform_0, window_bounds = array<i64: 8, 4096>}, {pipeline_mode = #tpu.pipeline_mode<synchronous>, transform_indices = @transform_1, window_bounds = array<i64: 8, 1>}, {pipeline_mode = #tpu.pipeline_mode<synchronous>, transform_indices = @transform_2, window_bounds = array<i64: 8, 1>}, {pipeline_mode = #tpu.pipeline_mode<synchronous>, transform_indices = @transform_3, window_bounds = array<i64: 4, 1>}]} {
    %c0_i32 = arith.constant 0 : i32
    %0 = arith.cmpi eq, %arg0, %c0_i32 : i32
    %1 = arith.extui %0 : i1 to i32
    %c0_i32_0 = arith.constant 0 : i32
    %2 = arith.cmpi ne, %1, %c0_i32_0 : i32
    scf.if %2 {
      %cst_18 = arith.constant 0.000000e+00 : f32
      %27 = vector.broadcast %cst_18 : f32 to vector<8x1xf32>
      %c0_19 = arith.constant 0 : index
      %c0_20 = arith.constant 0 : index
      %28 = vector.load %arg5[%c0_19, %c0_20] : memref<8x1xf32, #tpu.memory_space<vmem>>, vector<8x1xf32>
      tpu.vector_store %arg5[%c0_19, %c0_20], %27 {strides = array<i32>} : memref<8x1xf32, #tpu.memory_space<vmem>>, vector<8x1xf32>,
      %cst_21 = arith.constant 0.000000e+00 : f32
      %29 = vector.broadcast %cst_21 : f32 to vector<4x1xf32>
      %c0_22 = arith.constant 0 : index
      %c0_23 = arith.constant 0 : index
      %30 = vector.load %arg7[%c0_22, %c0_23] : memref<4x1xf32, #tpu.memory_space<vmem>>, vector<4x1xf32>
      tpu.vector_store %arg7[%c0_22, %c0_23], %29 {strides = array<i32>} : memref<4x1xf32, #tpu.memory_space<vmem>>, vector<4x1xf32>,
      %cst_24 = arith.constant 0.000000e+00 : f32
      %31 = vector.broadcast %cst_24 : f32 to vector<8x1xf32>
      %c0_25 = arith.constant 0 : index
      %c0_26 = arith.constant 0 : index
      %32 = vector.load %arg6[%c0_25, %c0_26] : memref<8x1xf32, #tpu.memory_space<vmem>>, vector<8x1xf32>
      tpu.vector_store %arg6[%c0_25, %c0_26], %31 {strides = array<i32>} : memref<8x1xf32, #tpu.memory_space<vmem>>, vector<8x1xf32>,
    } else {
    }
    %c0 = arith.constant 0 : index
    %c0_1 = arith.constant 0 : index
    %3 = vector.load %arg1[%c0, %c0_1] : memref<8x4096xf32, #tpu.memory_space<vmem>>, vector<8x4096xf32>
    %c0_2 = arith.constant 0 : index
    %c0_3 = arith.constant 0 : index
    %4 = vector.load %arg5[%c0_2, %c0_3] : memref<8x1xf32, #tpu.memory_space<vmem>>, vector<8x1xf32>
    %5 = arith.mulf %3, %3 : vector<8x4096xf32>
    %cst = arith.constant dense<0.000000e+00> : vector<8xf32>
    %6 = vector.multi_reduction <add>, %5, %cst [1] : vector<8x4096xf32> to vector<8xf32>
    %7 = vector.shape_cast %6 : vector<8xf32> to vector<8x1xf32>
    %8 = arith.addf %4, %7 : vector<8x1xf32>
    %c0_4 = arith.constant 0 : index
    %c0_5 = arith.constant 0 : index
    %9 = vector.load %arg5[%c0_4, %c0_5] : memref<8x1xf32, #tpu.memory_space<vmem>>, vector<8x1xf32>
    tpu.vector_store %arg5[%c0_4, %c0_5], %8 {strides = array<i32>} : memref<8x1xf32, #tpu.memory_space<vmem>>, vector<8x1xf32>,
    %c0_6 = arith.constant 0 : index
    %c0_7 = arith.constant 0 : index
    %10 = vector.load %arg6[%c0_6, %c0_7] : memref<8x1xf32, #tpu.memory_space<vmem>>, vector<8x1xf32>
    %11 = math.absf %3 : vector<8x4096xf32>
    %cst_8 = arith.constant dense<0xFF800000> : vector<8xf32>
    %12 = vector.multi_reduction <maximumf>, %11, %cst_8 [1] : vector<8x4096xf32> to vector<8xf32>
    %13 = vector.shape_cast %12 : vector<8xf32> to vector<8x1xf32>
    %14 = arith.maximumf %10, %13 : vector<8x1xf32>
    %c0_9 = arith.constant 0 : index
    %c0_10 = arith.constant 0 : index
    %15 = vector.load %arg6[%c0_9, %c0_10] : memref<8x1xf32, #tpu.memory_space<vmem>>, vector<8x1xf32>
    tpu.vector_store %arg6[%c0_9, %c0_10], %14 {strides = array<i32>} : memref<8x1xf32, #tpu.memory_space<vmem>>, vector<8x1xf32>,
    %c0_11 = arith.constant 0 : index
    %c0_12 = arith.constant 0 : index
    %16 = vector.load %arg7[%c0_11, %c0_12] : memref<4x1xf32, #tpu.memory_space<vmem>>, vector<4x1xf32>
    %17 = vector.extract_strided_slice %3 {offsets = [0, 0], sizes = [4, 4096], strides = [1, 1]} : vector<8x4096xf32> to vector<4x4096xf32>
    %18 = vector.extract_strided_slice %3 {offsets = [4, 0], sizes = [4, 4096], strides = [1, 1]} : vector<8x4096xf32> to vector<4x4096xf32>
    %19 = arith.mulf %17, %18 : vector<4x4096xf32>
    %cst_13 = arith.constant dense<0.000000e+00> : vector<4xf32>
    %20 = vector.multi_reduction <add>, %19, %cst_13 [1] : vector<4x4096xf32> to vector<4xf32>
    %21 = vector.shape_cast %20 : vector<4xf32> to vector<4x1xf32>
    %22 = arith.addf %16, %21 : vector<4x1xf32>
    %c0_14 = arith.constant 0 : index
    %c0_15 = arith.constant 0 : index
    %23 = vector.load %arg7[%c0_14, %c0_15] : memref<4x1xf32, #tpu.memory_space<vmem>>, vector<4x1xf32>
    tpu.vector_store %arg7[%c0_14, %c0_15], %22 {strides = array<i32>} : memref<4x1xf32, #tpu.memory_space<vmem>>, vector<4x1xf32>,
    %c0_i32_16 = arith.constant 0 : i32
    %24 = arith.cmpi eq, %arg0, %c0_i32_16 : i32
    %25 = arith.extui %24 : i1 to i32
    %c0_i32_17 = arith.constant 0 : i32
    %26 = arith.cmpi ne, %25, %c0_i32_17 : i32
    scf.if %26 {
      %c0_18 = arith.constant 0 : index
      %c0_19 = arith.constant 0 : index
      %27 = vector.load %arg5[%c0_18, %c0_19] : memref<8x1xf32, #tpu.memory_space<vmem>>, vector<8x1xf32>
      %c0_20 = arith.constant 0 : index
      %c0_21 = arith.constant 0 : index
      %28 = vector.load %arg2[%c0_20, %c0_21] : memref<8x1xf32, #tpu.memory_space<vmem>>, vector<8x1xf32>
      tpu.vector_store %arg2[%c0_20, %c0_21], %27 {strides = array<i32>} : memref<8x1xf32, #tpu.memory_space<vmem>>, vector<8x1xf32>,
      %c0_22 = arith.constant 0 : index
      %c0_23 = arith.constant 0 : index
      %29 = vector.load %arg6[%c0_22, %c0_23] : memref<8x1xf32, #tpu.memory_space<vmem>>, vector<8x1xf32>
      %c0_24 = arith.constant 0 : index
      %c0_25 = arith.constant 0 : index
      %30 = vector.load %arg3[%c0_24, %c0_25] : memref<8x1xf32, #tpu.memory_space<vmem>>, vector<8x1xf32>
      tpu.vector_store %arg3[%c0_24, %c0_25], %29 {strides = array<i32>} : memref<8x1xf32, #tpu.memory_space<vmem>>, vector<8x1xf32>,
      %c0_26 = arith.constant 0 : index
      %c0_27 = arith.constant 0 : index
      %31 = vector.load %arg7[%c0_26, %c0_27] : memref<4x1xf32, #tpu.memory_space<vmem>>, vector<4x1xf32>
      %c0_28 = arith.constant 0 : index
      %c0_29 = arith.constant 0 : index
      %32 = vector.load %arg4[%c0_28, %c0_29] : memref<4x1xf32, #tpu.memory_space<vmem>>, vector<4x1xf32>
      tpu.vector_store %arg4[%c0_28, %c0_29], %31 {strides = array<i32>} : memref<4x1xf32, #tpu.memory_space<vmem>>, vector<4x1xf32>,
    } else {
    }
    return
  }
  func.func @transform_0(%arg0: i32) -> (i32, i32) {
    %c0_i32 = arith.constant 0 : i32
    %c0_i32_0 = arith.constant 0 : i32
    return %c0_i32, %arg0 : i32, i32
  }
  func.func @transform_1(%arg0: i32) -> (i32, i32) {
    %c0_i32 = arith.constant 0 : i32
    %c0_i32_0 = arith.constant 0 : i32
    %c0_i32_1 = arith.constant 0 : i32
    return %c0_i32, %c0_i32_0 : i32, i32
  }
  func.func @transform_2(%arg0: i32) -> (i32, i32) {
    %c0_i32 = arith.constant 0 : i32
    %c0_i32_0 = arith.constant 0 : i32
    %c0_i32_1 = arith.constant 0 : i32
    return %c0_i32, %c0_i32_0 : i32, i32
  }
  func.func @transform_3(%arg0: i32) -> (i32, i32) {
    %c0_i32 = arith.constant 0 : i32
    %c0_i32_0 = arith.constant 0 : i32
    %c0_i32_1 = arith.constant 0 : i32
    return %c0_i32, %c0_i32_0 : i32, i32
  }
}

module attributes {stable_mosaic.version = 11 : i64} {
  func.func @_bark_accum_kernel(%arg0: i32, %arg1: i32, %arg2: i32, %arg3: memref<8x32x64xf32, #tpu.memory_space<vmem>>, %arg4: memref<8x8x64xf32, #tpu.memory_space<vmem>>, %arg5: memref<256x128xbf16, #tpu.memory_space<vmem>>, %arg6: memref<256x128xbf16, #tpu.memory_space<vmem>>, %arg7: memref<1x8x128xf32, #tpu.memory_space<vmem>>) attributes {dimension_semantics = [#tpu.dimension_semantics<parallel>, #tpu.dimension_semantics<arbitrary>, #tpu.dimension_semantics<arbitrary>], iteration_bounds = array<i64: 1, 1, 3>, scalar_prefetch = 0 : i64, scratch_operands = 0 : i64, tpu.core_type = #tpu.core_type<tc>, window_params = [{transform_indices = @transform_0, window_bounds = array<i64: 8, 32, 64>}, {transform_indices = @transform_1, window_bounds = array<i64: 8, 8, 64>}, {transform_indices = @transform_2, window_bounds = array<i64: 256, 128>}, {transform_indices = @transform_3, window_bounds = array<i64: 256, 128>}, {transform_indices = @transform_4, window_bounds = array<i64: 1, 8, 128>}]} {
    %c0_i32 = arith.constant 0 : i32
    %0 = arith.cmpi eq, %arg2, %c0_i32 : i32
    %1 = arith.extui %0 : i1 to i32
    %c0_i32_0 = arith.constant 0 : i32
    %2 = arith.cmpi ne, %1, %c0_i32_0 : i32
    scf.if %2 {
      %cst_31 = arith.constant 0.000000e+00 : f32
      %72 = vector.broadcast %cst_31 : f32 to vector<8x128xf32>
      %c0_32 = arith.constant 0 : index
      %c0_33 = arith.constant 0 : index
      %c0_34 = arith.constant 0 : index
      %73 = vector.load %arg7[%c0_32, %c0_33, %c0_34] : memref<1x8x128xf32, #tpu.memory_space<vmem>>, vector<1x8x128xf32>
      %74 = vector.shape_cast %73 : vector<1x8x128xf32> to vector<8x128xf32>
      %75 = vector.shape_cast %72 : vector<8x128xf32> to vector<1x8x128xf32>
      tpu.vector_store %arg7[%c0_32, %c0_33, %c0_34], %75 {strides = array<i32>} : memref<1x8x128xf32, #tpu.memory_space<vmem>>, vector<1x8x128xf32>,
    } else {
    }
    %c3_i32 = arith.constant 3 : i32
    %3 = arith.muli %arg0, %c3_i32 : i32
    %4 = arith.addi %3, %arg2 : i32
    %c32_i32 = arith.constant 32 : i32
    %5 = arith.muli %4, %c32_i32 : i32
    %c0 = arith.constant 0 : index
    %c0_1 = arith.constant 0 : index
    %c0_2 = arith.constant 0 : index
    %6 = vector.load %arg3[%c0, %c0_1, %c0_2] : memref<8x32x64xf32, #tpu.memory_space<vmem>>, vector<8x32x64xf32>
    %c0_3 = arith.constant 0 : index
    %c0_4 = arith.constant 0 : index
    %c0_5 = arith.constant 0 : index
    %7 = vector.load %arg4[%c0_3, %c0_4, %c0_5] : memref<8x8x64xf32, #tpu.memory_space<vmem>>, vector<8x8x64xf32>
    %8 = tpu.concatenate %6, %7 in 1 : vector<8x32x64xf32>, vector<8x8x64xf32> -> vector<8x40x64xf32>
    %9 = vector.extract_strided_slice %8 {offsets = [0, 0, 0], sizes = [8, 32, 64], strides = [1, 1, 1]} : vector<8x40x64xf32> to vector<8x32x64xf32>
    %10 = vector.shape_cast %9 : vector<8x32x64xf32> to vector<256x64xf32>
    %11 = arith.truncf %10 : vector<256x64xf32> to vector<256x64xbf16>
    %c0_6 = arith.constant 0 : index
    %c0_7 = arith.constant 0 : index
    %12 = vector.load %arg5[%c0_6, %c0_7] : memref<256x128xbf16, #tpu.memory_space<vmem>>, vector<64x128xbf16>
    %cst = arith.constant dense<0.000000e+00> : vector<256x128xf32>
    %13 = tpu.matmul %11, %12, %cst {dimension_numbers = #tpu.dot_dimension_numbers<[1], [0], [0], [1], [0, 0, 1, 1], [], []>} : vector<256x64xbf16>, vector<64x128xbf16>, vector<256x128xf32> -> vector<256x128xf32>
    %c0_8 = arith.constant 0 : index
    %c0_9 = arith.constant 0 : index
    %14 = vector.load %arg6[%c0_8, %c0_9] : memref<256x128xbf16, #tpu.memory_space<vmem>>, vector<64x128xbf16>
    %cst_10 = arith.constant dense<0.000000e+00> : vector<256x128xf32>
    %15 = tpu.matmul %11, %14, %cst_10 {dimension_numbers = #tpu.dot_dimension_numbers<[1], [0], [0], [1], [0, 0, 1, 1], [], []>} : vector<256x64xbf16>, vector<64x128xbf16>, vector<256x128xf32> -> vector<256x128xf32>
    %16 = vector.extract_strided_slice %8 {offsets = [0, 1, 0], sizes = [8, 32, 64], strides = [1, 1, 1]} : vector<8x40x64xf32> to vector<8x32x64xf32>
    %17 = vector.shape_cast %16 : vector<8x32x64xf32> to vector<256x64xf32>
    %18 = arith.truncf %17 : vector<256x64xf32> to vector<256x64xbf16>
    %c64 = arith.constant 64 : index
    %c0_11 = arith.constant 0 : index
    %19 = vector.load %arg5[%c64, %c0_11] : memref<256x128xbf16, #tpu.memory_space<vmem>>, vector<64x128xbf16>
    %cst_12 = arith.constant dense<0.000000e+00> : vector<256x128xf32>
    %20 = tpu.matmul %18, %19, %cst_12 {dimension_numbers = #tpu.dot_dimension_numbers<[1], [0], [0], [1], [0, 0, 1, 1], [], []>} : vector<256x64xbf16>, vector<64x128xbf16>, vector<256x128xf32> -> vector<256x128xf32>
    %c64_13 = arith.constant 64 : index
    %c0_14 = arith.constant 0 : index
    %21 = vector.load %arg6[%c64_13, %c0_14] : memref<256x128xbf16, #tpu.memory_space<vmem>>, vector<64x128xbf16>
    %cst_15 = arith.constant dense<0.000000e+00> : vector<256x128xf32>
    %22 = tpu.matmul %18, %21, %cst_15 {dimension_numbers = #tpu.dot_dimension_numbers<[1], [0], [0], [1], [0, 0, 1, 1], [], []>} : vector<256x64xbf16>, vector<64x128xbf16>, vector<256x128xf32> -> vector<256x128xf32>
    %23 = arith.addf %13, %20 : vector<256x128xf32>
    %24 = arith.addf %15, %22 : vector<256x128xf32>
    %25 = vector.extract_strided_slice %8 {offsets = [0, 2, 0], sizes = [8, 32, 64], strides = [1, 1, 1]} : vector<8x40x64xf32> to vector<8x32x64xf32>
    %26 = vector.shape_cast %25 : vector<8x32x64xf32> to vector<256x64xf32>
    %27 = arith.truncf %26 : vector<256x64xf32> to vector<256x64xbf16>
    %c128 = arith.constant 128 : index
    %c0_16 = arith.constant 0 : index
    %28 = vector.load %arg5[%c128, %c0_16] : memref<256x128xbf16, #tpu.memory_space<vmem>>, vector<64x128xbf16>
    %cst_17 = arith.constant dense<0.000000e+00> : vector<256x128xf32>
    %29 = tpu.matmul %27, %28, %cst_17 {dimension_numbers = #tpu.dot_dimension_numbers<[1], [0], [0], [1], [0, 0, 1, 1], [], []>} : vector<256x64xbf16>, vector<64x128xbf16>, vector<256x128xf32> -> vector<256x128xf32>
    %c128_18 = arith.constant 128 : index
    %c0_19 = arith.constant 0 : index
    %30 = vector.load %arg6[%c128_18, %c0_19] : memref<256x128xbf16, #tpu.memory_space<vmem>>, vector<64x128xbf16>
    %cst_20 = arith.constant dense<0.000000e+00> : vector<256x128xf32>
    %31 = tpu.matmul %27, %30, %cst_20 {dimension_numbers = #tpu.dot_dimension_numbers<[1], [0], [0], [1], [0, 0, 1, 1], [], []>} : vector<256x64xbf16>, vector<64x128xbf16>, vector<256x128xf32> -> vector<256x128xf32>
    %32 = arith.addf %23, %29 : vector<256x128xf32>
    %33 = arith.addf %24, %31 : vector<256x128xf32>
    %34 = vector.extract_strided_slice %8 {offsets = [0, 3, 0], sizes = [8, 32, 64], strides = [1, 1, 1]} : vector<8x40x64xf32> to vector<8x32x64xf32>
    %35 = vector.shape_cast %34 : vector<8x32x64xf32> to vector<256x64xf32>
    %36 = arith.truncf %35 : vector<256x64xf32> to vector<256x64xbf16>
    %c192 = arith.constant 192 : index
    %c0_21 = arith.constant 0 : index
    %37 = vector.load %arg5[%c192, %c0_21] : memref<256x128xbf16, #tpu.memory_space<vmem>>, vector<64x128xbf16>
    %cst_22 = arith.constant dense<0.000000e+00> : vector<256x128xf32>
    %38 = tpu.matmul %36, %37, %cst_22 {dimension_numbers = #tpu.dot_dimension_numbers<[1], [0], [0], [1], [0, 0, 1, 1], [], []>} : vector<256x64xbf16>, vector<64x128xbf16>, vector<256x128xf32> -> vector<256x128xf32>
    %c192_23 = arith.constant 192 : index
    %c0_24 = arith.constant 0 : index
    %39 = vector.load %arg6[%c192_23, %c0_24] : memref<256x128xbf16, #tpu.memory_space<vmem>>, vector<64x128xbf16>
    %cst_25 = arith.constant dense<0.000000e+00> : vector<256x128xf32>
    %40 = tpu.matmul %36, %39, %cst_25 {dimension_numbers = #tpu.dot_dimension_numbers<[1], [0], [0], [1], [0, 0, 1, 1], [], []>} : vector<256x64xbf16>, vector<64x128xbf16>, vector<256x128xf32> -> vector<256x128xf32>
    %41 = arith.addf %32, %38 : vector<256x128xf32>
    %42 = arith.addf %33, %40 : vector<256x128xf32>
    %43 = vector.extract_strided_slice %41 {offsets = [0, 0], sizes = [128, 128], strides = [1, 1]} : vector<256x128xf32> to vector<128x128xf32>
    %44 = vector.extract_strided_slice %41 {offsets = [128, 0], sizes = [128, 128], strides = [1, 1]} : vector<256x128xf32> to vector<128x128xf32>
    %45 = vector.extract_strided_slice %42 {offsets = [0, 0], sizes = [128, 128], strides = [1, 1]} : vector<256x128xf32> to vector<128x128xf32>
    %46 = vector.extract_strided_slice %42 {offsets = [128, 0], sizes = [128, 128], strides = [1, 1]} : vector<256x128xf32> to vector<128x128xf32>
    %47 = arith.addf %43, %44 : vector<128x128xf32>
    %48 = arith.addf %45, %46 : vector<128x128xf32>
    %49 = arith.subf %43, %44 : vector<128x128xf32>
    %50 = arith.subf %45, %46 : vector<128x128xf32>
    %51 = arith.mulf %47, %47 : vector<128x128xf32>
    %52 = arith.mulf %48, %48 : vector<128x128xf32>
    %53 = arith.addf %51, %52 : vector<128x128xf32>
    %cst_26 = arith.constant 1.000000e-24 : f32
    %54 = vector.broadcast %cst_26 : f32 to vector<128x128xf32>
    %55 = arith.addf %53, %54 : vector<128x128xf32>
    %56 = math.sqrt %55 : vector<128x128xf32>
    %57 = vector.shape_cast %56 : vector<128x128xf32> to vector<4x32x128xf32>
    %58 = arith.mulf %49, %49 : vector<128x128xf32>
    %59 = arith.mulf %50, %50 : vector<128x128xf32>
    %60 = arith.addf %58, %59 : vector<128x128xf32>
    %cst_27 = arith.constant 1.000000e-24 : f32
    %61 = vector.broadcast %cst_27 : f32 to vector<128x128xf32>
    %62 = arith.addf %60, %61 : vector<128x128xf32>
    %63 = math.sqrt %62 : vector<128x128xf32>
    %64 = vector.shape_cast %63 : vector<128x128xf32> to vector<4x32x128xf32>
    %c32_i32_28 = arith.constant 32 : i32
    %65 = arith.addi %5, %c32_i32_28 : i32
    %c65_i32 = arith.constant 65 : i32
    %66 = arith.cmpi sle, %65, %c65_i32 : i32
    %67 = arith.extui %66 : i1 to i32
    %c0_i32_29 = arith.constant 0 : i32
    %68 = arith.cmpi ne, %67, %c0_i32_29 : i32
    scf.if %68 {
      %cst_31 = arith.constant dense<0.000000e+00> : vector<4x128xf32>
      %72 = vector.multi_reduction <add>, %57, %cst_31 [1] : vector<4x32x128xf32> to vector<4x128xf32>
      %cst_32 = arith.constant dense<0.000000e+00> : vector<4x128xf32>
      %73 = vector.multi_reduction <add>, %64, %cst_32 [1] : vector<4x32x128xf32> to vector<4x128xf32>
      %c0_33 = arith.constant 0 : index
      %c0_34 = arith.constant 0 : index
      %c0_35 = arith.constant 0 : index
      %74 = vector.load %arg7[%c0_33, %c0_34, %c0_35] : memref<1x8x128xf32, #tpu.memory_space<vmem>>, vector<1x8x128xf32>
      %75 = vector.shape_cast %74 : vector<1x8x128xf32> to vector<8x128xf32>
      %76 = tpu.concatenate %72, %73 in 0 : vector<4x128xf32>, vector<4x128xf32> -> vector<8x128xf32>
      %77 = arith.addf %75, %76 : vector<8x128xf32>
      %c0_36 = arith.constant 0 : index
      %c0_37 = arith.constant 0 : index
      %c0_38 = arith.constant 0 : index
      %78 = vector.load %arg7[%c0_36, %c0_37, %c0_38] : memref<1x8x128xf32, #tpu.memory_space<vmem>>, vector<1x8x128xf32>
      %79 = vector.shape_cast %78 : vector<1x8x128xf32> to vector<8x128xf32>
      %80 = vector.shape_cast %77 : vector<8x128xf32> to vector<1x8x128xf32>
      tpu.vector_store %arg7[%c0_36, %c0_37, %c0_38], %80 {strides = array<i32>} : memref<1x8x128xf32, #tpu.memory_space<vmem>>, vector<1x8x128xf32>,
    } else {
    }
    %true = arith.constant true
    %69 = arith.xori %66, %true : i1
    %70 = arith.extui %69 : i1 to i32
    %c0_i32_30 = arith.constant 0 : i32
    %71 = arith.cmpi ne, %70, %c0_i32_30 : i32
    scf.if %71 {
      %72 = tpu.iota {dimensions = array<i32: 1>} : vector<4x32x128xi32>
      %73 = vector.broadcast %5 : i32 to vector<4x32x128xi32>
      %74 = arith.addi %73, %72 : vector<4x32x128xi32>
      %c65_i32_31 = arith.constant 65 : i32
      %75 = vector.broadcast %c65_i32_31 : i32 to vector<4x32x128xi32>
      %76 = arith.cmpi slt, %74, %75 : vector<4x32x128xi32>
      %cst_32 = arith.constant 0.000000e+00 : f32
      %77 = vector.broadcast %cst_32 : f32 to vector<4x32x128xf32>
      %78 = arith.select %76, %57, %77 : vector<4x32x128xi1>, vector<4x32x128xf32>
      %cst_33 = arith.constant dense<0.000000e+00> : vector<4x128xf32>
      %79 = vector.multi_reduction <add>, %78, %cst_33 [1] : vector<4x32x128xf32> to vector<4x128xf32>
      %cst_34 = arith.constant 0.000000e+00 : f32
      %80 = vector.broadcast %cst_34 : f32 to vector<4x32x128xf32>
      %81 = arith.select %76, %64, %80 : vector<4x32x128xi1>, vector<4x32x128xf32>
      %cst_35 = arith.constant dense<0.000000e+00> : vector<4x128xf32>
      %82 = vector.multi_reduction <add>, %81, %cst_35 [1] : vector<4x32x128xf32> to vector<4x128xf32>
      %c0_36 = arith.constant 0 : index
      %c0_37 = arith.constant 0 : index
      %c0_38 = arith.constant 0 : index
      %83 = vector.load %arg7[%c0_36, %c0_37, %c0_38] : memref<1x8x128xf32, #tpu.memory_space<vmem>>, vector<1x8x128xf32>
      %84 = vector.shape_cast %83 : vector<1x8x128xf32> to vector<8x128xf32>
      %85 = tpu.concatenate %79, %82 in 0 : vector<4x128xf32>, vector<4x128xf32> -> vector<8x128xf32>
      %86 = arith.addf %84, %85 : vector<8x128xf32>
      %c0_39 = arith.constant 0 : index
      %c0_40 = arith.constant 0 : index
      %c0_41 = arith.constant 0 : index
      %87 = vector.load %arg7[%c0_39, %c0_40, %c0_41] : memref<1x8x128xf32, #tpu.memory_space<vmem>>, vector<1x8x128xf32>
      %88 = vector.shape_cast %87 : vector<1x8x128xf32> to vector<8x128xf32>
      %89 = vector.shape_cast %86 : vector<8x128xf32> to vector<1x8x128xf32>
      tpu.vector_store %arg7[%c0_39, %c0_40, %c0_41], %89 {strides = array<i32>} : memref<1x8x128xf32, #tpu.memory_space<vmem>>, vector<1x8x128xf32>,
    } else {
    }
    return
  }
  func.func @transform_0(%arg0: i32, %arg1: i32, %arg2: i32) -> (i32, i32, i32) {
    %c3_i32 = arith.constant 3 : i32
    %0 = arith.muli %arg0, %c3_i32 : i32
    %1 = arith.addi %0, %arg2 : i32
    %c0_i32 = arith.constant 0 : i32
    %c0_i32_0 = arith.constant 0 : i32
    %c0_i32_1 = arith.constant 0 : i32
    return %c0_i32, %1, %c0_i32_0 : i32, i32, i32
  }
  func.func @transform_1(%arg0: i32, %arg1: i32, %arg2: i32) -> (i32, i32, i32) {
    %c3_i32 = arith.constant 3 : i32
    %0 = arith.muli %arg0, %c3_i32 : i32
    %1 = arith.addi %0, %arg2 : i32
    %c1_i32 = arith.constant 1 : i32
    %2 = arith.addi %1, %c1_i32 : i32
    %c4_i32 = arith.constant 4 : i32
    %3 = arith.muli %2, %c4_i32 : i32
    %c0_i32 = arith.constant 0 : i32
    %c0_i32_0 = arith.constant 0 : i32
    %c0_i32_1 = arith.constant 0 : i32
    return %c0_i32, %3, %c0_i32_0 : i32, i32, i32
  }
  func.func @transform_2(%arg0: i32, %arg1: i32, %arg2: i32) -> (i32, i32) {
    %c0_i32 = arith.constant 0 : i32
    %c0_i32_0 = arith.constant 0 : i32
    return %c0_i32, %arg1 : i32, i32
  }
  func.func @transform_3(%arg0: i32, %arg1: i32, %arg2: i32) -> (i32, i32) {
    %c0_i32 = arith.constant 0 : i32
    %c0_i32_0 = arith.constant 0 : i32
    return %c0_i32, %arg1 : i32, i32
  }
  func.func @transform_4(%arg0: i32, %arg1: i32, %arg2: i32) -> (i32, i32, i32) {
    %c0_i32 = arith.constant 0 : i32
    %c0_i32_0 = arith.constant 0 : i32
    return %arg0, %c0_i32, %arg1 : i32, i32, i32
  }
}

</mosaic_0001>

<bundles_post_ra>
// kernel: _forward_impl.2
= control target key start
LH: loop header
LB: loop body
LE: loop exit
PB: predicated region body
PF: predicated region fallthrough
CT: control target
= control target key end

     0   :  { %vm318_vm0 = vcmask 1043456   ;;  %vm15_vm1 = vcmask 7168   ;;  %vm17_vm2 = vcmask 3072   ;;  %s880_s0 = inlined_call_operand.vmem [shape: f32[8,4096], index: 0, kind: input, shape index: {}]   ;;  %s881_s1 = inlined_call_operand.vmem [shape: f32[8,1], index: 1, kind: output, shape index: {0}]   ;;  %s882_s2 = inlined_call_operand.vmem [shape: f32[8,1], index: 2, kind: output, shape index: {1}]   ;;  %s883_s3 = inlined_call_operand.vmem [shape: f32[4,1], index: 3, kind: output, shape index: {2}]  }
   0x1   :  { %v433_v0 = vld [vmem:[%s880_s0] sm:$0xff]  ;;  %v438_v1 = vld [vmem:[%s880_s0 + $0x8] sm:$0xff]  ;;  %v443_v2 = vld [vmem:[%s880_s0 + $0x10] sm:$0xff] }
   0x2   :  { %v448_v3 = vld [vmem:[%s880_s0 + $0x18] sm:$0xff]  ;;  %v53_v4 = vmul.f32 %v433_v0, %v433_v0  ;;  %v54_v5 = vmul.f32 %v438_v1, %v438_v1  ;;  %v55_v6 = vmul.f32 %v443_v2, %v443_v2  ;;  %v459_v7 = vld [vmem:[%s880_s0 + $0x20] sm:$0xff]  ;;  %v466_v10 = vld [vmem:[%s880_s0 + $0x28] sm:$0xff]  ;;  %v222_v32 = vrot.slane %v433_v0, 4 }
   0x3   :  { %v56_v8 = vmul.f32 %v448_v3, %v448_v3  ;;  %v57_v11 = vmul.f32 %v459_v7, %v459_v7  ;;  %v473_v13 = vld [vmem:[%s880_s0 + $0x30] sm:$0xff]  ;;  %v58_v14 = vmul.f32 %v466_v10, %v466_v10  ;;  %v480_v16 = vld [vmem:[%s880_s0 + $0x38] sm:$0xff]  ;;  %v485_v17 = vld [vmem:[%s880_s0 + $0x40] sm:$0xff]  ;;  %v223_v33 = vrot.slane %v438_v1, 4 }
   0x4   :  { %v85_v9 = vadd.f32 %v54_v5, %v53_v4  ;;  %896 = vst [vmem:[#allocation5_spill] sm:$0xff] %v473_v13  ;;  %v59_v18 = vmul.f32 %v473_v13, %v473_v13  ;;  %v492_v20 = vld [vmem:[%s880_s0 + $0x48] sm:$0xff]  ;;  %v497_v21 = vld [vmem:[%s880_s0 + $0x50] sm:$0xff]  ;;  %v502_v22 = vld [vmem:[%s880_s0 + $0x58] sm:$0xff]  ;;  %v60_v26 = vmul.f32 %v480_v16, %v480_v16  ;;  %v61_v31 = vmul.f32 %v485_v17, %v485_v17 }
   0x5   :  { %897 = vst [vmem:[#allocation6_spill] sm:$0xff] %v480_v16  ;;  %v507_v23 = vld [vmem:[%s880_s0 + $0x60] sm:$0xff]  ;;  %v512_v24 = vld [vmem:[%s880_s0 + $0x68] sm:$0xff]  ;;  %v517_v25 = vld [vmem:[%s880_s0 + $0x70] sm:$0xff]  ;;  %v62_v37 = vmul.f32 %v492_v20, %v492_v20  ;;  %v63_v38 = vmul.f32 %v497_v21, %v497_v21  ;;  %v64_v39 = vmul.f32 %v502_v22, %v502_v22  ;;  %v224_v47 = vrot.slane %v443_v2, 4 }
   0x6   :  { %v86_v12 = vadd.f32 %v85_v9, %v55_v6  ;;  %v524_v28 = vld [vmem:[%s880_s0 + $0x78] sm:$0xff]  ;;  %v529_v29 = vld [vmem:[%s880_s0 + $0x80] sm:$0xff]  ;;  %v534_v30 = vld [vmem:[%s880_s0 + $0x88] sm:$0xff]  ;;  %v65_v44 = vmul.f32 %v507_v23, %v507_v23  ;;  %v66_v45 = vmul.f32 %v512_v24, %v512_v24  ;;  %v582_v46 = vmul.f32 %v517_v25, %v517_v25 }
   0x7   :  { %v543_v34 = vld [vmem:[%s880_s0 + $0x90] sm:$0xff]  ;;  %v548_v35 = vld [vmem:[%s880_s0 + $0x98] sm:$0xff]  ;;  %v553_v36 = vld [vmem:[%s880_s0 + $0xa0] sm:$0xff]  ;;  %v602_v51 = vmul.f32 %v524_v28, %v524_v28  ;;  %v606_v52 = vmul.f32 %v529_v29, %v529_v29  ;;  %v610_v53 = vmul.f32 %v534_v30, %v534_v30  ;;  %v225_v59 = vrot.slane %v448_v3, 4 }
   0x8   :  { %v87_v15 = vadd.f32 %v86_v12, %v56_v8  ;;  %v564_v41 = vld [vmem:[%s880_s0 + $0xa8] sm:$0xff]  ;;  %v569_v42 = vld [vmem:[%s880_s0 + $0xb0] sm:$0xff]  ;;  %v574_v43 = vld [vmem:[%s880_s0 + $0xb8] sm:$0xff]  ;;  %v619_v56 = vmul.f32 %v543_v34, %v543_v34  ;;  %v623_v57 = vmul.f32 %v548_v35, %v548_v35  ;;  %v627_v58 = vmul.f32 %v553_v36, %v553_v36 }
   0x9   :  { %v588_v48 = vld [vmem:[%s880_s0 + $0xc0] sm:$0xff]  ;;  %v593_v49 = vld [vmem:[%s880_s0 + $0xc8] sm:$0xff]  ;;  %v598_v50 = vld [vmem:[%s880_s0 + $0xd0] sm:$0xff]  ;;  %v642_v62 = vmul.f32 %v564_v41, %v564_v41  ;;  %v646_v63 = vmul.f32 %v569_v42, %v569_v42  ;;  %v650_v4 = vmul.f32 %v574_v43, %v574_v43 }
   0xa   :  { %v88_v19 = vadd.f32 %v87_v15, %v57_v11  ;;  %v615_v55 = vld [vmem:[%s880_s0 + $0xd8] sm:$0xff]  ;;  %v633_v60 = vld [vmem:[%s880_s0 + $0xe0] sm:$0xff]  ;;  %v638_v61 = vld [vmem:[%s880_s0 + $0xe8] sm:$0xff]  ;;  %v664_v9 = vmul.f32 %v588_v48, %v588_v48  ;;  %v668_v11 = vmul.f32 %v593_v49, %v593_v49  ;;  %v672_v12 = vmul.f32 %v598_v50, %v598_v50 }
   0xb   :  { %898 = vst [vmem:[#allocation7_spill] sm:$0xff] %v615_v55  ;;  %v655_v6 = vld [vmem:[%s880_s0 + $0xf0] sm:$0xff]  ;;  %v660_v8 = vld [vmem:[%s880_s0 + $0xf8] sm:$0xff]  ;;  %v677_v15 = vmul.f32 %v615_v55, %v615_v55  ;;  %v234_v55 = vrot.slane %v507_v23, 4 }
   0xc   :  { %v89_v27 = vadd.f32 %v88_v19, %v58_v14  ;;  %899 = vst [vmem:[#allocation8_spill] sm:$0xff] %v633_v60  ;;  %v226_v14 = vrot.slane %v459_v7, 4  ;;  %v286_v19 = vmul.f32 %v222_v32, %v433_v0  ;;  %v697_v32 = vmul.f32 %v660_v8, %v660_v8 }
   0xd   :  { %900 = vst [vmem:[#allocation9_spill] sm:$0xff] %v638_v61 }
   0xe   :  { %v90_v40 = vadd.f32 %v89_v27, %v59_v18  ;;  %901 = vst [vmem:[#allocation10_spill] sm:$0xff] %v646_v63  ;;  %v683_v27 = vmul.f32 %v633_v60, %v633_v60  ;;  %v290_v60 = vmul.f32 %v226_v14, %v459_v7  ;;  %v235_v14 = vrot.slane %v512_v24, 4 }
   0xf   :  { %902 = vst [vmem:[#allocation11_spill] sm:$0xff] %v650_v4  ;;  %v242_v4 = vrot.slane %v553_v36, 4 }
  0x10   :  { %v91_v54 = vadd.f32 %v90_v40, %v60_v26  ;;  %903 = vst [vmem:[#allocation12_spill] sm:$0xff] %v655_v6  ;;  %v287_v26 = vmul.f32 %v223_v33, %v438_v1  ;;  %v227_v40 = vrot.slane %v466_v10, 4 }
  0x11   :  { %904 = vst [vmem:[#allocation13_spill] sm:$0xff] %v660_v8 }
  0x12   :  { %v92_v5 = vadd.f32 %v91_v54, %v61_v31  ;;  %905 = vst [vmem:[#allocation14_spill] sm:$0xff] %v664_v9  ;;  %v687_v31 = vmul.f32 %v638_v61, %v638_v61  ;;  %v288_v54 = vmul.f32 %v224_v47, %v443_v2  ;;  %v229_v61 = vrot.slane %v480_v16, 4 }
  0x13   :  { %906 = vst [vmem:[#allocation15_spill] sm:$0xff] %v668_v11  ;;  %v238_v9 = vrot.slane %v529_v29, 4 }
  0x14   :  { %907 = vst [vmem:[#allocation16_spill] sm:$0xff] %v672_v12  ;;  %v93_v18 = vadd.f32 %v92_v5, %v62_v37  ;;  %v289_v37 = vmul.f32 %v225_v59, %v448_v3  ;;  %v228_v5 = vrot.slane %v473_v13, 4  ;;  %v291_v12 = vmul.f32 %v227_v40, %v466_v10 }
  0x15   :  { %908 = vst [vmem:[#allocation17_spill] sm:$0xff] %v677_v15  ;;  %v693_v15 = vmul.f32 %v655_v6, %v655_v6  ;;  %v320_v6 = vsel %vm318_vm0, %v287_v26, 0.0  ;;  %v237_v26 = vrot.slane %v524_v28, 4  ;;  %v240_v40 = vrot.slane %v543_v34, 4 }
  0x16   :  { %909 = vst [vmem:[#allocation18_spill] sm:$0xff] %v683_v27  ;;  %v94_v33 = vadd.f32 %v93_v18, %v63_v38  ;;  %v231_v27 = vrot.slane %v492_v20, 4  ;;  %v233_v38 = vrot.slane %v502_v22, 4  ;;  %v322_v18 = vsel %vm318_vm0, %v288_v54, 0.0 }
  0x17   :  { %910 = vst [vmem:[#allocation19_spill] sm:$0xff] %v687_v31  ;;  %v230_v31 = vrot.slane %v485_v17, 4  ;;  %v241_v54 = vrot.slane %v548_v35, 4 }
  0x18   :  { %911 = vst [vmem:[#allocation20_spill] sm:$0xff] %v693_v15  ;;  %v95_v47 = vadd.f32 %v94_v33, %v64_v39  ;;  %v319_v15 = vsel %vm318_vm0, %v286_v19, 0.0  ;;  %v324_v39 = vsel %vm318_vm0, %v289_v37, 0.0  ;;  %v236_v19 = vrot.slane %v517_v25, 4 }
  0x19   :  { %912 = vst [vmem:[#allocation21_spill] sm:$0xff] %v697_v32  ;;  %v232_v32 = vrot.slane %v497_v21, 4  ;;  %v321_v59 = vadd.f32 %v320_v6, %v319_v15  ;;  %v292_v6 = vmul.f32 %v228_v5, %v473_v13  ;;  %v239_v15 = vrot.slane %v534_v30, 4 }
  0x1a   :  { %v96_v8 = vadd.f32 %v95_v47, %v65_v44  ;;  %v326_v44 = vsel %vm318_vm0, %v290_v60, 0.0  ;;  %v244_v5 = vrot.slane %v569_v42, 4  ;;  %v294_v13 = vmul.f32 %v230_v31, %v485_v17 }
  0x1b   :  { %v323_v33 = vadd.f32 %v322_v18, %v321_v59  ;;  %v293_v59 = vmul.f32 %v229_v61, %v480_v16  ;;  %v296_v61 = vmul.f32 %v232_v32, %v497_v21  ;;  %v298_v60 = vmul.f32 %v234_v55, %v507_v23 }
  0x1c   :  { %v97_v11 = vadd.f32 %v96_v8, %v66_v45  ;;  %v328_v45 = vsel %vm318_vm0, %v291_v12, 0.0  ;;  %v243_v8 = vrot.slane %v564_v41, 4  ;;  %v297_v12 = vmul.f32 %v233_v38, %v502_v22 }
  0x1d   :  { %v325_v37 = vadd.f32 %v324_v39, %v323_v33  ;;  %v295_v39 = vmul.f32 %v231_v27, %v492_v20  ;;  %v300_v31 = vmul.f32 %v236_v19, %v517_v25  ;;  %v301_v27 = vmul.f32 %v237_v26, %v524_v28 }
  0x1e   :  { %v98_v47 = vadd.f32 %v97_v11, %v582_v46  ;;  %v330_v46 = vsel %vm318_vm0, %v292_v6, 0.0  ;;  %v246_v11 = vrot.slane %v588_v48, 4  ;;  %v302_v6 = vmul.f32 %v238_v9, %v529_v29 }
  0x1f   :  { %v327_v18 = vadd.f32 %v326_v44, %v325_v37  ;;  %v299_v44 = vmul.f32 %v235_v14, %v512_v24  ;;  %v247_v38 = vrot.slane %v593_v49, 4  ;;  %v304_v55 = vmul.f32 %v240_v40, %v543_v34 }
  0x20   :  { %v99_v63 = vadd.f32 %v98_v47, %v602_v51  ;;  %v332_v51 = vsel %vm318_vm0, %v293_v59, 0.0  ;;  %v303_v47 = vmul.f32 %v239_v15, %v534_v30  ;;  %v306_v14 = vmul.f32 %v242_v4, %v553_v36 }
  0x21   :  { %v329_v33 = vadd.f32 %v328_v45, %v327_v18  ;;  %v248_v9 = vrot.slane %v598_v50, 4  ;;  %v753_v59 = vmul.f32 %v243_v8, %v564_v41  ;;  %v338_v15 = vsel %vm318_vm0, %v296_v61, 0.0 }
  0x22   :  { %v100_v16 = vadd.f32 %v99_v63, %v606_v52  ;;  %v334_v52 = vsel %vm318_vm0, %v294_v13, 0.0  ;;  %v305_v63 = vmul.f32 %v241_v54, %v548_v35  ;;  %v340_v40 = vsel %vm318_vm0, %v297_v12, 0.0 }
  0x23   :  { %v331_v37 = vadd.f32 %v330_v46, %v329_v33  ;;  %v342_v54 = vsel %vm318_vm0, %v298_v60, 0.0  ;;  %v346_v45 = vsel %vm318_vm0, %v300_v31, 0.0  ;;  %v348_v18 = vsel %vm318_vm0, %v301_v27, 0.0 }
  0x24   :  { %v101_v32 = vadd.f32 %v100_v16, %v610_v53  ;;  %v336_v16 = vsel %vm318_vm0, %v295_v39, 0.0  ;;  %v757_v53 = vmul.f32 %v244_v5, %v569_v42  ;;  %v350_v39 = vsel %vm318_vm0, %v302_v6, 0.0 }
  0x25   :  { %v333_v19 = vadd.f32 %v332_v51, %v331_v37  ;;  %v352_v5 = vsel %vm318_vm0, %v303_v47, 0.0  ;;  %v770_v61 = vsel %vm318_vm0, %v304_v55, 0.0  ;;  %v776_v60 = vsel %vm318_vm0, %v306_v14, 0.0 }
  0x26   :  { %v102_v26 = vadd.f32 %v101_v32, %v619_v56  ;;  %v344_v56 = vsel %vm318_vm0, %v299_v44, 0.0  ;;  %v122_v33 = vand.u32 2147483647, %v433_v0  ;;  %v123_v44 = vand.u32 2147483647, %v438_v1  ;;  %v913_v32 = vld [vmem:[#allocation5_spill] sm:$0xff] }
  0x27   :  { %v335_v13 = vadd.f32 %v334_v52, %v333_v19  ;;  %v124_v51 = vand.u32 2147483647, %v443_v2  ;;  %v126_v27 = vand.u32 2147483647, %v459_v7  ;;  %v127_v6 = vand.u32 2147483647, %v466_v10 }
  0x28   :  { %v103_v4 = vadd.f32 %v102_v26, %v623_v57  ;;  %v773_v57 = vsel %vm318_vm0, %v305_v63, 0.0  ;;  %v128_v47 = vand.u32 2147483647, %v913_v32  ;;  %v914_v52 = vld [vmem:[#allocation6_spill] sm:$0xff]  ;;  %v130_v63 = vand.u32 2147483647, %v485_v17 }
  0x29   :  { %v337_v8 = vadd.f32 %v336_v16, %v335_v13  ;;  %v129_v55 = vand.u32 2147483647, %v914_v52  ;;  %v915_v0 = vld [vmem:[#allocation10_spill] sm:$0xff]  ;;  %v131_v1 = vand.u32 2147483647, %v492_v20  ;;  %v916_v26 = vld [vmem:[#allocation11_spill] sm:$0xff] }
  0x2a   :  { %v104_v46 = vadd.f32 %v103_v4, %v627_v58  ;;  %v125_v58 = vand.u32 2147483647, %v448_v3  ;;  %v132_v2 = vand.u32 2147483647, %v497_v21  ;;  %v134_v7 = vand.u32 2147483647, %v507_v23 }
  0x2b   :  { %v339_v12 = vadd.f32 %v338_v15, %v337_v8  ;;  %v135_v10 = vand.u32 2147483647, %v512_v24  ;;  %v136_v19 = vand.u32 2147483647, %v517_v25  ;;  %v137_v13 = vand.u32 2147483647, %v524_v28 }
  0x2c   :  { %v105_v31 = vadd.f32 %v104_v46, %v642_v62  ;;  %v133_v62 = vand.u32 2147483647, %v502_v22  ;;  %v138_v17 = vand.u32 2147483647, %v529_v29  ;;  %v139_v15 = vand.u32 2147483647, %v534_v30 }
  0x2d   :  { %v341_v37 = vadd.f32 %v340_v40, %v339_v12  ;;  %v140_v21 = vand.u32 2147483647, %v543_v34  ;;  %v141_v22 = vand.u32 2147483647, %v548_v35  ;;  %v142_v40 = vand.u32 2147483647, %v553_v36 }
  0x2e   :  { %v106_v14 = vadd.f32 %v105_v31, %v915_v0  ;;  %v917_v23 = vld [vmem:[#allocation14_spill] sm:$0xff]  ;;  %v143_v24 = vand.u32 2147483647, %v564_v41  ;;  %v144_v25 = vand.u32 2147483647, %v569_v42  ;;  %v154_v8 = vmax.f32 %v122_v33, %v126_v27  ;;  %v919_v32 = vld [vmem:[#allocation16_spill] sm:$0xff] }
  0x2f   :  { %v343_v3 = vadd.f32 %v342_v54, %v341_v37  ;;  %v145_v54 = vand.u32 2147483647, %v574_v43  ;;  %v146_v29 = vand.u32 2147483647, %v588_v48  ;;  %v155_v30 = vmax.f32 %v123_v44, %v127_v6  ;;  %v920_v52 = vld [vmem:[#allocation7_spill] sm:$0xff]  ;;  %v921_v27 = vld [vmem:[#allocation17_spill] sm:$0xff] }
  0x30   :  { %v107_v16 = vadd.f32 %v106_v14, %v916_v26  ;;  %v147_v34 = vand.u32 2147483647, %v593_v49  ;;  %v156_v35 = vmax.f32 %v124_v51, %v128_v47  ;;  %v157_v12 = vmax.f32 %v125_v58, %v129_v55 }
  0x31   :  { %v345_v20 = vadd.f32 %v344_v56, %v343_v3  ;;  %v918_v56 = vld [vmem:[#allocation15_spill] sm:$0xff]  ;;  %v148_v31 = vand.u32 2147483647, %v598_v50  ;;  %v158_v37 = vmax.f32 %v154_v8, %v130_v63  ;;  %v159_v41 = vmax.f32 %v155_v30, %v131_v1 }
  0x32   :  { %v108_v4 = vadd.f32 %v107_v16, %v917_v23  ;;  %v149_v0 = vand.u32 2147483647, %v920_v52  ;;  %v161_v14 = vmax.f32 %v157_v12, %v133_v62  ;;  %v409_v1 = vmov 0.0   ;;  %v923_v16 = vld [vmem:[#allocation18_spill] sm:$0xff]  ;;  %v924_v62 = vld [vmem:[#allocation9_spill] sm:$0xff]  ;;  %v929_v12 = vld [vmem:[#allocation20_spill] sm:$0xff] }
  0x33   :  { %v347_v28 = vadd.f32 %v346_v45, %v345_v20  ;;  %v160_v45 = vmax.f32 %v156_v35, %v132_v2  ;;  %v162_v33 = vmax.f32 %v158_v37, %v134_v7  ;;  %v163_v44 = vmax.f32 %v159_v41, %v135_v10  ;;  %16 = vst.msk [vmem:[#allocation2] sm:$0xff] %vm15_vm1, %v409_v1 }
  0x34   :  { %v109_v46 = vadd.f32 %v108_v4, %v918_v56  ;;  %v165_v51 = vmax.f32 %v161_v14, %v137_v13  ;;  %19 = vst.msk [vmem:[#allocation3] sm:$0xff] %vm15_vm1, %v409_v1  ;;  %v927_v4 = vld [vmem:[#allocation13_spill] sm:$0xff]  ;;  %v928_v56 = vrot.slane %v574_v43, 4 }
  0x35   :  { %v349_v36 = vadd.f32 %v348_v18, %v347_v28  ;;  %v164_v26 = vmax.f32 %v160_v45, %v136_v19  ;;  %v922_v18 = vld [vmem:[#allocation8_spill] sm:$0xff]  ;;  %v166_v55 = vmax.f32 %v162_v33, %v138_v17  ;;  %v167_v63 = vmax.f32 %v163_v44, %v139_v15  ;;  %v926_v15 = vld [vmem:[#allocation19_spill] sm:$0xff]  ;;  %18 = vst.msk [vmem:[#allocation4] sm:$0xf] %vm17_vm2, %v409_v1 }
  0x36   :  { %v110_v42 = vadd.f32 %v109_v46, %v919_v32  ;;  %v150_v47 = vand.u32 2147483647, %v922_v18  ;;  %v169_v10 = vmax.f32 %v165_v51, %v141_v22  ;;  %v153_v28 = vand.u32 2147483647, %v927_v4 }
  0x37   :  { %v351_v3 = vadd.f32 %v350_v39, %v349_v36  ;;  %v151_v39 = vand.u32 2147483647, %v924_v62  ;;  %v168_v7 = vmax.f32 %v164_v26, %v140_v21  ;;  %v170_v20 = vmax.f32 %v166_v55, %v142_v40 }
  0x38   :  { %v111_v6 = vadd.f32 %v110_v42, %v921_v27  ;;  %v171_v17 = vmax.f32 %v167_v63, %v143_v24  ;;  %v173_v30 = vmax.f32 %v169_v10, %v145_v54  ;;  %v309_v21 = vmul.f32 %v928_v56, %v574_v43  ;;  %v930_v43 = vld [vmem:[#allocation21_spill] sm:$0xff] }
  0x39   :  { %v353_v58 = vadd.f32 %v352_v5, %v351_v3  ;;  %v925_v5 = vld [vmem:[#allocation12_spill] sm:$0xff]  ;;  %v172_v8 = vmax.f32 %v168_v7, %v144_v25  ;;  %v174_v46 = vmax.f32 %v170_v20, %v146_v29  ;;  %v360_v40 = vsel %vm318_vm0, %v753_v59, 0.0 }
  0x3a   :  { %v112_v2 = vadd.f32 %v111_v6, %v923_v16  ;;  %v152_v13 = vand.u32 2147483647, %v925_v5  ;;  %v175_v35 = vmax.f32 %v171_v17, %v147_v34  ;;  %v177_v36 = vmax.f32 %v173_v30, %v149_v0 }
  0x3b   :  { %v355_v19 = vadd.f32 %v770_v61, %v353_v58  ;;  %v176_v24 = vmax.f32 %v172_v8, %v148_v31  ;;  %v310_v25 = vmul.f32 %v246_v11, %v588_v48  ;;  %v178_v37 = vmax.f32 %v174_v46, %v150_v47 }
  0x3c   :  { %v113_v23 = vadd.f32 %v112_v2, %v926_v15  ;;  %v179_v41 = vmax.f32 %v175_v35, %v151_v39  ;;  %v181_v34 = vmax.f32 %v177_v36, %v153_v28  ;;  %v249_v42 = vrot.slane %v920_v52, 4  ;;  %v121_v15 = vld [vmem:[#allocation3] sm:$0xff]  ;;  %v189_v8 = vld [vmem:[#allocation4] sm:$0xf] }
  0x3d   :  { %v357_v22 = vadd.f32 %v773_v57, %v355_v19  ;;  %v362_v57 = vsel %vm318_vm0, %v757_v53, 0.0  ;;  %v180_v29 = vmax.f32 %v176_v24, %v152_v13  ;;  %v311_v31 = vmul.f32 %v247_v38, %v593_v49 }
  0x3e   :  { %v114_v61 = vadd.f32 %v113_v23, %v929_v12  ;;  %v364_v48 = vsel %vm318_vm0, %v309_v21, 0.0  ;;  %v182_v11 = vmax.f32 %v178_v37, %v179_v41  ;;  %v250_v45 = vrot.slane %v922_v18, 4 }
  0x3f   :  { %v359_v54 = vadd.f32 %v776_v60, %v357_v22  ;;  %v183_v60 = vmax.f32 %v180_v29, %v181_v34  ;;  %v312_v53 = vmul.f32 %v248_v9, %v598_v50  ;;  %v366_v14 = vsel %vm318_vm0, %v310_v25, 0.0 }
  0x40   :  { %v115_v32 = vadd.f32 %v114_v61, %v930_v43  ;;  %v251_v33 = vrot.slane %v924_v62, 4  ;;  %v313_v44 = vmul.f32 %v249_v42, %v920_v52  ;;  %v368_v49 = vsel %vm318_vm0, %v311_v31, 0.0 }
  0x41   :  { %v361_v59 = vadd.f32 %v360_v40, %v359_v54  ;;  %v184_v38 = vmax.f32 %v182_v11, %v183_v60  ;;  %v252_v6 = vrot.slane %v925_v5, 4  ;;  %v314_v26 = vmul.f32 %v250_v45, %v922_v18 }
  0x42   :  { %116 = vadd.xlane.f32.xlu0 %v115_v32  ;;  %v370_v51 = vsel %vm318_vm0, %v312_v53, 0.0  ;;  %v253_v50 = vrot.slane %v927_v4, 4  ;;  %v315_v9 = vmul.f32 %v251_v33, %v924_v62  ;;  %v372_v47 = vsel %vm318_vm0, %v313_v44, 0.0 }
  0x43   :  { %v363_v0 = vadd.f32 %v362_v57, %v361_v59  ;;  %v316_v52 = vmul.f32 %v252_v6, %v925_v5  ;;  %v374_v63 = vsel %vm318_vm0, %v314_v26, 0.0  ;;  %v52_v5 = vld [vmem:[#allocation2] sm:$0xff] }
  0x44   :  { %v317_v2 = vmul.f32 %v253_v50, %v927_v4  ;;  %v376_v18 = vsel %vm318_vm0, %v315_v9, 0.0 }
  0x45   :  { %v365_v3 = vadd.f32 %v364_v48, %v363_v0  ;;  %v378_v7 = vsel %vm318_vm0, %v316_v52, 0.0 }
  0x46   :  { %v380_v19 = vsel %vm318_vm0, %v317_v2, 0.0 }
  0x47   :  { %v367_v27 = vadd.f32 %v366_v14, %v365_v3 }
  0x49   :  { %v369_v58 = vadd.f32 %v368_v49, %v367_v27 }
  0x4a   :  { %185 = vmax.xlane.f32.xlu0 %v184_v38 }
  0x4b   :  { %v371_v55 = vadd.f32 %v370_v51, %v369_v58 }
  0x4d   :  { %v373_v16 = vadd.f32 %v372_v47, %v371_v55 }
  0x4f   :  { %v375_v39 = vadd.f32 %v374_v63, %v373_v16 }
  0x51   :  { %v377_v10 = vadd.f32 %v376_v18, %v375_v39 }
  0x53   :  { %v379_v62 = vadd.f32 %v378_v7, %v377_v10 }
  0x55   :  { %v381_v13 = vadd.f32 %v380_v19, %v379_v62 }
  0x57   :  { %382 = vadd.xlane.f32.xlu1 %v381_v13 }
  0xb5   :  { %v117_v20 = vpop.xlane.xlu0 %116 }
  0xb6   :  { %v118_v17 = vadd.f32 %v117_v20, %v52_v5 }
  0xb8   :  { %120 = vst.msk [vmem:[#allocation2] sm:$0xff] %vm15_vm1, %v118_v17 }
  0xbd   :  { %v186_v23 = vpop.xlane.xlu0 %185 }
  0xbe   :  { %v187_v4 = vmax.f32 %v121_v15, %v186_v23 }
  0xbf   :  { %v390_v28 = vld [vmem:[#allocation2] sm:$0xff] }
  0xc0   :  { %391 = vst.msk [vmem:[%s881_s1] sm:$0xff] %vm15_vm1, %v390_v28 }
  0xc1   :  { %188 = vst.msk [vmem:[#allocation3] sm:$0xff] %vm15_vm1, %v187_v4 }
  0xc8   :  { %v392_v30 = vld [vmem:[#allocation3] sm:$0xff] }
  0xc9   :  { %393 = vst.msk [vmem:[%s882_s2] sm:$0xff] %vm15_vm1, %v392_v30 }
  0xca   :  { %v383_v1 = vpop.xlane.xlu1 %382 }
  0xcb   :  { %v384_v56 = vadd.f32 %v383_v1, %v189_v8 }
  0xcd   :  { %386 = vst.msk [vmem:[#allocation4] sm:$0xf] %vm17_vm2, %v384_v56 }
  0xd4   :  { %v394_v21 = vld [vmem:[#allocation4] sm:$0xf] }
  0xd5   :  { %395 = vst.msk [vmem:[%s883_s3] sm:$0xf] %vm17_vm2, %v394_v21 }

// kernel: _forward_impl.3
= control target key start
LH: loop header
LB: loop body
LE: loop exit
PB: predicated region body
PF: predicated region fallthrough
CT: control target
= control target key end

     0   :  { %s4053_s15 = smov 0   ;;  %s4055_s16 = smov 0   ;;  %s5723_s0 = inlined_call_operand.vmem [shape: f32[8,104,64], index: 0, kind: input, shape index: {}, may-alias: {0,1}]   ;;  %s5724_s1 = inlined_call_operand.vmem [shape: f32[8,104,64], index: 1, kind: input, shape index: {}, may-alias: {0,1}]   ;;  %s5725_s2 = inlined_call_operand.vmem [shape: bf16[256,128], index: 2, kind: input, shape index: {}]   ;;  %s5726_s3 = inlined_call_operand.vmem [shape: bf16[256,128], index: 3, kind: input, shape index: {}]   ;;  %s5727_s4 = inlined_call_operand.vmem [shape: f32[1,8,128], index: 4, kind: output, shape index: {}]  }
   0x1   :  { %s4057_s17 = smov 0   ;;  %s4059_s18 = smov 0  }
   0x2   :  { %s4061_s19 = smov 0   ;;  %s4063_s20 = smov 0  }
   0x3   :  { %s4065_s21 = smov 0  }
   0x4 LB: > { %s26_s22 = sadd.s32 1, %s4005_s20  ;;  %s44_s23 = sadd.s32 1, %s3997_s18  ;;  %s4009_s21 = sphi %s4065_s21, %s14_s21   ;;  %s4005_s20 = sphi %s4063_s20, %s5870_s20   ;;  %s4001_s19 = sphi %s4061_s19, %s5869_s19   ;;  %s3997_s18 = sphi %s4059_s18, %s5868_s18   ;;  %s3993_s17 = sphi %s4057_s17, %s5867_s17   ;;  %s3989_s16 = sphi %s4055_s16, %s5866_s16   ;;  %s3985_s15 = sphi %s4053_s15, %s5865_s15  }
   0x5   : > { %p27_p0 = scmp.ge.s32.totalorder %s26_s22, 3  ;;  %p51_p1 = scmp.ne.s32.totalorder %s3997_s18, %s3993_s17 }
   0x6   : > { %p52_p2 = scmp.eq.s32.totalorder %s4009_s21, 0  ;;  %s3694_s24 = sshll.u32 %s4005_s20, 2 }
   0x7   : > { %s5872_s22 = smov (%p27_p0, %s26_s22), 0  ;;  %s3695_s26 = sadd.s32 4, %s3694_s24 }
   0x8   : > { %p4098_p3 = por %p52_p2, %p51_p1  ;;  %s41_s27 = ssub.s32 %s4005_s20, %s5872_s22 }
   0x9   : > { %s3696_s28 = sshll.u32 %s5872_s22, 2  ;;  %p42_p4 = scmp.eq.s32.totalorder %s41_s27, 0 }
   0xa   : > { %s3697_s29 = sadd.s32 4, %s3696_s28  ;;  %s78_s5 = sadd.s32 1, %s3989_s16 }
   0xb   : > { %s75_s30 = ssub.s32 %s3695_s26, %s3697_s29  ;;  %p85_p6 = scmp.ne.s32.totalorder %s3989_s16, %s3985_s15 }
   0xc   : > { %s4107_s6 = scalar_select %p42_p4, %s3997_s18, %s44_s23  }
   0xd   : > { %p76_p5 = scmp.eq.s32.totalorder %s75_s30, 0  ;;  %p4116_p7 = por %p85_p6, %p52_p2 }
   0xe   : > { %p3402_p8 = scmp.ge.s32.totalorder %s4009_s21, 3 }
   0xf   : > { %s4112_s7 = scalar_select %p76_p5, %s3989_s16, %s78_s5  }
  0x10   : > { %205 = sbr.rel (%p3402_p8) target bundleno = 71 (0x47), region = 24 }
  0x15   : > { %208 = sbr.rel (!%p4098_p3) target bundleno = 59 (0x3b), region = 28  ;;  %s210_s9 = sand.u32 (%p4098_p3), 1, %s3997_s18  }
  0x16   : > { %s4124_s10 = sshll.u32 (%p4098_p3), %s210_s9, 8  ;;  %s3698_s11 = sshll.u32 (%p4098_p3), %s4005_s20, 5 }
  0x17   : > { %s4130_s14 = scalar_lea.vmem (%p4098_p3), %s5723_s0, %s3698_s11   ;;  %s212_s23 = scalar_lea.vmem (%p4098_p3), [#allocation2], %s4124_s10  }
  0x18   : > { %s5756_s24 = smov (%p4098_p3), %s212_s23  ;;  %s5757_s25 = smov (%p4098_p3), %s4130_s14 }
  0x19   : > { %s4140_s26 = smov (%p4098_p3), 0   ;;  %s4142_s27 = smov (%p4098_p3), 0  }
  0x1a LB: >> { %v364_v0 = vld [vmem:[%s4017_s25] sm:$0xff]  ;;  %v366_v1 = vld [vmem:[%s4017_s25 + $0x8] sm:$0xff]  ;;  %v368_v2 = vld [vmem:[%s4017_s25 + $0x10] sm:$0xff]  ;;  %s428_s28 = sadd.s32 1, %s4021_s26  ;;  %s358_s27 = sadd.s32 1, %s4025_s27   ;;  %s4025_s27 = sphi %s4142_s27, %s358_s27   ;;  %s4021_s26 = sphi %s4140_s26, %s5760_s26   ;;  %s4017_s25 = sphi %s5757_s25, %s5759_s25   ;;  %s4013_s24 = sphi %s5756_s24, %s5758_s24  }
  0x1b   : >> { %365 = vst [vmem:[%s4013_s24] sm:$0xff] %v364_v0  ;;  %v370_v3 = vld [vmem:[%s4017_s25 + $0x18] sm:$0xff]  ;;  %p429_p9 = scmp.ge.s32.totalorder %s428_s28, 1  ;;  %v372_v4 = vld [vmem:[%s4017_s25 + $0x68] sm:$0xff]  ;;  %v374_v5 = vld [vmem:[%s4017_s25 + $0x70] sm:$0xff]  ;;  %p357_p10 = scmp.ge.s32.totalorder %s358_s27, 1 }
  0x1c   : >> { %367 = vst [vmem:[%s4013_s24 + $0x8] sm:$0xff] %v366_v1  ;;  %v376_v6 = vld [vmem:[%s4017_s25 + $0x78] sm:$0xff]  ;;  %v378_v7 = vld [vmem:[%s4017_s25 + $0x80] sm:$0xff]  ;;  %v380_v8 = vld [vmem:[%s4017_s25 + $0xd0] sm:$0xff] }
  0x1d   : >> { %369 = vst [vmem:[%s4013_s24 + $0x10] sm:$0xff] %v368_v2  ;;  %s5874_s28 = smov (%p429_p9, %s428_s28), 0  ;;  %v382_v9 = vld [vmem:[%s4017_s25 + $0xd8] sm:$0xff]  ;;  %v384_v10 = vld [vmem:[%s4017_s25 + $0xe0] sm:$0xff]  ;;  %v386_v11 = vld [vmem:[%s4017_s25 + $0xe8] sm:$0xff] }
  0x1e   : >> { %371 = vst [vmem:[%s4013_s24 + $0x18] sm:$0xff] %v370_v3  ;;  %s3410_s29 = sshll.u32 %s5874_s28, 5  ;;  %v388_v12 = vld [vmem:[%s4017_s25 + $0x138] sm:$0xff]  ;;  %v390_v13 = vld [vmem:[%s4017_s25 + $0x140] sm:$0xff]  ;;  %v392_v14 = vld [vmem:[%s4017_s25 + $0x148] sm:$0xff]  ;;  %s5760_s26 = smov %s5874_s28 }
  0x1f   : >> { %373 = vst [vmem:[%s4013_s24 + $0x20] sm:$0xff] %v372_v4  ;;  %s4173_s30 = scalar_lea.vmem %s4130_s14, %s3410_s29   ;;  %s4177_s5 = scalar_lea.vmem %s212_s23, %s3410_s29 [#allocation2]   ;;  %v394_v15 = vld [vmem:[%s4017_s25 + $0x150] sm:$0xff]  ;;  %v396_v16 = vld [vmem:[%s4017_s25 + $0x1a0] sm:$0xff]  ;;  %v398_v17 = vld [vmem:[%s4017_s25 + $0x1a8] sm:$0xff] }
  0x20   : >> { %375 = vst [vmem:[%s4013_s24 + $0x28] sm:$0xff] %v374_v5  ;;  %v400_v18 = vld [vmem:[%s4017_s25 + $0x1b0] sm:$0xff]  ;;  %v402_v19 = vld [vmem:[%s4017_s25 + $0x1b8] sm:$0xff]  ;;  %v404_v20 = vld [vmem:[%s4017_s25 + $0x208] sm:$0xff] }
  0x21   : >> { %377 = vst [vmem:[%s4013_s24 + $0x30] sm:$0xff] %v376_v6  ;;  %v406_v21 = vld [vmem:[%s4017_s25 + $0x210] sm:$0xff]  ;;  %v408_v22 = vld [vmem:[%s4017_s25 + $0x218] sm:$0xff]  ;;  %v410_v23 = vld [vmem:[%s4017_s25 + $0x220] sm:$0xff] }
  0x22   : >> { %379 = vst [vmem:[%s4013_s24 + $0x38] sm:$0xff] %v378_v7  ;;  %v412_v24 = vld [vmem:[%s4017_s25 + $0x270] sm:$0xff]  ;;  %v414_v25 = vld [vmem:[%s4017_s25 + $0x278] sm:$0xff]  ;;  %v416_v26 = vld [vmem:[%s4017_s25 + $0x280] sm:$0xff] }
  0x23   : >> { %381 = vst [vmem:[%s4013_s24 + $0x40] sm:$0xff] %v380_v8  ;;  %v418_v27 = vld [vmem:[%s4017_s25 + $0x288] sm:$0xff]  ;;  %v420_v28 = vld [vmem:[%s4017_s25 + $0x2d8] sm:$0xff]  ;;  %v422_v29 = vld [vmem:[%s4017_s25 + $0x2e0] sm:$0xff] }
  0x24   : >> { %383 = vst [vmem:[%s4013_s24 + $0x48] sm:$0xff] %v382_v9  ;;  %v424_v30 = vld [vmem:[%s4017_s25 + $0x2e8] sm:$0xff]  ;;  %v426_v31 = vld [vmem:[%s4017_s25 + $0x2f0] sm:$0xff]  ;;  %s5759_s25 = smov %s4173_s30 }
  0x25   : >> { %385 = vst [vmem:[%s4013_s24 + $0x50] sm:$0xff] %v384_v10 }
  0x26   : >> { %387 = vst [vmem:[%s4013_s24 + $0x58] sm:$0xff] %v386_v11 }
  0x27   : >> { %389 = vst [vmem:[%s4013_s24 + $0x60] sm:$0xff] %v388_v12 }
  0x28   : >> { %391 = vst [vmem:[%s4013_s24 + $0x68] sm:$0xff] %v390_v13 }
  0x29   : >> { %393 = vst [vmem:[%s4013_s24 + $0x70] sm:$0xff] %v392_v14 }
  0x2a   : >> { %395 = vst [vmem:[%s4013_s24 + $0x78] sm:$0xff] %v394_v15 }
  0x2b   : >> { %397 = vst [vmem:[%s4013_s24 + $0x80] sm:$0xff] %v396_v16 }
  0x2c   : >> { %399 = vst [vmem:[%s4013_s24 + $0x88] sm:$0xff] %v398_v17 }
  0x2d   : >> { %401 = vst [vmem:[%s4013_s24 + $0x90] sm:$0xff] %v400_v18 }
  0x2e   : >> { %403 = vst [vmem:[%s4013_s24 + $0x98] sm:$0xff] %v402_v19 }
  0x2f   : >> { %405 = vst [vmem:[%s4013_s24 + $0xa0] sm:$0xff] %v404_v20 }
  0x30   : >> { %407 = vst [vmem:[%s4013_s24 + $0xa8] sm:$0xff] %v406_v21 }
  0x31   : >> { %409 = vst [vmem:[%s4013_s24 + $0xb0] sm:$0xff] %v408_v22 }
  0x32   : >> { %411 = vst [vmem:[%s4013_s24 + $0xb8] sm:$0xff] %v410_v23 }
  0x33   : >> { %413 = vst [vmem:[%s4013_s24 + $0xc0] sm:$0xff] %v412_v24 }
  0x34   : >> { %415 = vst [vmem:[%s4013_s24 + $0xc8] sm:$0xff] %v414_v25 }
  0x35   : >> { %417 = vst [vmem:[%s4013_s24 + $0xd0] sm:$0xff] %v416_v26 }
  0x36   : >> { %419 = vst [vmem:[%s4013_s24 + $0xd8] sm:$0xff] %v418_v27  ;;  %360 = sbr.rel (!%p357_p10) target bundleno = 26 (0x1a), region = 195 }
  0x37   : >> { %421 = vst [vmem:[%s4013_s24 + $0xe0] sm:$0xff] %v420_v28 }
  0x38   : >> { %423 = vst [vmem:[%s4013_s24 + $0xe8] sm:$0xff] %v422_v29 }
  0x39   : >> { %425 = vst [vmem:[%s4013_s24 + $0xf0] sm:$0xff] %v424_v30 }
  0x3a   : >> { %427 = vst [vmem:[%s4013_s24 + $0xf8] sm:$0xff] %v426_v31  ;;  %s5758_s24 = smov %s4177_s5 }
  0x3b PF: > { %479 = sbr.rel (!%p4116_p7) target bundleno = 71 (0x47), region = 80  ;;  %s481_s9 = sand.u32 (%p4116_p7), 1, %s3989_s16  }
  0x3c   : > { %s3419_s11 = sshll.u32 (%p4116_p7), %s4005_s20, 5  ;;  %s3418_s12 = sshll.u32 (%p4116_p7), %s481_s9, 6 }
  0x3d   : > { %s3281_s5 = scalar_lea.vmem (%p4116_p7), %s5724_s1, %s3419_s11  ;;  %s483_s28 = scalar_lea.vmem (%p4116_p7), [#allocation3], %s3418_s12 }
  0x3e   : > { %v3420_v32 = vld [vmem:[%s3281_s5 + $0x20] sm:$0xff] (%p4116_p7)  ;;  %v3421_v33 = vld [vmem:[%s3281_s5 + $0x88] sm:$0xff] (%p4116_p7)  ;;  %v3422_v34 = vld [vmem:[%s3281_s5 + $0xf0] sm:$0xff] (%p4116_p7) }
  0x3f   : > { %533 = vst [vmem:[%s483_s28] sm:$0xff] (%p4116_p7), %v3420_v32  ;;  %v3423_v35 = vld [vmem:[%s3281_s5 + $0x158] sm:$0xff] (%p4116_p7)  ;;  %v3424_v36 = vld [vmem:[%s3281_s5 + $0x1c0] sm:$0xff] (%p4116_p7)  ;;  %v3425_v37 = vld [vmem:[%s3281_s5 + $0x228] sm:$0xff] (%p4116_p7) }
  0x40   : > { %535 = vst [vmem:[%s483_s28 + $0x8] sm:$0xff] %v3421_v33  ;;  %v3426_v38 = vld [vmem:[%s3281_s5 + $0x290] sm:$0xff]  ;;  %v3427_v39 = vld [vmem:[%s3281_s5 + $0x2f8] sm:$0xff] }
  0x41   : > { %537 = vst [vmem:[%s483_s28 + $0x10] sm:$0xff] %v3422_v34 }
  0x42   : > { %539 = vst [vmem:[%s483_s28 + $0x18] sm:$0xff] %v3423_v35 }
  0x43   : > { %541 = vst [vmem:[%s483_s28 + $0x20] sm:$0xff] %v3424_v36 }
  0x44   : > { %543 = vst [vmem:[%s483_s28 + $0x28] sm:$0xff] %v3425_v37 }
  0x45   : > { %545 = vst [vmem:[%s483_s28 + $0x30] sm:$0xff] %v3426_v38 }
  0x46   : > { %547 = vst [vmem:[%s483_s28 + $0x38] sm:$0xff] %v3427_v39 }
  0x47 PF: > { %p3428_p11 = scmp.ge.s32.totalorder %s4009_s21, 1  ;;  %p552_p12 = scmp.lt.s32.totalorder %s4009_s21, 4 }
  0x49   : > { %p553_p13 = pnand %p3428_p11, %p552_p12 }
  0x4b   : > { %556 = sbr.rel (%p553_p13) target bundleno = 885 (0x375), region = 118 }
  0x50   : > { %s559_s8 = sand.u32 1, %s3993_s17   ;;  %s566_s10 = sand.u32 1, %s3985_s15  }
  0x51   : > { %s3429_s14 = sshll.u32 %s559_s8, 8  ;;  %s3430_s23 = sshll.u32 %s566_s10, 6 }
  0x52   : > { %s4251_s24 = scalar_lea.vmem [#allocation2], %s3429_s14  ;;  %s4253_s25 = scalar_lea.vmem [#allocation3], %s3430_s23 }
  0x53   : > { %p3431_p0 = scmp.ne.s32.totalorder %s4001_s19, 0 }
  0x55   : > { %635 = sbr.rel (%p3431_p0) target bundleno = 92 (0x5c), region = 130 }
  0x5a   : > { %v4027_v40 = vmov 0.0  }
  0x5b   : > { %636 = vst [vmem:[%s5727_s4] sm:$0xff] %v4027_v40 }
  0x5c PF: > { %v3712_v41 = vld [vmem:[%s5725_s2 + $0x38] sm:$0xff]  ;;  %v3711_v45 = vld [vmem:[%s5725_s2 + $0x30] sm:$0xff]  ;;  %v4284_v49 = vld [vmem:[%s4251_s24] sm:$0xff]  ;;  %vm752_vm0 = vcmask 1046528   ;;  %vm905_vm1 = vcmask 523264   ;;  %vm1438_vm2 = vcmask 1045504  }
  0x5d   : > { %v3716_v42 = vld [vmem:[%s5726_s3 + $0x38] sm:$0xff]  ;;  %958 = vmatpush.bf16.msra.mxu0 %v3712_v41  ;;  %v3715_v46 = vld [vmem:[%s5726_s3 + $0x30] sm:$0xff]  ;;  %v4287_v50 = vld [vmem:[%s4251_s24 + $0x8] sm:$0xff]  ;;  %v753_v54 = vrot.slane %v4284_v49, 1  ;;  %vm1913_vm3 = vcmask 1044480  }
  0x5e   : > { %v3704_v43 = vld [vmem:[%s5725_s2 + $0x18] sm:$0xff]  ;;  %1079 = vmatpush.bf16.msra.mxu1 %v3716_v42  ;;  %v3703_v47 = vld [vmem:[%s5725_s2 + $0x10] sm:$0xff]  ;;  %v3710_v51 = vld [vmem:[%s5725_s2 + $0x28] sm:$0xff]  ;;  %v754_v55 = vrot.slane %v4287_v50, 1  ;;  %v680_v4 = vpack.c.bf16 %v4287_v50, %v4284_v49 }
  0x5f   : > { %v3708_v44 = vld [vmem:[%s5726_s3 + $0x18] sm:$0xff]  ;;  %1240 = vmatpush.bf16.msra.mxu2 %v3704_v43  ;;  %v3707_v48 = vld [vmem:[%s5726_s3 + $0x10] sm:$0xff]  ;;  %v3714_v52 = vld [vmem:[%s5726_s3 + $0x28] sm:$0xff] }
  0x60   : > { %1353 = vmatpush.bf16.msra.mxu3 %v3708_v44  ;;  %v4296_v53 = vld [vmem:[%s4251_s24 + $0x10] sm:$0xff]  ;;  %v3702_v56 = vld [vmem:[%s5725_s2 + $0x8] sm:$0xff]  ;;  %v3709_v59 = vld [vmem:[%s5725_s2 + $0x20] sm:$0xff]  ;;  %v755_v61 = vsel %vm752_vm0, %v753_v54, %v754_v55 }
  0x61   : > { %959 = vmatpush.bf16.msra.mxu0 %v3711_v45  ;;  %v3706_v57 = vld [vmem:[%s5726_s3 + $0x8] sm:$0xff]  ;;  %v756_v58 = vrot.slane %v4296_v53, 1  ;;  %v3713_v60 = vld [vmem:[%s5726_s3 + $0x20] sm:$0xff]  ;;  %v3728_v1 = vld [vmem:[%s5725_s2 + $0x78] sm:$0xff] }
  0x62   : > { %1080 = vmatpush.bf16.msra.mxu1 %v3715_v46  ;;  %v3701_v63 = vld [vmem:[%s5725_s2] sm:$0xff]  ;;  %v3732_v2 = vld [vmem:[%s5726_s3 + $0x78] sm:$0xff]  ;;  %v4359_v16 = vld [vmem:[%s4251_s24 + $0x28] sm:$0xff] }
  0x63   : > { %1241 = vmatpush.bf16.msra.mxu2 %v3703_v47  ;;  %v757_v62 = vsel %vm752_vm0, %v754_v55, %v756_v58  ;;  %v3705_v0 = vld [vmem:[%s5726_s3] sm:$0xff]  ;;  %v3720_v5 = vld [vmem:[%s5725_s2 + $0x58] sm:$0xff]  ;;  %v4362_v17 = vld [vmem:[%s4251_s24 + $0x30] sm:$0xff]  ;;  %v763_v19 = vrot.slane %v4359_v16, 1 }
  0x64   : > { %1354 = vmatpush.bf16.msra.mxu3 %v3707_v48  ;;  %v857_v3 = vpack.c.bf16 %v757_v62, %v755_v61  ;;  %v3724_v6 = vld [vmem:[%s5726_s3 + $0x58] sm:$0xff]  ;;  %v4343_v8 = vld [vmem:[%s4253_s25] sm:$0xff]  ;;  %v765_v20 = vrot.slane %v4362_v17, 1  ;;  %v3727_v25 = vld [vmem:[%s5725_s2 + $0x70] sm:$0xff] }
  0x65   : > { %960 = vmatpush.bf16.msra.mxu0 %v3710_v51  ;;  %v4340_v7 = vld [vmem:[%s4251_s24 + $0x18] sm:$0xff]  ;;  %v760_v10 = vrot.slane %v4343_v8, 1  ;;  %v4356_v15 = vld [vmem:[%s4251_s24 + $0x20] sm:$0xff]  ;;  %v3731_v26 = vld [vmem:[%s5726_s3 + $0x70] sm:$0xff] }
  0x66   : > { %1081 = vmatpush.bf16.msra.mxu1 %v3714_v52  ;;  %v758_v9 = vrot.slane %v4340_v7, 1  ;;  %v681_v14 = vpack.c.bf16 %v4340_v7, %v4296_v53  ;;  %v762_v18 = vrot.slane %v4356_v15, 1  ;;  %v766_v22 = vsel %vm752_vm0, %v763_v19, %v765_v20  ;;  %v3719_v27 = vld [vmem:[%s5725_s2 + $0x50] sm:$0xff]  ;;  %v4385_v28 = vld [vmem:[%s4251_s24 + $0x38] sm:$0xff]  ;;  %v4388_v29 = vld [vmem:[%s4253_s25 + $0x8] sm:$0xff] }
  0x67   : > { %1242 = vmatpush.bf16.msra.mxu2 %v3702_v56  ;;  %v682_v24 = vpack.c.bf16 %v4359_v16, %v4356_v15  ;;  %v3723_v30 = vld [vmem:[%s5726_s3 + $0x50] sm:$0xff]  ;;  %v767_v31 = vrot.slane %v4385_v28, 1  ;;  %v769_v32 = vrot.slane %v4388_v29, 1  ;;  %v683_v36 = vpack.c.bf16 %v4385_v28, %v4362_v17  ;;  %v4404_v37 = vld [vmem:[%s4251_s24 + $0x40] sm:$0xff]  ;;  %v4407_v38 = vld [vmem:[%s4251_s24 + $0x48] sm:$0xff] }
  0x68   : > { %1355 = vmatpush.bf16.msra.mxu3 %v3706_v57  ;;  %v759_v11 = vsel %vm752_vm0, %v756_v58, %v758_v9  ;;  %v761_v12 = vsel %vm752_vm0, %v758_v9, %v760_v10  ;;  %v764_v21 = vsel %vm752_vm0, %v762_v18, %v763_v19  ;;  %v4410_v39 = vld [vmem:[%s4251_s24 + $0x50] sm:$0xff]  ;;  %v771_v40 = vrot.slane %v4404_v37, 1  ;;  %v4424_v47 = vld [vmem:[%s4251_s24 + $0x58] sm:$0xff]  ;;  %v4440_v58 = vld [vmem:[%s4251_s24 + $0x60] sm:$0xff] }
  0x69   : > { %961 = vmatpush.bf16.msra.mxu0 %v3709_v59  ;;  %v858_v13 = vpack.c.bf16 %v761_v12, %v759_v11  ;;  %v859_v23 = vpack.c.bf16 %v766_v22, %v764_v21  ;;  %v768_v33 = vsel %vm752_vm0, %v765_v20, %v767_v31  ;;  %v770_v34 = vsel %vm752_vm0, %v767_v31, %v769_v32  ;;  %v4427_v48 = vld [vmem:[%s4253_s25 + $0x10] sm:$0xff]  ;;  %v4443_v59 = vld [vmem:[%s4251_s24 + $0x68] sm:$0xff]  ;;  %v4469_v9 = vld [vmem:[%s4253_s25 + $0x18] sm:$0xff] }
  0x6a   : > { %1082 = vmatpush.bf16.msra.mxu1 %v3713_v60  ;;  %v860_v35 = vpack.c.bf16 %v770_v34, %v768_v33  ;;  %v772_v41 = vrot.slane %v4407_v38, 1  ;;  %v774_v42 = vrot.slane %v4410_v39, 1  ;;  %v684_v46 = vpack.c.bf16 %v4407_v38, %v4404_v37  ;;  %v4446_v60 = vld [vmem:[%s4251_s24 + $0x70] sm:$0xff]  ;;  %v3718_v12 = vld [vmem:[%s5725_s2 + $0x48] sm:$0xff]  ;;  %v4488_v21 = vld [vmem:[%s4251_s24 + $0x80] sm:$0xff] }
  0x6b   : > { %1243 = vmatpush.bf16.msra.mxu2 %v3701_v63  ;;  %v776_v51 = vrot.slane %v4424_v47, 1  ;;  %v778_v52 = vrot.slane %v4427_v48, 1  ;;  %v685_v57 = vpack.c.bf16 %v4424_v47, %v4410_v39  ;;  %v780_v61 = vrot.slane %v4440_v58, 1  ;;  %v4491_v22 = vld [vmem:[%s4251_s24 + $0x88] sm:$0xff] }
  0x6c   : > { %1356 = vmatpush.bf16.msra.mxu3 %v3705_v0  ;;  %3449 = vmatmul.msk.bf16.vlgmr.msra.gmra.mxu0 %vm905_vm1, %v857_v3  ;;  %v773_v43 = vsel %vm752_vm0, %v771_v40, %v772_v41  ;;  %v775_v44 = vsel %vm752_vm0, %v772_v41, %v774_v42  ;;  %v781_v62 = vrot.slane %v4443_v59, 1  ;;  %v783_v63 = vrot.slane %v4446_v60, 1 }
  0x6d   : > { %3481 = vmatmul.msk.bf16.vlgmr.msra.gmra.mxu1 %vm905_vm1, %v857_v3  ;;  %1643 = vmatpush.bf16.msrb.mxu0 %v3720_v5  ;;  %v861_v45 = vpack.c.bf16 %v775_v44, %v773_v43  ;;  %v777_v54 = vsel %vm752_vm0, %v774_v42, %v776_v51  ;;  %v779_v55 = vsel %vm752_vm0, %v776_v51, %v778_v52  ;;  %v3730_v5 = vld [vmem:[%s5726_s3 + $0x68] sm:$0xff]  ;;  %v787_v11 = vrot.slane %v4469_v9, 1 }
  0x6e   : > { %3513 = vmatmul.msk.bf16.vlgmr.msra.gmra.mxu2 %vm905_vm1, %v680_v4  ;;  %1764 = vmatpush.bf16.msrb.mxu1 %v3724_v6  ;;  %v862_v56 = vpack.c.bf16 %v779_v55, %v777_v54  ;;  %v782_v0 = vsel %vm752_vm0, %v780_v61, %v781_v62  ;;  %v686_v3 = vpack.c.bf16 %v4443_v59, %v4440_v58  ;;  %v4466_v6 = vld [vmem:[%s4251_s24 + $0x78] sm:$0xff] }
  0x6f   : > { %2118 = vmatpush.bf16.msrb.mxu2 %v3728_v1  ;;  %3545 = vmatmul.msk.bf16.vlgmr.msra.gmra.mxu3 %vm905_vm1, %v680_v4  ;;  %v784_v1 = vsel %vm752_vm0, %v781_v62, %v783_v63  ;;  %v3726_v4 = vld [vmem:[%s5725_s2 + $0x68] sm:$0xff]  ;;  %v785_v10 = vrot.slane %v4466_v6, 1  ;;  %v687_v20 = vpack.c.bf16 %v4466_v6, %v4446_v60  ;;  %v688_v34 = vpack.c.bf16 %v4491_v22, %v4488_v21 }
  0x70   : > { %2239 = vmatpush.bf16.msrb.mxu3 %v3732_v2  ;;  %v863_v2 = vpack.c.bf16 %v784_v1, %v782_v0 }
  0x71   : > { %1644 = vmatpush.bf16.msrb.mxu0 %v3719_v27  ;;  %v788_v18 = vsel %vm752_vm0, %v785_v10, %v787_v11 }
  0x72   : > { %1765 = vmatpush.bf16.msrb.mxu1 %v3723_v30 }
  0x73   : > { %2119 = vmatpush.bf16.msrb.mxu2 %v3727_v25  ;;  %v790_v25 = vrot.slane %v4491_v22, 1 }
  0x74   : > { %2240 = vmatpush.bf16.msrb.mxu3 %v3731_v26 }
  0x75   : > { %1645 = vmatpush.bf16.msrb.mxu0 %v3718_v12 }
  0x77   : > { %2120 = vmatpush.bf16.msrb.mxu2 %v3726_v4  ;;  %v4538_v4 = vld [vmem:[%s4251_s24 + $0xb0] sm:$0xff] }
  0x78   : > { %2241 = vmatpush.bf16.msrb.mxu3 %v3730_v5 }
  0x7c   : > { %3450 = vmatmul.msk.bf16.gmra.mxu0 %vm905_vm1, %v858_v13 }
  0x7d   : > { %3482 = vmatmul.msk.bf16.gmra.mxu1 %vm905_vm1, %v858_v13  ;;  %v3722_v13 = vld [vmem:[%s5726_s3 + $0x48] sm:$0xff] }
  0x7e   : > { %3514 = vmatmul.msk.bf16.gmra.mxu2 %vm905_vm1, %v681_v14  ;;  %1766 = vmatpush.bf16.msrb.mxu1 %v3722_v13 }
  0x7f   : > { %3546 = vmatmul.msk.bf16.gmra.mxu3 %vm905_vm1, %v681_v14  ;;  %v786_v14 = vsel %vm752_vm0, %v783_v63, %v785_v10 }
  0x80   : > { %v864_v19 = vpack.c.bf16 %v788_v18, %v786_v14 }
  0x8c   : > { %3451 = vmatmul.msk.bf16.gmra.mxu0 %vm905_vm1, %v859_v23 }
  0x8d   : > { %3483 = vmatmul.msk.bf16.gmra.mxu1 %vm905_vm1, %v859_v23  ;;  %v4494_v23 = vld [vmem:[%s4251_s24 + $0x90] sm:$0xff] }
  0x8e   : > { %3515 = vmatmul.msk.bf16.gmra.mxu2 %vm905_vm1, %v682_v24  ;;  %v792_v26 = vrot.slane %v4494_v23, 1 }
  0x8f   : > { %3547 = vmatmul.msk.bf16.gmra.mxu3 %vm905_vm1, %v682_v24  ;;  %v789_v24 = vrot.slane %v4488_v21, 1 }
  0x90   : > { %v793_v30 = vsel %vm752_vm0, %v790_v25, %v792_v26 }
  0x91   : > { %v791_v27 = vsel %vm752_vm0, %v789_v24, %v790_v25 }
  0x92   : > { %v865_v31 = vpack.c.bf16 %v793_v30, %v791_v27 }
  0x9c   : > { %3452 = vmatmul.msk.bf16.gmra.mxu0 %vm905_vm1, %v860_v35 }
  0x9d   : > { %3484 = vmatmul.msk.bf16.gmra.mxu1 %vm905_vm1, %v860_v35  ;;  %v4508_v35 = vld [vmem:[%s4251_s24 + $0x98] sm:$0xff] }
  0x9e   : > { %3516 = vmatmul.msk.bf16.gmra.mxu2 %vm905_vm1, %v683_v36  ;;  %v689_v1 = vpack.c.bf16 %v4508_v35, %v4494_v23 }
  0x9f   : > { %3548 = vmatmul.msk.bf16.gmra.mxu3 %vm905_vm1, %v683_v36  ;;  %v4511_v36 = vld [vmem:[%s4253_s25 + $0x20] sm:$0xff] }
  0xa0   : > { %v796_v51 = vrot.slane %v4511_v36, 1 }
  0xac   : > { %3453 = vmatmul.msk.bf16.gmra.mxu0 %vm905_vm1, %v861_v45 }
  0xad   : > { %3485 = vmatmul.msk.bf16.gmra.mxu1 %vm905_vm1, %v861_v45 }
  0xae   : > { %3517 = vmatmul.msk.bf16.gmra.mxu2 %vm905_vm1, %v684_v46 }
  0xaf   : > { %3549 = vmatmul.msk.bf16.gmra.mxu3 %vm905_vm1, %v684_v46  ;;  %v794_v46 = vrot.slane %v4508_v35, 1 }
  0xb1   : > { %v795_v52 = vsel %vm752_vm0, %v792_v26, %v794_v46  ;;  %v797_v54 = vsel %vm752_vm0, %v794_v46, %v796_v51  ;;  %v4569_v46 = vld [vmem:[%s4253_s25 + $0x28] sm:$0xff] }
  0xbc   : > { %3454 = vmatmul.msk.bf16.gmra.mxu0 %vm905_vm1, %v862_v56 }
  0xbd   : > { %3486 = vmatmul.msk.bf16.gmra.mxu1 %vm905_vm1, %v862_v56 }
  0xbe   : > { %3518 = vmatmul.msk.bf16.gmra.mxu2 %vm905_vm1, %v685_v57 }
  0xbf   : > { %3550 = vmatmul.msk.bf16.gmra.mxu3 %vm905_vm1, %v685_v57  ;;  %v866_v57 = vpack.c.bf16 %v797_v54, %v795_v52 }
  0xcc   : > { %3455 = vmatmul.msk.bf16.gmra.mxu0 %vm905_vm1, %v863_v2 }
  0xcd   : > { %3487 = vmatmul.msk.bf16.gmra.mxu1 %vm905_vm1, %v863_v2  ;;  %v4532_v2 = vld [vmem:[%s4251_s24 + $0xa0] sm:$0xff] }
  0xce   : > { %3519 = vmatmul.msk.bf16.gmra.mxu2 %vm905_vm1, %v686_v3  ;;  %v798_v11 = vrot.slane %v4532_v2, 1 }
  0xcf   : > { %3551 = vmatmul.msk.bf16.gmra.mxu3 %vm905_vm1, %v686_v3  ;;  %v4535_v3 = vld [vmem:[%s4251_s24 + $0xa8] sm:$0xff] }
  0xdc   : > { %3456 = vmatmul.msk.bf16.gmra.mxu0 %vm905_vm1, %v864_v19 }
  0xdd   : > { %3488 = vmatmul.msk.bf16.gmra.mxu1 %vm905_vm1, %v864_v19  ;;  %v799_v19 = vrot.slane %v4535_v3, 1 }
  0xde   : > { %3520 = vmatmul.msk.bf16.gmra.mxu2 %vm905_vm1, %v687_v20 }
  0xdf   : > { %3552 = vmatmul.msk.bf16.gmra.mxu3 %vm905_vm1, %v687_v20  ;;  %v801_v20 = vrot.slane %v4538_v4, 1  ;;  %v800_v24 = vsel %vm752_vm0, %v798_v11, %v799_v19 }
  0xe1   : > { %v802_v25 = vsel %vm752_vm0, %v799_v19, %v801_v20 }
  0xe2   : > { %v867_v30 = vpack.c.bf16 %v802_v25, %v800_v24 }
  0xe9   : > { %v963_v32 = vpop.f32.mrf.mxu0 }
  0xea   : > { %v1084_v33 = vpop.f32.mrf.mxu1 }
  0xec   : > { %3457 = vmatmul.msk.bf16.gmra.mxu0 %vm905_vm1, %v865_v31 }
  0xed   : > { %3489 = vmatmul.msk.bf16.gmra.mxu1 %vm905_vm1, %v865_v31 }
  0xee   : > { %3521 = vmatmul.msk.bf16.gmra.mxu2 %vm905_vm1, %v688_v34 }
  0xef   : > { %3553 = vmatmul.msk.bf16.gmra.mxu3 %vm905_vm1, %v688_v34 }
  0xf1   : > { %v1245_v40 = vpop.f32.mrf.mxu2  ;;  %v965_v44 = vpop.f32.mrf.mxu0 }
  0xf2   : > { %v1358_v41 = vpop.f32.mrf.mxu3  ;;  %v4513_v42 = vadd.f32 %v1245_v40, %v963_v32  ;;  %v1086_v45 = vpop.f32.mrf.mxu1  ;;  %v690_v40 = vpack.c.bf16 %v4535_v3, %v4532_v2 }
  0xf3   : > { %v4515_v43 = vadd.f32 %v1358_v41, %v1084_v33  ;;  %v3725_v41 = vld [vmem:[%s5725_s2 + $0x60] sm:$0xff] }
  0xf4   : > { %2121 = vmatpush.bf16.msrb.mxu2 %v3725_v41 }
  0xf9   : > { %v1247_v55 = vpop.f32.mrf.mxu2  ;;  %v968_v63 = vpop.f32.mrf.mxu0 }
  0xfa   : > { %v1360_v56 = vpop.f32.mrf.mxu3  ;;  %v4521_v61 = vadd.f32 %v1247_v55, %v965_v44  ;;  %v1089_v0 = vpop.f32.mrf.mxu1  ;;  %v3729_v44 = vld [vmem:[%s5726_s3 + $0x60] sm:$0xff] }
  0xfb   : > { %v4523_v62 = vadd.f32 %v1360_v56, %v1086_v45  ;;  %v4566_v45 = vld [vmem:[%s4251_s24 + $0xb8] sm:$0xff]  ;;  %2242 = vmatpush.bf16.msrb.mxu3 %v3729_v44 }
  0xfc   : > { %3458 = vmatmul.msk.bf16.gmra.mxu0 %vm905_vm1, %v866_v57 }
  0xfd   : > { %3490 = vmatmul.msk.bf16.gmra.mxu1 %vm905_vm1, %v866_v57 }
  0xfe   : > { %3522 = vmatmul.msk.bf16.gmra.mxu2 %vm905_vm1, %v689_v1 }
  0xff   : > { %3554 = vmatmul.msk.bf16.gmra.mxu3 %vm905_vm1, %v689_v1  ;;  %v3717_v1 = vld [vmem:[%s5725_s2 + $0x40] sm:$0xff] }
 0x100   : > { %1646 = vmatpush.bf16.msrb.mxu0 %v3717_v1 }
 0x101   : > { %v1250_v5 = vpop.f32.mrf.mxu2  ;;  %v970_v14 = vpop.f32.mrf.mxu0 }
 0x102   : > { %v1363_v10 = vpop.f32.mrf.mxu3  ;;  %v4541_v12 = vadd.f32 %v1250_v5, %v968_v63  ;;  %v1091_v18 = vpop.f32.mrf.mxu1  ;;  %v803_v63 = vrot.slane %v4566_v45, 1  ;;  %v3721_v5 = vld [vmem:[%s5726_s3 + $0x40] sm:$0xff] }
 0x103   : > { %v4543_v13 = vadd.f32 %v1363_v10, %v1089_v0  ;;  %v805_v0 = vrot.slane %v4569_v46, 1  ;;  %1767 = vmatpush.bf16.msrb.mxu1 %v3721_v5 }
 0x104   : > { %v804_v10 = vsel %vm752_vm0, %v801_v20, %v803_v63  ;;  %v4596_v20 = vld [vmem:[%s4251_s24 + $0xc0] sm:$0xff] }
 0x105   : > { %v806_v11 = vsel %vm752_vm0, %v803_v63, %v805_v0  ;;  %5761 = vst [vmem:[#allocation4_spill] sm:$0xff] %v4596_v20  ;;  %v807_v44 = vrot.slane %v4596_v20, 1 }
 0x106   : > { %v868_v19 = vpack.c.bf16 %v806_v11, %v804_v10 }
 0x109   : > { %v1252_v26 = vpop.f32.mrf.mxu2  ;;  %v973_v33 = vpop.f32.mrf.mxu0 }
 0x10a   : > { %v1365_v27 = vpop.f32.mrf.mxu3  ;;  %v4549_v31 = vadd.f32 %v1252_v26, %v970_v14  ;;  %v1094_v34 = vpop.f32.mrf.mxu1 }
 0x10b   : > { %v4551_v32 = vadd.f32 %v1365_v27, %v1091_v18 }
 0x10c   : > { %3459 = vmatmul.msk.bf16.gmra.mxu0 %vm905_vm1, %v867_v30 }
 0x10d   : > { %3491 = vmatmul.msk.bf16.gmra.mxu1 %vm905_vm1, %v867_v30  ;;  %v691_v30 = vpack.c.bf16 %v4566_v45, %v4538_v4 }
 0x10e   : > { %3523 = vmatmul.msk.bf16.gmra.mxu2 %vm905_vm1, %v690_v40 }
 0x10f   : > { %3555 = vmatmul.msk.bf16.gmra.mxu3 %vm905_vm1, %v690_v40 }
 0x111   : > { %v1255_v51 = vpop.f32.mrf.mxu2  ;;  %v975_v56 = vpop.f32.mrf.mxu0 }
 0x112   : > { %v1368_v52 = vpop.f32.mrf.mxu3  ;;  %v4571_v54 = vadd.f32 %v1255_v51, %v973_v33  ;;  %v1096_v57 = vpop.f32.mrf.mxu1  ;;  %v4599_v33 = vld [vmem:[%s4251_s24 + $0xc8] sm:$0xff] }
 0x113   : > { %v4573_v55 = vadd.f32 %v1368_v52, %v1094_v34  ;;  %5762 = vst [vmem:[#allocation5_spill] sm:$0xff] %v4599_v33  ;;  %v4602_v34 = vld [vmem:[%s4251_s24 + $0xd0] sm:$0xff]  ;;  %v808_v63 = vrot.slane %v4599_v33, 1 }
 0x114   : > { %5763 = vst [vmem:[#allocation6_spill] sm:$0xff] %v4602_v34  ;;  %v810_v0 = vrot.slane %v4602_v34, 1 }
 0x115   : > { %v809_v1 = vsel %vm752_vm0, %v807_v44, %v808_v63 }
 0x116   : > { %v811_v5 = vsel %vm752_vm0, %v808_v63, %v810_v0 }
 0x119   : > { %v1257_v14 = vpop.f32.mrf.mxu2  ;;  %v978_v26 = vpop.f32.mrf.mxu0 }
 0x11a   : > { %v1370_v18 = vpop.f32.mrf.mxu3  ;;  %v4585_v24 = vadd.f32 %v1257_v14, %v975_v56  ;;  %v1099_v27 = vpop.f32.mrf.mxu1  ;;  %v869_v14 = vpack.c.bf16 %v811_v5, %v809_v1 }
 0x11b   : > { %v4587_v25 = vadd.f32 %v1370_v18, %v1096_v57 }
 0x11c   : > { %3460 = vmatmul.msk.bf16.gmra.mxu0 %vm905_vm1, %v868_v19 }
 0x11d   : > { %3492 = vmatmul.msk.bf16.gmra.mxu1 %vm905_vm1, %v868_v19 }
 0x11e   : > { %3524 = vmatmul.msk.bf16.gmra.mxu2 %vm905_vm1, %v691_v30 }
 0x11f   : > { %3556 = vmatmul.msk.bf16.gmra.mxu3 %vm905_vm1, %v691_v30  ;;  %v692_v30 = vpack.c.bf16 %v4599_v33, %v4596_v20 }
 0x121   : > { %v1260_v40 = vpop.f32.mrf.mxu2  ;;  %v980_v56 = vpop.f32.mrf.mxu0 }
 0x122   : > { %v1373_v41 = vpop.f32.mrf.mxu3  ;;  %v4605_v51 = vadd.f32 %v1260_v40, %v978_v26  ;;  %v1101_v57 = vpop.f32.mrf.mxu1  ;;  %v4624_v40 = vld [vmem:[%s4251_s24 + $0xd8] sm:$0xff] }
 0x123   : > { %v4607_v52 = vadd.f32 %v1373_v41, %v1099_v27  ;;  %5767 = vst [vmem:[#allocation10_spill] sm:$0xff] %v4624_v40  ;;  %v4627_v41 = vld [vmem:[%s4253_s25 + $0x30] sm:$0xff] }
 0x124   : > { %5768 = vst [vmem:[#allocation11_spill] sm:$0xff] %v4627_v41 }
 0x125   : > { %5764 = vst [vmem:[#allocation7_spill] sm:$0xff] %v4607_v52 }
 0x129   : > { %v1262_v10 = vpop.f32.mrf.mxu2  ;;  %v983_v26 = vpop.f32.mrf.mxu0 }
 0x12a   : > { %v1375_v11 = vpop.f32.mrf.mxu3  ;;  %v4613_v18 = vadd.f32 %v1262_v10, %v980_v56  ;;  %v1104_v27 = vpop.f32.mrf.mxu1  ;;  %v812_v10 = vrot.slane %v4624_v40, 1 }
 0x12b   : > { %v4615_v19 = vadd.f32 %v1375_v11, %v1101_v57  ;;  %v814_v11 = vrot.slane %v4627_v41, 1 }
 0x12c   : > { %5765 = vst [vmem:[#allocation8_spill] sm:$0xff] %v4613_v18  ;;  %3461 = vmatmul.msk.bf16.gmra.mxu0 %vm905_vm1, %v869_v14 }
 0x12d   : > { %5766 = vst [vmem:[#allocation9_spill] sm:$0xff] %v4615_v19  ;;  %3493 = vmatmul.msk.bf16.gmra.mxu1 %vm905_vm1, %v869_v14  ;;  %v813_v14 = vsel %vm752_vm0, %v810_v0, %v812_v10  ;;  %v4648_v0 = vld [vmem:[%s4251_s24 + $0xe0] sm:$0xff] }
 0x12e   : > { %3525 = vmatmul.msk.bf16.gmra.mxu2 %vm905_vm1, %v692_v30  ;;  %5773 = vst [vmem:[#allocation16_spill] sm:$0xff] %v4648_v0 }
 0x12f   : > { %3557 = vmatmul.msk.bf16.gmra.mxu3 %vm905_vm1, %v692_v30  ;;  %v815_v30 = vsel %vm752_vm0, %v812_v10, %v814_v11  ;;  %v4651_v10 = vld [vmem:[%s4251_s24 + $0xe8] sm:$0xff] }
 0x130   : > { %v870_v33 = vpack.c.bf16 %v815_v30, %v813_v14  ;;  %5774 = vst [vmem:[#allocation17_spill] sm:$0xff] %v4651_v10 }
 0x131   : > { %v1265_v44 = vpop.f32.mrf.mxu2  ;;  %v985_v1 = vpop.f32.mrf.mxu0 }
 0x132   : > { %v1378_v56 = vpop.f32.mrf.mxu3  ;;  %v4629_v57 = vadd.f32 %v1265_v44, %v983_v26  ;;  %v1106_v5 = vpop.f32.mrf.mxu1 }
 0x133   : > { %v4631_v63 = vadd.f32 %v1378_v56, %v1104_v27 }
 0x134   : > { %5769 = vst [vmem:[#allocation12_spill] sm:$0xff] %v4629_v57 }
 0x135   : > { %5770 = vst [vmem:[#allocation13_spill] sm:$0xff] %v4631_v63  ;;  %v693_v63 = vpack.c.bf16 %v4624_v40, %v4602_v34 }
 0x139   : > { %v1267_v19 = vpop.f32.mrf.mxu2  ;;  %v988_v44 = vpop.f32.mrf.mxu0 }
 0x13a   : > { %v1380_v18 = vpop.f32.mrf.mxu3  ;;  %v4637_v26 = vadd.f32 %v1267_v19, %v985_v1  ;;  %v1109_v56 = vpop.f32.mrf.mxu1  ;;  %v4654_v19 = vld [vmem:[%s4251_s24 + $0xf0] sm:$0xff] }
 0x13b   : > { %v4639_v27 = vadd.f32 %v1380_v18, %v1106_v5  ;;  %v816_v5 = vrot.slane %v4648_v0, 1 }
 0x13c   : > { %5771 = vst [vmem:[#allocation14_spill] sm:$0xff] %v4637_v26  ;;  %3462 = vmatmul.msk.bf16.gmra.mxu0 %vm905_vm1, %v870_v33 }
 0x13d   : > { %5772 = vst [vmem:[#allocation15_spill] sm:$0xff] %v4639_v27  ;;  %3494 = vmatmul.msk.bf16.gmra.mxu1 %vm905_vm1, %v870_v33  ;;  %v817_v27 = vrot.slane %v4651_v10, 1 }
 0x13e   : > { %3526 = vmatmul.msk.bf16.gmra.mxu2 %vm905_vm1, %v693_v63 }
 0x13f   : > { %3558 = vmatmul.msk.bf16.gmra.mxu3 %vm905_vm1, %v693_v63  ;;  %v819_v63 = vrot.slane %v4654_v19, 1  ;;  %v818_v26 = vsel %vm752_vm0, %v816_v5, %v817_v27 }
 0x141   : > { %v1270_v18 = vpop.f32.mrf.mxu2  ;;  %v990_v30 = vpop.f32.mrf.mxu0  ;;  %v820_v41 = vsel %vm752_vm0, %v817_v27, %v819_v63  ;;  %v4676_v27 = vld [vmem:[%s4251_s24 + $0xf8] sm:$0xff]  ;;  %s3432_s24 = sshll.u32 %s4001_s19, 5 }
 0x142   : > { %v1383_v1 = vpop.f32.mrf.mxu3  ;;  %v4657_v11 = vadd.f32 %v1270_v18, %v988_v44  ;;  %v1111_v33 = vpop.f32.mrf.mxu1  ;;  %v871_v34 = vpack.c.bf16 %v820_v41, %v818_v26  ;;  %5779 = vst [vmem:[#allocation22_spill] sm:$0xff] %v4676_v27  ;;  %v4679_v41 = vld [vmem:[%s4253_s25 + $0x38] sm:$0xff]  ;;  %s5213_s25 = sadd.s32 32, %s3432_s24 }
 0x143   : > { %v4659_v14 = vadd.f32 %v1383_v1, %v1109_v56  ;;  %v694_v1 = vpack.c.bf16 %v4651_v10, %v4648_v0  ;;  %5780 = vst [vmem:[#allocation23_spill] sm:$0xff] %v4679_v41  ;;  %p3689_p1 = scmp.gt.s32.totalorder %s5213_s25, 65 }
 0x144   : > { %5775 = vst [vmem:[#allocation18_spill] sm:$0xff] %v4657_v11 }
 0x145   : > { %5776 = vst [vmem:[#allocation19_spill] sm:$0xff] %v4659_v14 }
 0x149   : > { %v1272_v40 = vpop.f32.mrf.mxu2  ;;  %v993_v56 = vpop.f32.mrf.mxu0 }
 0x14a   : > { %v1385_v57 = vpop.f32.mrf.mxu3  ;;  %v4665_v20 = vadd.f32 %v1272_v40, %v990_v30  ;;  %v1114_v18 = vpop.f32.mrf.mxu1 }
 0x14b   : > { %v4667_v44 = vadd.f32 %v1385_v57, %v1111_v33 }
 0x14c   : > { %5777 = vst [vmem:[#allocation20_spill] sm:$0xff] %v4665_v20  ;;  %3463 = vmatmul.msk.bf16.gmra.mxu0 %vm905_vm1, %v871_v34 }
 0x14d   : > { %5778 = vst [vmem:[#allocation21_spill] sm:$0xff] %v4667_v44  ;;  %3495 = vmatmul.msk.bf16.gmra.mxu1 %vm905_vm1, %v871_v34  ;;  %v821_v44 = vrot.slane %v4676_v27, 1  ;;  %v823_v34 = vrot.slane %v4679_v41, 1 }
 0x14e   : > { %3527 = vmatmul.msk.bf16.gmra.mxu2 %vm905_vm1, %v694_v1 }
 0x14f   : > { %3559 = vmatmul.msk.bf16.gmra.mxu3 %vm905_vm1, %v694_v1  ;;  %v822_v20 = vsel %vm752_vm0, %v819_v63, %v821_v44  ;;  %v824_v1 = vsel %vm752_vm0, %v821_v44, %v823_v34  ;;  %v1442_v34 = vrot.slane %v4296_v53, 2 }
 0x150   : > { %v872_v14 = vpack.c.bf16 %v824_v1, %v822_v20  ;;  %v1439_v20 = vrot.slane %v4284_v49, 2  ;;  %v1915_v1 = vrot.slane %v4287_v50, 3 }
 0x151   : > { %v1275_v40 = vpop.f32.mrf.mxu2  ;;  %v995_v30 = vpop.f32.mrf.mxu0 }
 0x152   : > { %v1388_v57 = vpop.f32.mrf.mxu3  ;;  %v4681_v26 = vadd.f32 %v1275_v40, %v993_v56  ;;  %v1116_v33 = vpop.f32.mrf.mxu1  ;;  %v695_v40 = vpack.c.bf16 %v4676_v27, %v4654_v19 }
 0x153   : > { %v4683_v5 = vadd.f32 %v1388_v57, %v1114_v18 }
 0x159   : > { %v1277_v10 = vpop.f32.mrf.mxu2  ;;  %v998_v56 = vpop.f32.mrf.mxu0 }
 0x15a   : > { %v1390_v0 = vpop.f32.mrf.mxu3  ;;  %v4689_v11 = vadd.f32 %v1277_v10, %v995_v30  ;;  %v1119_v18 = vpop.f32.mrf.mxu1 }
 0x15b   : > { %v4691_v52 = vadd.f32 %v1390_v0, %v1116_v33  ;;  %v1440_v33 = vrot.slane %v4287_v50, 2 }
 0x15c   : > { %5781 = vst [vmem:[#allocation24_spill] sm:$0xff] %v4689_v11  ;;  %3464 = vmatmul.msk.bf16.gmra.mxu0 %vm905_vm1, %v872_v14 }
 0x15d   : > { %5782 = vst [vmem:[#allocation25_spill] sm:$0xff] %v4691_v52  ;;  %3496 = vmatmul.msk.bf16.gmra.mxu1 %vm905_vm1, %v872_v14  ;;  %v1914_v14 = vrot.slane %v4284_v49, 3  ;;  %v1441_v52 = vsel %vm1438_vm2, %v1439_v20, %v1440_v33 }
 0x15e   : > { %3528 = vmatmul.msk.bf16.gmra.mxu2 %vm905_vm1, %v695_v40 }
 0x15f   : > { %3560 = vmatmul.msk.bf16.gmra.mxu3 %vm905_vm1, %v695_v40  ;;  %v1917_v40 = vrot.slane %v4296_v53, 3 }
 0x161   : > { %v1280_v63 = vpop.f32.mrf.mxu2  ;;  %v1000_v57 = vpop.f32.mrf.mxu0 }
 0x162   : > { %v1393_v44 = vpop.f32.mrf.mxu3  ;;  %v4700_v10 = vadd.f32 %v1280_v63, %v998_v56  ;;  %v1121_v30 = vpop.f32.mrf.mxu1  ;;  %v1443_v56 = vsel %vm1438_vm2, %v1440_v33, %v1442_v34  ;;  %v1918_v63 = vsel %vm1913_vm3, %v1915_v1, %v1917_v40 }
 0x163   : > { %v4702_v0 = vadd.f32 %v1393_v44, %v1119_v18  ;;  %v1916_v18 = vsel %vm1913_vm3, %v1914_v14, %v1915_v1  ;;  %v1446_v14 = vrot.slane %v4343_v8, 2  ;;  %v1919_v1 = vrot.slane %v4340_v7, 3 }
 0x164   : > { %5783 = vst [vmem:[#allocation26_spill] sm:$0xff] %v4700_v10  ;;  %v1543_v10 = vpack.c.bf16 %v1443_v56, %v1441_v52  ;;  %v2018_v27 = vpack.c.bf16 %v1918_v63, %v1916_v18 }
 0x165   : > { %5784 = vst [vmem:[#allocation27_spill] sm:$0xff] %v4702_v0  ;;  %v1920_v18 = vsel %vm1913_vm3, %v1917_v40, %v1919_v1  ;;  %v1448_v40 = vrot.slane %v4356_v15, 2 }
 0x169   : > { %v1282_v44 = vpop.f32.mrf.mxu2  ;;  %v1003_v49 = vpop.f32.mrf.mxu0 }
 0x16a   : > { %v1395_v0 = vpop.f32.mrf.mxu3  ;;  %v4713_v11 = vadd.f32 %v1282_v44, %v1000_v57  ;;  %v1124_v50 = vpop.f32.mrf.mxu1 }
 0x16b   : > { %v4715_v41 = vadd.f32 %v1395_v0, %v1121_v30  ;;  %v1444_v30 = vrot.slane %v4340_v7, 2 }
 0x16c   : > { %3577 = vmatmul.msk.bf16.vlgmr.msrb.gmra.mxu0 %vm905_vm1, %v1543_v10 }
 0x16d   : > { %3609 = vmatmul.msk.bf16.vlgmr.msrb.gmra.mxu1 %vm905_vm1, %v1543_v10  ;;  %v1921_v10 = vrot.slane %v4343_v8, 3  ;;  %v1445_v56 = vsel %vm1438_vm2, %v1442_v34, %v1444_v30 }
 0x16e   : > { %3641 = vmatmul.msk.bf16.vlgmr.msrb.gmra.mxu2 %vm905_vm1, %v2018_v27 }
 0x16f   : > { %3673 = vmatmul.msk.bf16.vlgmr.msrb.gmra.mxu3 %vm905_vm1, %v2018_v27  ;;  %v1447_v27 = vsel %vm1438_vm2, %v1444_v30, %v1446_v14  ;;  %v1922_v63 = vsel %vm1913_vm3, %v1919_v1, %v1921_v10  ;;  %v1449_v1 = vrot.slane %v4359_v16, 2  ;;  %v1451_v10 = vrot.slane %v4362_v17, 2 }
 0x170   : > { %v2019_v7 = vpack.c.bf16 %v1922_v63, %v1920_v18  ;;  %v1926_v18 = vrot.slane %v4362_v17, 3 }
 0x171   : > { %v1285_v53 = vpop.f32.mrf.mxu2  ;;  %v1005_v57 = vpop.f32.mrf.mxu0  ;;  %v1450_v63 = vsel %vm1438_vm2, %v1448_v40, %v1449_v1 }
 0x172   : > { %v1398_v20 = vpop.f32.mrf.mxu3  ;;  %v4721_v33 = vadd.f32 %v1285_v53, %v1003_v49  ;;  %v1126_v0 = vpop.f32.mrf.mxu1 }
 0x173   : > { %v4723_v52 = vadd.f32 %v1398_v20, %v1124_v50  ;;  %v1544_v50 = vpack.c.bf16 %v1447_v27, %v1445_v56  ;;  %v1923_v56 = vrot.slane %v4356_v15, 3  ;;  %v1924_v27 = vrot.slane %v4359_v16, 3 }
 0x174   : > { %5785 = vst [vmem:[#allocation28_spill] sm:$0xff] %v4721_v33 }
 0x175   : > { %5786 = vst [vmem:[#allocation29_spill] sm:$0xff] %v4723_v52 }
 0x179   : > { %v1287_v44 = vpop.f32.mrf.mxu2  ;;  %v1008_v52 = vpop.f32.mrf.mxu0 }
 0x17a   : > { %v1400_v49 = vpop.f32.mrf.mxu3  ;;  %v4733_v53 = vadd.f32 %v1287_v44, %v1005_v57  ;;  %v1129_v33 = vpop.f32.mrf.mxu1  ;;  %v1452_v44 = vsel %vm1438_vm2, %v1449_v1, %v1451_v10 }
 0x17b   : > { %v4735_v20 = vadd.f32 %v1400_v49, %v1126_v0 }
 0x17c   : > { %3578 = vmatmul.msk.bf16.gmra.mxu0 %vm905_vm1, %v1544_v50 }
 0x17d   : > { %3610 = vmatmul.msk.bf16.gmra.mxu1 %vm905_vm1, %v1544_v50 }
 0x17e   : > { %3642 = vmatmul.msk.bf16.gmra.mxu2 %vm905_vm1, %v2019_v7 }
 0x17f   : > { %3674 = vmatmul.msk.bf16.gmra.mxu3 %vm905_vm1, %v2019_v7  ;;  %v1545_v7 = vpack.c.bf16 %v1452_v44, %v1450_v63  ;;  %v1455_v63 = vrot.slane %v4388_v29, 2  ;;  %v1928_v44 = vrot.slane %v4385_v28, 3 }
 0x181   : > { %v1290_v8 = vpop.f32.mrf.mxu2  ;;  %v1010_v0 = vpop.f32.mrf.mxu0 }
 0x182   : > { %v1403_v34 = vpop.f32.mrf.mxu3  ;;  %v4742_v30 = vadd.f32 %v1290_v8, %v1008_v52  ;;  %v1131_v14 = vpop.f32.mrf.mxu1  ;;  %v1925_v52 = vsel %vm1913_vm3, %v1923_v56, %v1924_v27 }
 0x183   : > { %v4744_v57 = vadd.f32 %v1403_v34, %v1129_v33  ;;  %v1927_v33 = vsel %vm1913_vm3, %v1924_v27, %v1926_v18  ;;  %v1453_v27 = vrot.slane %v4385_v28, 2 }
 0x184   : > { %v2020_v16 = vpack.c.bf16 %v1927_v33, %v1925_v52  ;;  %v1930_v52 = vrot.slane %v4388_v29, 3 }
 0x185   : > { %5787 = vst [vmem:[#allocation30_spill] sm:$0xff] %v4744_v57  ;;  %v1454_v33 = vsel %vm1438_vm2, %v1451_v10, %v1453_v27 }
 0x189   : > { %v1292_v49 = vpop.f32.mrf.mxu2  ;;  %v1013_v15 = vpop.f32.mrf.mxu0 }
 0x18a   : > { %v1405_v50 = vpop.f32.mrf.mxu3  ;;  %v4755_v8 = vadd.f32 %v1292_v49, %v1010_v0  ;;  %v1134_v57 = vpop.f32.mrf.mxu1  ;;  %v1456_v49 = vsel %vm1438_vm2, %v1453_v27, %v1455_v63 }
 0x18b   : > { %v4757_v34 = vadd.f32 %v1405_v50, %v1131_v14  ;;  %v1929_v50 = vsel %vm1913_vm3, %v1926_v18, %v1928_v44  ;;  %v1457_v18 = vrot.slane %v4404_v37, 2 }
 0x18c   : > { %3579 = vmatmul.msk.bf16.gmra.mxu0 %vm905_vm1, %v1545_v7 }
 0x18d   : > { %3611 = vmatmul.msk.bf16.gmra.mxu1 %vm905_vm1, %v1545_v7  ;;  %v1931_v7 = vsel %vm1913_vm3, %v1928_v44, %v1930_v52  ;;  %v1458_v44 = vrot.slane %v4407_v38, 2  ;;  %v1460_v52 = vrot.slane %v4410_v39, 2 }
 0x18e   : > { %3643 = vmatmul.msk.bf16.gmra.mxu2 %vm905_vm1, %v2020_v16  ;;  %v2021_v28 = vpack.c.bf16 %v1931_v7, %v1929_v50  ;;  %v1935_v50 = vrot.slane %v4410_v39, 3 }
 0x18f   : > { %3675 = vmatmul.msk.bf16.gmra.mxu3 %vm905_vm1, %v2020_v16  ;;  %v1546_v16 = vpack.c.bf16 %v1456_v49, %v1454_v33  ;;  %v1932_v33 = vrot.slane %v4404_v37, 3  ;;  %v1933_v49 = vrot.slane %v4407_v38, 3  ;;  %v1459_v7 = vsel %vm1438_vm2, %v1457_v18, %v1458_v44 }
 0x191   : > { %v1295_v17 = vpop.f32.mrf.mxu2  ;;  %v1015_v0 = vpop.f32.mrf.mxu0 }
 0x192   : > { %v1408_v40 = vpop.f32.mrf.mxu3  ;;  %v4763_v1 = vadd.f32 %v1295_v17, %v1013_v15  ;;  %v1136_v14 = vpop.f32.mrf.mxu1 }
 0x193   : > { %v4765_v56 = vadd.f32 %v1408_v40, %v1134_v57 }
 0x194   : > { %5788 = vst [vmem:[#allocation31_spill] sm:$0xff] %v4763_v1 }
 0x195   : > { %5789 = vst [vmem:[#allocation32_spill] sm:$0xff] %v4765_v56 }
 0x199   : > { %v1297_v57 = vpop.f32.mrf.mxu2  ;;  %v1018_v56 = vpop.f32.mrf.mxu0 }
 0x19a   : > { %v1410_v15 = vpop.f32.mrf.mxu3  ;;  %v4775_v17 = vadd.f32 %v1297_v57, %v1015_v0  ;;  %v1139_v1 = vpop.f32.mrf.mxu1  ;;  %v1461_v57 = vsel %vm1438_vm2, %v1458_v44, %v1460_v52 }
 0x19b   : > { %v4777_v40 = vadd.f32 %v1410_v15, %v1136_v14 }
 0x19c   : > { %3580 = vmatmul.msk.bf16.gmra.mxu0 %vm905_vm1, %v1546_v16 }
 0x19d   : > { %3612 = vmatmul.msk.bf16.gmra.mxu1 %vm905_vm1, %v1546_v16 }
 0x19e   : > { %3644 = vmatmul.msk.bf16.gmra.mxu2 %vm905_vm1, %v2021_v28 }
 0x19f   : > { %3676 = vmatmul.msk.bf16.gmra.mxu3 %vm905_vm1, %v2021_v28  ;;  %v1547_v28 = vpack.c.bf16 %v1461_v57, %v1459_v7  ;;  %v1464_v7 = vrot.slane %v4427_v48, 2  ;;  %v1937_v57 = vrot.slane %v4424_v47, 3 }
 0x1a1   : > { %v1300_v29 = vpop.f32.mrf.mxu2  ;;  %v1020_v14 = vpop.f32.mrf.mxu0 }
 0x1a2   : > { %v1413_v10 = vpop.f32.mrf.mxu3  ;;  %v4784_v27 = vadd.f32 %v1300_v29, %v1018_v56  ;;  %v1141_v63 = vpop.f32.mrf.mxu1  ;;  %v1934_v56 = vsel %vm1913_vm3, %v1932_v33, %v1933_v49 }
 0x1a3   : > { %v4786_v0 = vadd.f32 %v1413_v10, %v1139_v1  ;;  %v1936_v1 = vsel %vm1913_vm3, %v1933_v49, %v1935_v50  ;;  %v1462_v49 = vrot.slane %v4424_v47, 2 }
 0x1a4   : > { %v2022_v38 = vpack.c.bf16 %v1936_v1, %v1934_v56  ;;  %v1939_v56 = vrot.slane %v4427_v48, 3 }
 0x1a5   : > { %5790 = vst [vmem:[#allocation33_spill] sm:$0xff] %v4786_v0  ;;  %v1463_v1 = vsel %vm1438_vm2, %v1460_v52, %v1462_v49 }
 0x1a9   : > { %v1302_v15 = vpop.f32.mrf.mxu2  ;;  %v1023_v37 = vpop.f32.mrf.mxu0 }
 0x1aa   : > { %v1415_v16 = vpop.f32.mrf.mxu3  ;;  %v4797_v29 = vadd.f32 %v1302_v15, %v1020_v14  ;;  %v1144_v0 = vpop.f32.mrf.mxu1  ;;  %v1465_v15 = vsel %vm1438_vm2, %v1462_v49, %v1464_v7 }
 0x1ab   : > { %v4799_v10 = vadd.f32 %v1415_v16, %v1141_v63  ;;  %v1938_v16 = vsel %vm1913_vm3, %v1935_v50, %v1937_v57  ;;  %v1466_v50 = vrot.slane %v4440_v58, 2 }
 0x1ac   : > { %3581 = vmatmul.msk.bf16.gmra.mxu0 %vm905_vm1, %v1547_v28 }
 0x1ad   : > { %3613 = vmatmul.msk.bf16.gmra.mxu1 %vm905_vm1, %v1547_v28  ;;  %v1940_v28 = vsel %vm1913_vm3, %v1937_v57, %v1939_v56  ;;  %v1467_v57 = vrot.slane %v4443_v59, 2  ;;  %v1469_v56 = vrot.slane %v4446_v60, 2 }
 0x1ae   : > { %3645 = vmatmul.msk.bf16.gmra.mxu2 %vm905_vm1, %v2022_v38  ;;  %v2023_v47 = vpack.c.bf16 %v1940_v28, %v1938_v16  ;;  %v1944_v16 = vrot.slane %v4446_v60, 3 }
 0x1af   : > { %3677 = vmatmul.msk.bf16.gmra.mxu3 %vm905_vm1, %v2022_v38  ;;  %v1548_v38 = vpack.c.bf16 %v1465_v15, %v1463_v1  ;;  %v1941_v1 = vrot.slane %v4440_v58, 3  ;;  %v1942_v15 = vrot.slane %v4443_v59, 3  ;;  %v1468_v28 = vsel %vm1438_vm2, %v1466_v50, %v1467_v57 }
 0x1b1   : > { %v1305_v39 = vpop.f32.mrf.mxu2  ;;  %v1025_v14 = vpop.f32.mrf.mxu0 }
 0x1b2   : > { %v1418_v18 = vpop.f32.mrf.mxu3  ;;  %v4805_v44 = vadd.f32 %v1305_v39, %v1023_v37  ;;  %v1146_v63 = vpop.f32.mrf.mxu1 }
 0x1b3   : > { %v4807_v33 = vadd.f32 %v1418_v18, %v1144_v0 }
 0x1b4   : > { %5791 = vst [vmem:[#allocation34_spill] sm:$0xff] %v4805_v44 }
 0x1b5   : > { %5792 = vst [vmem:[#allocation35_spill] sm:$0xff] %v4807_v33 }
 0x1b9   : > { %v1307_v0 = vpop.f32.mrf.mxu2  ;;  %v1028_v33 = vpop.f32.mrf.mxu0 }
 0x1ba   : > { %v1420_v37 = vpop.f32.mrf.mxu3  ;;  %v4817_v39 = vadd.f32 %v1307_v0, %v1025_v14  ;;  %v1149_v44 = vpop.f32.mrf.mxu1  ;;  %v1470_v0 = vsel %vm1438_vm2, %v1467_v57, %v1469_v56 }
 0x1bb   : > { %v4819_v18 = vadd.f32 %v1420_v37, %v1146_v63 }
 0x1bc   : > { %3582 = vmatmul.msk.bf16.gmra.mxu0 %vm905_vm1, %v1548_v38 }
 0x1bd   : > { %3614 = vmatmul.msk.bf16.gmra.mxu1 %vm905_vm1, %v1548_v38 }
 0x1be   : > { %3646 = vmatmul.msk.bf16.gmra.mxu2 %vm905_vm1, %v2023_v47 }
 0x1bf   : > { %3678 = vmatmul.msk.bf16.gmra.mxu3 %vm905_vm1, %v2023_v47  ;;  %v1549_v47 = vpack.c.bf16 %v1470_v0, %v1468_v28  ;;  %v1473_v28 = vrot.slane %v4469_v9, 2  ;;  %v1946_v0 = vrot.slane %v4466_v6, 3 }
 0x1c1   : > { %v1310_v48 = vpop.f32.mrf.mxu2  ;;  %v1030_v63 = vpop.f32.mrf.mxu0 }
 0x1c2   : > { %v1423_v52 = vpop.f32.mrf.mxu3  ;;  %v4826_v49 = vadd.f32 %v1310_v48, %v1028_v33  ;;  %v1151_v7 = vpop.f32.mrf.mxu1  ;;  %v1943_v33 = vsel %vm1913_vm3, %v1941_v1, %v1942_v15 }
 0x1c3   : > { %v4828_v14 = vadd.f32 %v1423_v52, %v1149_v44  ;;  %v1945_v44 = vsel %vm1913_vm3, %v1942_v15, %v1944_v16  ;;  %v1471_v15 = vrot.slane %v4466_v6, 2 }
 0x1c4   : > { %v2024_v59 = vpack.c.bf16 %v1945_v44, %v1943_v33  ;;  %v1948_v33 = vrot.slane %v4469_v9, 3 }
 0x1c5   : > { %5793 = vst [vmem:[#allocation36_spill] sm:$0xff] %v4828_v14  ;;  %v1472_v44 = vsel %vm1438_vm2, %v1469_v56, %v1471_v15 }
 0x1c9   : > { %v1312_v37 = vpop.f32.mrf.mxu2  ;;  %v1033_v58 = vpop.f32.mrf.mxu0 }
 0x1ca   : > { %v1425_v38 = vpop.f32.mrf.mxu3  ;;  %v4839_v48 = vadd.f32 %v1312_v37, %v1030_v63  ;;  %v1154_v14 = vpop.f32.mrf.mxu1  ;;  %v1474_v37 = vsel %vm1438_vm2, %v1471_v15, %v1473_v28 }
 0x1cb   : > { %v4841_v52 = vadd.f32 %v1425_v38, %v1151_v7  ;;  %v1947_v38 = vsel %vm1913_vm3, %v1944_v16, %v1946_v0  ;;  %v1475_v16 = vrot.slane %v4488_v21, 2 }
 0x1cc   : > { %3583 = vmatmul.msk.bf16.gmra.mxu0 %vm905_vm1, %v1549_v47 }
 0x1cd   : > { %3615 = vmatmul.msk.bf16.gmra.mxu1 %vm905_vm1, %v1549_v47  ;;  %v1949_v47 = vsel %vm1913_vm3, %v1946_v0, %v1948_v33  ;;  %v1476_v0 = vrot.slane %v4491_v22, 2  ;;  %v1478_v33 = vrot.slane %v4494_v23, 2 }
 0x1ce   : > { %3647 = vmatmul.msk.bf16.gmra.mxu2 %vm905_vm1, %v2024_v59  ;;  %v2025_v6 = vpack.c.bf16 %v1949_v47, %v1947_v38  ;;  %v1953_v38 = vrot.slane %v4494_v23, 3 }
 0x1cf   : > { %3679 = vmatmul.msk.bf16.gmra.mxu3 %vm905_vm1, %v2024_v59  ;;  %v1550_v59 = vpack.c.bf16 %v1474_v37, %v1472_v44  ;;  %v1950_v44 = vrot.slane %v4488_v21, 3  ;;  %v1951_v37 = vrot.slane %v4491_v22, 3  ;;  %v1477_v47 = vsel %vm1438_vm2, %v1475_v16, %v1476_v0 }
 0x1d1   : > { %v1315_v60 = vpop.f32.mrf.mxu2  ;;  %v1035_v63 = vpop.f32.mrf.mxu0 }
 0x1d2   : > { %v1428_v50 = vpop.f32.mrf.mxu3  ;;  %v4847_v57 = vadd.f32 %v1315_v60, %v1033_v58  ;;  %v1156_v7 = vpop.f32.mrf.mxu1 }
 0x1d3   : > { %v4849_v1 = vadd.f32 %v1428_v50, %v1154_v14 }
 0x1d4   : > { %5794 = vst [vmem:[#allocation37_spill] sm:$0xff] %v4847_v57 }
 0x1d5   : > { %5795 = vst [vmem:[#allocation38_spill] sm:$0xff] %v4849_v1 }
 0x1d9   : > { %v1317_v14 = vpop.f32.mrf.mxu2  ;;  %v1038_v1 = vpop.f32.mrf.mxu0 }
 0x1da   : > { %v1430_v58 = vpop.f32.mrf.mxu3  ;;  %v4859_v60 = vadd.f32 %v1317_v14, %v1035_v63  ;;  %v1159_v57 = vpop.f32.mrf.mxu1  ;;  %v1479_v14 = vsel %vm1438_vm2, %v1476_v0, %v1478_v33 }
 0x1db   : > { %v4861_v50 = vadd.f32 %v1430_v58, %v1156_v7 }
 0x1dc   : > { %5796 = vst [vmem:[#allocation39_spill] sm:$0xff] %v4859_v60  ;;  %3584 = vmatmul.msk.bf16.gmra.mxu0 %vm905_vm1, %v1550_v59 }
 0x1dd   : > { %5797 = vst [vmem:[#allocation40_spill] sm:$0xff] %v4861_v50  ;;  %3616 = vmatmul.msk.bf16.gmra.mxu1 %vm905_vm1, %v1550_v59 }
 0x1de   : > { %3648 = vmatmul.msk.bf16.gmra.mxu2 %vm905_vm1, %v2025_v6 }
 0x1df   : > { %3680 = vmatmul.msk.bf16.gmra.mxu3 %vm905_vm1, %v2025_v6  ;;  %v1551_v6 = vpack.c.bf16 %v1479_v14, %v1477_v47 }
 0x1e1   : > { %v1320_v9 = vpop.f32.mrf.mxu2  ;;  %v1040_v7 = vpop.f32.mrf.mxu0 }
 0x1e2   : > { %v1433_v56 = vpop.f32.mrf.mxu3  ;;  %v4868_v15 = vadd.f32 %v1320_v9, %v1038_v1  ;;  %v1161_v28 = vpop.f32.mrf.mxu1  ;;  %v1952_v1 = vsel %vm1913_vm3, %v1950_v44, %v1951_v37 }
 0x1e3   : > { %v4870_v63 = vadd.f32 %v1433_v56, %v1159_v57  ;;  %v1954_v57 = vsel %vm1913_vm3, %v1951_v37, %v1953_v38 }
 0x1e4   : > { %5798 = vst [vmem:[#allocation41_spill] sm:$0xff] %v4868_v15  ;;  %v2026_v22 = vpack.c.bf16 %v1954_v57, %v1952_v1  ;;  %v1955_v1 = vrot.slane %v4508_v35, 3  ;;  %v1957_v57 = vrot.slane %v4511_v36, 3 }
 0x1e5   : > { %5799 = vst [vmem:[#allocation42_spill] sm:$0xff] %v4870_v63 }
 0x1e9   : > { %v1322_v58 = vpop.f32.mrf.mxu2  ;;  %v1648_v21 = vpop.f32.mrf.mxu0 }
 0x1ea   : > { %v1435_v59 = vpop.f32.mrf.mxu3  ;;  %v4881_v9 = vadd.f32 %v1322_v58, %v1040_v7  ;;  %v1769_v63 = vpop.f32.mrf.mxu1  ;;  %v1849_v23 = vadd.f32 %v1648_v21, %v4513_v42  ;;  %v1480_v42 = vrot.slane %v4508_v35, 2  ;;  %v1958_v21 = vsel %vm1913_vm3, %v1955_v1, %v1957_v57 }
 0x1eb   : > { %v4883_v56 = vadd.f32 %v1435_v59, %v1161_v28  ;;  %v1881_v16 = vadd.f32 %v1769_v63, %v4515_v43  ;;  %v1482_v43 = vrot.slane %v4511_v36, 2 }
 0x1ec   : > { %5800 = vst [vmem:[#allocation43_spill] sm:$0xff] %v4881_v9  ;;  %3585 = vmatmul.msk.bf16.gmra.mxu0 %vm905_vm1, %v1551_v6  ;;  %v1481_v58 = vsel %vm1438_vm2, %v1478_v33, %v1480_v42  ;;  %v5815_v9 = vld [vmem:[#allocation19_spill] sm:$0xff] }
 0x1ed   : > { %5801 = vst [vmem:[#allocation44_spill] sm:$0xff] %v4883_v56  ;;  %3617 = vmatmul.msk.bf16.gmra.mxu1 %vm905_vm1, %v1551_v6  ;;  %v1483_v59 = vsel %vm1438_vm2, %v1480_v42, %v1482_v43  ;;  %v1956_v6 = vsel %vm1913_vm3, %v1953_v38, %v1955_v1  ;;  %v1485_v42 = vrot.slane %v4535_v3, 2  ;;  %v1959_v1 = vrot.slane %v4532_v2, 3 }
 0x1ee   : > { %3649 = vmatmul.msk.bf16.gmra.mxu2 %vm905_vm1, %v2026_v22  ;;  %v2027_v35 = vpack.c.bf16 %v1958_v21, %v1956_v6  ;;  %v1962_v6 = vrot.slane %v4538_v4, 3 }
 0x1ef   : > { %3681 = vmatmul.msk.bf16.gmra.mxu3 %vm905_vm1, %v2026_v22 }
 0x1f1   : > { %v2123_v0 = vpop.f32.mrf.mxu2  ;;  %v1650_v37 = vpop.f32.mrf.mxu0 }
 0x1f2   : > { %v2244_v7 = vpop.f32.mrf.mxu3  ;;  %v4891_v44 = vadd.f32 %v2123_v0, %v1849_v23  ;;  %v1771_v47 = vpop.f32.mrf.mxu1  ;;  %v1850_v63 = vadd.f32 %v1650_v37, %v4521_v61 }
 0x1f3   : > { %v4893_v28 = vadd.f32 %v2244_v7, %v1881_v16  ;;  %v1882_v14 = vadd.f32 %v1771_v47, %v4523_v62  ;;  %v1552_v16 = vpack.c.bf16 %v1483_v59, %v1481_v58  ;;  %v1484_v47 = vrot.slane %v4532_v2, 2 }
 0x1f4   : > { %v1960_v59 = vrot.slane %v4535_v3, 3 }
 0x1f5   : > { %v1486_v21 = vsel %vm1438_vm2, %v1484_v47, %v1485_v42 }
 0x1f9   : > { %v2125_v22 = vpop.f32.mrf.mxu2  ;;  %v1653_v62 = vpop.f32.mrf.mxu0 }
 0x1fa   : > { %v2246_v23 = vpop.f32.mrf.mxu3  ;;  %v4905_v0 = vadd.f32 %v2125_v22, %v1850_v63  ;;  %v1774_v7 = vpop.f32.mrf.mxu1  ;;  %v1851_v36 = vadd.f32 %v1653_v62, %v4541_v12 }
 0x1fb   : > { %v4907_v61 = vadd.f32 %v2246_v23, %v1882_v14  ;;  %v1883_v33 = vadd.f32 %v1774_v7, %v4543_v13  ;;  %v1487_v14 = vrot.slane %v4538_v4, 2  ;;  %v1961_v23 = vsel %vm1913_vm3, %v1959_v1, %v1960_v59 }
 0x1fc   : > { %3586 = vmatmul.msk.bf16.gmra.mxu0 %vm905_vm1, %v1552_v16 }
 0x1fd   : > { %3618 = vmatmul.msk.bf16.gmra.mxu1 %vm905_vm1, %v1552_v16  ;;  %v1488_v22 = vsel %vm1438_vm2, %v1485_v42, %v1487_v14  ;;  %v1963_v16 = vsel %vm1913_vm3, %v1960_v59, %v1962_v6  ;;  %v1966_v59 = vrot.slane %v4569_v46, 3 }
 0x1fe   : > { %3650 = vmatmul.msk.bf16.gmra.mxu2 %vm905_vm1, %v2027_v35  ;;  %v2028_v3 = vpack.c.bf16 %v1963_v16, %v1961_v23 }
 0x1ff   : > { %3682 = vmatmul.msk.bf16.gmra.mxu3 %vm905_vm1, %v2027_v35  ;;  %v1553_v35 = vpack.c.bf16 %v1488_v22, %v1486_v21 }
 0x201   : > { %v2128_v38 = vpop.f32.mrf.mxu2  ;;  %v1655_v12 = vpop.f32.mrf.mxu0 }
 0x202   : > { %v2249_v37 = vpop.f32.mrf.mxu3  ;;  %v4917_v43 = vadd.f32 %v2128_v38, %v1851_v36  ;;  %v1776_v13 = vpop.f32.mrf.mxu1  ;;  %v1852_v57 = vadd.f32 %v1655_v12, %v4549_v31 }
 0x203   : > { %v4919_v63 = vadd.f32 %v2249_v37, %v1883_v33  ;;  %v1884_v58 = vadd.f32 %v1776_v13, %v4551_v32 }
 0x209   : > { %v2130_v62 = vpop.f32.mrf.mxu2  ;;  %v1658_v32 = vpop.f32.mrf.mxu0 }
 0x20a   : > { %v2251_v7 = vpop.f32.mrf.mxu3  ;;  %v4931_v2 = vadd.f32 %v2130_v62, %v1852_v57  ;;  %v1779_v36 = vpop.f32.mrf.mxu1  ;;  %v1853_v4 = vadd.f32 %v1658_v32, %v4571_v54  ;;  %v1489_v54 = vrot.slane %v4566_v45, 2 }
 0x20b   : > { %v4933_v31 = vadd.f32 %v2251_v7, %v1884_v58  ;;  %v1885_v33 = vadd.f32 %v1779_v36, %v4573_v55  ;;  %v1491_v55 = vrot.slane %v4569_v46, 2  ;;  %v1964_v58 = vrot.slane %v4566_v45, 3 }
 0x20c   : > { %3587 = vmatmul.msk.bf16.gmra.mxu0 %vm905_vm1, %v1553_v35  ;;  %v1490_v21 = vsel %vm1438_vm2, %v1487_v14, %v1489_v54 }
 0x20d   : > { %3619 = vmatmul.msk.bf16.gmra.mxu1 %vm905_vm1, %v1553_v35  ;;  %v1492_v22 = vsel %vm1438_vm2, %v1489_v54, %v1491_v55  ;;  %v1965_v23 = vsel %vm1913_vm3, %v1962_v6, %v1964_v58  ;;  %v1967_v16 = vsel %vm1913_vm3, %v1964_v58, %v1966_v59  ;;  %v5806_v59 = vld [vmem:[#allocation8_spill] sm:$0xff] }
 0x20e   : > { %3651 = vmatmul.msk.bf16.gmra.mxu2 %vm905_vm1, %v2028_v3  ;;  %v1554_v35 = vpack.c.bf16 %v1492_v22, %v1490_v21  ;;  %v2029_v45 = vpack.c.bf16 %v1967_v16, %v1965_v23  ;;  %v5807_v22 = vld [vmem:[#allocation9_spill] sm:$0xff] }
 0x20f   : > { %3683 = vmatmul.msk.bf16.gmra.mxu3 %vm905_vm1, %v2028_v3  ;;  %v5802_v3 = vld [vmem:[#allocation7_spill] sm:$0xff] }
 0x211   : > { %v2133_v38 = vpop.f32.mrf.mxu2  ;;  %v1660_v12 = vpop.f32.mrf.mxu0 }
 0x212   : > { %v2254_v37 = vpop.f32.mrf.mxu3  ;;  %v4941_v47 = vadd.f32 %v2133_v38, %v1853_v4  ;;  %v1781_v13 = vpop.f32.mrf.mxu1  ;;  %v1854_v1 = vadd.f32 %v1660_v12, %v4585_v24 }
 0x213   : > { %v4943_v42 = vadd.f32 %v2254_v37, %v1885_v33  ;;  %v1886_v57 = vadd.f32 %v1781_v13, %v4587_v25  ;;  %v5803_v33 = vld [vmem:[#allocation4_spill] sm:$0xff]  ;;  %v5804_v37 = vld [vmem:[#allocation5_spill] sm:$0xff] }
 0x214   : > { %v1493_v38 = vrot.slane %v5803_v33, 2  ;;  %v1494_v12 = vrot.slane %v5804_v37, 2  ;;  %v1968_v58 = vrot.slane %v5803_v33, 3  ;;  %v1969_v16 = vrot.slane %v5804_v37, 3 }
 0x219   : > { %v2135_v62 = vpop.f32.mrf.mxu2  ;;  %v1663_v25 = vpop.f32.mrf.mxu0 }
 0x21a   : > { %v2256_v7 = vpop.f32.mrf.mxu3  ;;  %v4955_v32 = vadd.f32 %v2135_v62, %v1854_v1  ;;  %v1784_v36 = vpop.f32.mrf.mxu1  ;;  %v1855_v46 = vadd.f32 %v1663_v25, %v4605_v51  ;;  %v5805_v1 = vld [vmem:[#allocation6_spill] sm:$0xff]  ;;  %v1970_v25 = vsel %vm1913_vm3, %v1968_v58, %v1969_v16 }
 0x21b   : > { %v4957_v24 = vadd.f32 %v2256_v7, %v1886_v57  ;;  %v1887_v14 = vadd.f32 %v1784_v36, %v5802_v3  ;;  %v1496_v57 = vrot.slane %v5805_v1, 2  ;;  %v1971_v62 = vrot.slane %v5805_v1, 3  ;;  %v5809_v1 = vld [vmem:[#allocation13_spill] sm:$0xff] }
 0x21c   : > { %3588 = vmatmul.msk.bf16.gmra.mxu0 %vm905_vm1, %v1554_v35  ;;  %v1495_v7 = vsel %vm1438_vm2, %v1493_v38, %v1494_v12 }
 0x21d   : > { %3620 = vmatmul.msk.bf16.gmra.mxu1 %vm905_vm1, %v1554_v35  ;;  %v1497_v35 = vsel %vm1438_vm2, %v1494_v12, %v1496_v57  ;;  %v1972_v36 = vsel %vm1913_vm3, %v1969_v16, %v1971_v62  ;;  %v5810_v16 = vld [vmem:[#allocation10_spill] sm:$0xff] }
 0x21e   : > { %3652 = vmatmul.msk.bf16.gmra.mxu2 %vm905_vm1, %v2029_v45  ;;  %v1555_v3 = vpack.c.bf16 %v1497_v35, %v1495_v7  ;;  %v2030_v37 = vpack.c.bf16 %v1972_v36, %v1970_v25  ;;  %v1498_v7 = vrot.slane %v5810_v16, 2  ;;  %v5811_v35 = vld [vmem:[#allocation11_spill] sm:$0xff]  ;;  %v5812_v36 = vld [vmem:[#allocation14_spill] sm:$0xff] }
 0x21f   : > { %3684 = vmatmul.msk.bf16.gmra.mxu3 %vm905_vm1, %v2029_v45  ;;  %v1500_v25 = vrot.slane %v5811_v35, 2 }
 0x221   : > { %v2138_v6 = vpop.f32.mrf.mxu2  ;;  %v1665_v51 = vpop.f32.mrf.mxu0 }
 0x222   : > { %v2259_v4 = vpop.f32.mrf.mxu3  ;;  %v4967_v13 = vadd.f32 %v2138_v6, %v1855_v46  ;;  %v1786_v55 = vpop.f32.mrf.mxu1  ;;  %v1856_v21 = vadd.f32 %v1665_v51, %v5806_v59  ;;  %v5808_v51 = vld [vmem:[#allocation12_spill] sm:$0xff] }
 0x223   : > { %v4969_v54 = vadd.f32 %v2259_v4, %v1887_v14  ;;  %v1888_v23 = vadd.f32 %v1786_v55, %v5807_v22 }
 0x229   : > { %v2140_v45 = vpop.f32.mrf.mxu2  ;;  %v1668_v4 = vpop.f32.mrf.mxu0 }
 0x22a   : > { %v2261_v46 = vpop.f32.mrf.mxu3  ;;  %v4981_v14 = vadd.f32 %v2140_v45, %v1856_v21  ;;  %v1789_v33 = vpop.f32.mrf.mxu1  ;;  %v1857_v55 = vadd.f32 %v1668_v4, %v5808_v51  ;;  %v1973_v4 = vrot.slane %v5810_v16, 3  ;;  %v1501_v51 = vsel %vm1438_vm2, %v1498_v7, %v1500_v25  ;;  %v5816_v25 = vld [vmem:[#allocation16_spill] sm:$0xff] }
 0x22b   : > { %v4983_v6 = vadd.f32 %v2261_v46, %v1888_v23  ;;  %v1889_v38 = vadd.f32 %v1789_v33, %v5809_v1  ;;  %v5813_v46 = vld [vmem:[#allocation15_spill] sm:$0xff]  ;;  %v1975_v33 = vrot.slane %v5811_v35, 3 }
 0x22c   : > { %3589 = vmatmul.msk.bf16.gmra.mxu0 %vm905_vm1, %v1555_v3 }
 0x22d   : > { %3621 = vmatmul.msk.bf16.gmra.mxu1 %vm905_vm1, %v1555_v3  ;;  %v1976_v1 = vsel %vm1913_vm3, %v1973_v4, %v1975_v33 }
 0x22e   : > { %3653 = vmatmul.msk.bf16.gmra.mxu2 %vm905_vm1, %v2030_v37 }
 0x22f   : > { %3685 = vmatmul.msk.bf16.gmra.mxu3 %vm905_vm1, %v2030_v37  ;;  %v1499_v37 = vsel %vm1438_vm2, %v1496_v57, %v1498_v7 }
 0x231   : > { %v2143_v12 = vpop.f32.mrf.mxu2  ;;  %v1670_v22 = vpop.f32.mrf.mxu0 }
 0x232   : > { %v2264_v58 = vpop.f32.mrf.mxu3  ;;  %v4991_v59 = vadd.f32 %v2143_v12, %v1857_v55  ;;  %v1791_v23 = vpop.f32.mrf.mxu1  ;;  %v1858_v45 = vadd.f32 %v1670_v22, %v5812_v36  ;;  %v1974_v55 = vsel %vm1913_vm3, %v1971_v62, %v1973_v4 }
 0x233   : > { %v4993_v21 = vadd.f32 %v2264_v58, %v1889_v38  ;;  %v1890_v3 = vadd.f32 %v1791_v23, %v5813_v46  ;;  %v1556_v58 = vpack.c.bf16 %v1501_v51, %v1499_v37  ;;  %v2031_v16 = vpack.c.bf16 %v1976_v1, %v1974_v55  ;;  %v5814_v46 = vld [vmem:[#allocation18_spill] sm:$0xff] }
 0x234   : > { %v1505_v55 = vrot.slane %v4654_v19, 2  ;;  %v1977_v1 = vrot.slane %v5816_v25, 3 }
 0x239   : > { %v2145_v38 = vpop.f32.mrf.mxu2  ;;  %v1673_v23 = vpop.f32.mrf.mxu0 }
 0x23a   : > { %v2266_v12 = vpop.f32.mrf.mxu3  ;;  %v5005_v56 = vadd.f32 %v2145_v38, %v1858_v45  ;;  %v1794_v36 = vpop.f32.mrf.mxu1  ;;  %v1859_v35 = vadd.f32 %v1673_v23, %v5814_v46  ;;  %v1502_v45 = vrot.slane %v5816_v25, 2  ;;  %v5818_v38 = vld [vmem:[#allocation20_spill] sm:$0xff] }
 0x23b   : > { %v5007_v22 = vadd.f32 %v2266_v12, %v1890_v3  ;;  %v1891_v57 = vadd.f32 %v1794_v36, %v5815_v9  ;;  %v5817_v3 = vld [vmem:[#allocation17_spill] sm:$0xff] }
 0x23c   : > { %3590 = vmatmul.msk.bf16.gmra.mxu0 %vm905_vm1, %v1556_v58  ;;  %v1503_v4 = vrot.slane %v5817_v3, 2  ;;  %v1978_v36 = vrot.slane %v5817_v3, 3 }
 0x23d   : > { %3622 = vmatmul.msk.bf16.gmra.mxu1 %vm905_vm1, %v1556_v58  ;;  %v5819_v58 = vld [vmem:[#allocation21_spill] sm:$0xff] }
 0x23e   : > { %3654 = vmatmul.msk.bf16.gmra.mxu2 %vm905_vm1, %v2031_v16  ;;  %v1504_v46 = vsel %vm1438_vm2, %v1502_v45, %v1503_v4 }
 0x23f   : > { %3686 = vmatmul.msk.bf16.gmra.mxu3 %vm905_vm1, %v2031_v16  ;;  %v1980_v16 = vrot.slane %v4654_v19, 3 }
 0x241   : > { %v2148_v62 = vpop.f32.mrf.mxu2  ;;  %v1675_v51 = vpop.f32.mrf.mxu0 }
 0x242   : > { %v2269_v7 = vpop.f32.mrf.mxu3  ;;  %v5017_v33 = vadd.f32 %v2148_v62, %v1859_v35  ;;  %v1796_v9 = vpop.f32.mrf.mxu1  ;;  %v1860_v12 = vadd.f32 %v1675_v51, %v5818_v38  ;;  %v1506_v35 = vsel %vm1438_vm2, %v1503_v4, %v1505_v55  ;;  %v1981_v62 = vsel %vm1913_vm3, %v1978_v36, %v1980_v16 }
 0x243   : > { %v5019_v37 = vadd.f32 %v2269_v7, %v1891_v57  ;;  %v1892_v23 = vadd.f32 %v1796_v9, %v5819_v58  ;;  %v1979_v57 = vsel %vm1913_vm3, %v1977_v1, %v1978_v36  ;;  %v1557_v50 = vpack.c.bf16 %v1506_v35, %v1504_v46  ;;  %v5822_v36 = vld [vmem:[#allocation22_spill] sm:$0xff]  ;;  %v5823_v46 = vld [vmem:[#allocation23_spill] sm:$0xff]  ;;  %v5824_v35 = vld [vmem:[#allocation24_spill] sm:$0xff] }
 0x244   : > { %v2032_v3 = vpack.c.bf16 %v1981_v62, %v1979_v57  ;;  %v5825_v62 = vld [vmem:[#allocation25_spill] sm:$0xff] }
 0x249   : > { %v2150_v7 = vpop.f32.mrf.mxu2  ;;  %v1678_v9 = vpop.f32.mrf.mxu0 }
 0x24a   : > { %v2271_v15 = vpop.f32.mrf.mxu3  ;;  %v5031_v25 = vadd.f32 %v2150_v7, %v1860_v12  ;;  %v1799_v38 = vpop.f32.mrf.mxu1  ;;  %v1861_v19 = vadd.f32 %v1678_v9, %v4681_v26  ;;  %v1507_v26 = vrot.slane %v5822_v36, 2  ;;  %v1982_v7 = vrot.slane %v5822_v36, 3 }
 0x24b   : > { %v5033_v51 = vadd.f32 %v2271_v15, %v1892_v23  ;;  %v1893_v45 = vadd.f32 %v1799_v38, %v4683_v5  ;;  %v1509_v5 = vrot.slane %v5823_v46, 2  ;;  %v1984_v9 = vrot.slane %v5823_v46, 3 }
 0x24c   : > { %3591 = vmatmul.msk.bf16.gmra.mxu0 %vm905_vm1, %v1557_v50  ;;  %v1508_v38 = vsel %vm1438_vm2, %v1505_v55, %v1507_v26 }
 0x24d   : > { %3623 = vmatmul.msk.bf16.gmra.mxu1 %vm905_vm1, %v1557_v50 }
 0x24e   : > { %3655 = vmatmul.msk.bf16.gmra.mxu2 %vm905_vm1, %v2032_v3 }
 0x24f   : > { %3687 = vmatmul.msk.bf16.gmra.mxu3 %vm905_vm1, %v2032_v3  ;;  %v1510_v3 = vsel %vm1438_vm2, %v1507_v26, %v1509_v5 }
 0x250   : > { %v1558_v60 = vpack.c.bf16 %v1510_v3, %v1508_v38 }
 0x251   : > { %v2153_v4 = vpop.f32.mrf.mxu2  ;;  %v1680_v58 = vpop.f32.mrf.mxu0 }
 0x252   : > { %v2274_v1 = vpop.f32.mrf.mxu3  ;;  %v5041_v12 = vadd.f32 %v2153_v4, %v1861_v19  ;;  %v1801_v23 = vpop.f32.mrf.mxu1  ;;  %v1862_v57 = vadd.f32 %v1680_v58, %v5824_v35  ;;  %v1983_v19 = vsel %vm1913_vm3, %v1980_v16, %v1982_v7 }
 0x253   : > { %v5043_v15 = vadd.f32 %v2274_v1, %v1893_v45  ;;  %v1894_v50 = vadd.f32 %v1801_v23, %v5825_v62  ;;  %v1985_v45 = vsel %vm1913_vm3, %v1982_v7, %v1984_v9  ;;  %v5826_v62 = vld [vmem:[#allocation26_spill] sm:$0xff] }
 0x254   : > { %5820 = vst [vmem:[#allocation7_spill] sm:$0xff] %v5041_v12  ;;  %v2033_v36 = vpack.c.bf16 %v1985_v45, %v1983_v19  ;;  %v5827_v12 = vld [vmem:[#allocation27_spill] sm:$0xff] }
 0x255   : > { %5821 = vst [vmem:[#allocation4_spill] sm:$0xff] %v5043_v15 }
 0x259   : > { %v2155_v4 = vpop.f32.mrf.mxu2  ;;  %v1683_v23 = vpop.f32.mrf.mxu0 }
 0x25a   : > { %v2276_v1 = vpop.f32.mrf.mxu3  ;;  %v5055_v15 = vadd.f32 %v2155_v4, %v1862_v57  ;;  %v1804_v35 = vpop.f32.mrf.mxu1  ;;  %v1863_v46 = vadd.f32 %v1683_v23, %v5826_v62 }
 0x25b   : > { %v5057_v58 = vadd.f32 %v2276_v1, %v1894_v50  ;;  %v1895_v55 = vadd.f32 %v1804_v35, %v5827_v12  ;;  %v5832_v1 = vld [vmem:[#allocation28_spill] sm:$0xff]  ;;  %v5833_v35 = vld [vmem:[#allocation29_spill] sm:$0xff] }
 0x25c   : > { %3592 = vmatmul.msk.bf16.gmra.mxu0 %vm905_vm1, %v1558_v60 }
 0x25d   : > { %3624 = vmatmul.msk.bf16.gmra.mxu1 %vm905_vm1, %v1558_v60 }
 0x25e   : > { %3656 = vmatmul.msk.bf16.gmra.mxu2 %vm905_vm1, %v2033_v36 }
 0x25f   : > { %3688 = vmatmul.msk.bf16.gmra.mxu3 %vm905_vm1, %v2033_v36 }
 0x261   : > { %v2158_v16 = vpop.f32.mrf.mxu2  ;;  %v1685_v50 = vpop.f32.mrf.mxu0 }
 0x262   : > { %v2279_v26 = vpop.f32.mrf.mxu3  ;;  %v5065_v5 = vadd.f32 %v2158_v16, %v1863_v46  ;;  %v1806_v7 = vpop.f32.mrf.mxu1  ;;  %v1864_v9 = vadd.f32 %v1685_v50, %v4713_v11 }
 0x263   : > { %v5067_v57 = vadd.f32 %v2279_v26, %v1895_v55  ;;  %v1896_v12 = vadd.f32 %v1806_v7, %v4715_v41 }
 0x264   : > { %5828 = vst [vmem:[#allocation5_spill] sm:$0xff] %v5065_v5 }
 0x265   : > { %5829 = vst [vmem:[#allocation6_spill] sm:$0xff] %v5067_v57 }
 0x269   : > { %v2160_v38 = vpop.f32.mrf.mxu2  ;;  %v1688_v45 = vpop.f32.mrf.mxu0 }
 0x26a   : > { %v2281_v3 = vpop.f32.mrf.mxu3  ;;  %v5071_v19 = vadd.f32 %v2160_v38, %v1864_v9  ;;  %v1809_v4 = vpop.f32.mrf.mxu1  ;;  %v1865_v23 = vadd.f32 %v1688_v45, %v5832_v1 }
 0x26b   : > { %v5073_v60 = vadd.f32 %v2281_v3, %v1896_v12  ;;  %v1897_v36 = vadd.f32 %v1809_v4, %v5833_v35 }
 0x26c   : > { %5830 = vst [vmem:[#allocation8_spill] sm:$0xff] %v5071_v19  ;;  %v5835_v19 = vld [vmem:[#allocation31_spill] sm:$0xff] }
 0x26d   : > { %5831 = vst [vmem:[#allocation9_spill] sm:$0xff] %v5073_v60  ;;  %v5834_v60 = vld [vmem:[#allocation30_spill] sm:$0xff] }
 0x271   : > { %v2163_v62 = vpop.f32.mrf.mxu2  ;;  %v1690_v26 = vpop.f32.mrf.mxu0 }
 0x272   : > { %v2284_v46 = vpop.f32.mrf.mxu3  ;;  %v2340_v55 = vadd.f32 %v2163_v62, %v1865_v23  ;;  %v1811_v11 = vpop.f32.mrf.mxu1  ;;  %v1866_v41 = vadd.f32 %v1690_v26, %v4733_v53 }
 0x273   : > { %v2372_v16 = vadd.f32 %v2284_v46, %v1897_v36  ;;  %v1898_v50 = vadd.f32 %v1811_v11, %v4735_v20 }
 0x274   : > { %v2388_v7 = vadd.f32 %v2340_v55, %v4891_v44  ;;  %v2420_v9 = vsub.f32 %v4891_v44, %v2340_v55 }
 0x275   : > { %v2404_v12 = vadd.f32 %v2372_v16, %v4893_v28  ;;  %v2436_v38 = vsub.f32 %v4893_v28, %v2372_v16 }
 0x276   : > { %v2452_v3 = vmul.f32 %v2388_v7, %v2388_v7  ;;  %v2708_v45 = vmul.f32 %v2420_v9, %v2420_v9 }
 0x277   : > { %v2468_v4 = vmul.f32 %v2404_v12, %v2404_v12  ;;  %v2724_v1 = vmul.f32 %v2436_v38, %v2436_v38 }
 0x279   : > { %v2484_v23 = vadd.f32 %v2468_v4, %v2452_v3  ;;  %v2740_v35 = vadd.f32 %v2724_v1, %v2708_v45  ;;  %v2165_v36 = vpop.f32.mrf.mxu2  ;;  %v1693_v11 = vpop.f32.mrf.mxu0 }
 0x27a   : > { %v2286_v62 = vpop.f32.mrf.mxu3  ;;  %v2341_v20 = vadd.f32 %v2165_v36, %v1866_v41  ;;  %v1814_v44 = vpop.f32.mrf.mxu1  ;;  %v1867_v55 = vadd.f32 %v1693_v11, %v4742_v30 }
 0x27b   : > { %v5083_v46 = vadd.f32 1e-24, %v2484_v23  ;;  %v5085_v53 = vadd.f32 1e-24, %v2740_v35  ;;  %v2373_v26 = vadd.f32 %v2286_v62, %v1898_v50  ;;  %v1899_v28 = vadd.f32 %v1814_v44, %v5834_v60 }
 0x27c   : > { %v2389_v16 = vadd.f32 %v2341_v20, %v4905_v0  ;;  %v2421_v7 = vsub.f32 %v4905_v0, %v2341_v20 }
 0x27d   : > { %3854 = vrsqrt.f32 %v5083_v46  ;;  %v2405_v9 = vadd.f32 %v2373_v26, %v4907_v61  ;;  %v2437_v12 = vsub.f32 %v4907_v61, %v2373_v26  ;;  %vm2523_vm4 = vcmp.eq.f32.partialorder %v5083_v46, inf }
 0x27e   : > { %3856 = vrsqrt.f32 %v5085_v53  ;;  %v2453_v41 = vmul.f32 %v2389_v16, %v2389_v16  ;;  %v2709_v50 = vmul.f32 %v2421_v7, %v2421_v7  ;;  %vm2525_vm5 = vcmp.eq.f32.partialorder %v5083_v46, 0.0 }
 0x27f   : > { %v2469_v38 = vmul.f32 %v2405_v9, %v2405_v9  ;;  %v2725_v3 = vmul.f32 %v2437_v12, %v2437_v12  ;;  %vm2779_vm6 = vcmp.eq.f32.partialorder %v5085_v53, inf  ;;  %vm2781_vm7 = vcmp.eq.f32.partialorder %v5085_v53, 0.0 }
 0x281   : > { %v2168_v45 = vpop.f32.mrf.mxu2  ;;  %v2485_v60 = vadd.f32 %v2469_v38, %v2453_v41  ;;  %v2741_v1 = vadd.f32 %v2725_v3, %v2709_v50  ;;  %v1695_v36 = vpop.f32.mrf.mxu0 }
 0x282   : > { %v2289_v30 = vpop.f32.mrf.mxu3  ;;  %v2342_v23 = vadd.f32 %v2168_v45, %v1867_v55  ;;  %v1816_v62 = vpop.f32.mrf.mxu1  ;;  %v1868_v20 = vadd.f32 %v1695_v36, %v4755_v8 }
 0x283   : > { %v3855_v4 = vpop.eup %3854  ;;  %v2374_v35 = vadd.f32 %v2289_v30, %v1899_v28  ;;  %v1900_v61 = vadd.f32 %v1816_v62, %v4757_v34  ;;  %v5099_v44 = vadd.f32 1e-24, %v2485_v60  ;;  %v5101_v16 = vadd.f32 1e-24, %v2741_v1 }
 0x284   : > { %v3857_v11 = vpop.eup %3856  ;;  %v2517_v0 = vmul.f32 %v3855_v4, %v5083_v46  ;;  %v2390_v7 = vadd.f32 %v2342_v23, %v4917_v43  ;;  %v2422_v55 = vsub.f32 %v4917_v43, %v2342_v23 }
 0x285   : > { %v2773_v26 = vmul.f32 %v3857_v11, %v5085_v53  ;;  %v2406_v28 = vadd.f32 %v2374_v35, %v4919_v63  ;;  %v2438_v12 = vsub.f32 %v4919_v63, %v2374_v35  ;;  %3858 = vrsqrt.f32 %v5099_v44 }
 0x286   : > { %v2518_v9 = vmul.f32 %v3855_v4, %v2517_v0  ;;  %3860 = vrsqrt.f32 %v5101_v16  ;;  %v2454_v50 = vmul.f32 %v2390_v7, %v2390_v7  ;;  %v2710_v3 = vmul.f32 %v2422_v55, %v2422_v55 }
 0x287   : > { %v2774_v41 = vmul.f32 %v3857_v11, %v2773_v26  ;;  %v2470_v45 = vmul.f32 %v2406_v28, %v2406_v28  ;;  %v2726_v43 = vmul.f32 %v2438_v12, %v2438_v12  ;;  %v2526_v63 = vand.u32 2147483648, %v5083_v46 }
 0x288   : > { %v2519_v8 = vmul.f32 0.5, %v2518_v9  ;;  %vm2535_vm8 = vcmp.eq.f32.partialorder %v5099_v44, inf  ;;  %vm2537_vm9 = vcmp.eq.f32.partialorder %v5099_v44, 0.0  ;;  %vm2791_vm10 = vcmp.eq.f32.partialorder %v5101_v16, inf }
 0x289   : > { %v2775_v34 = vmul.f32 0.5, %v2774_v41  ;;  %v2170_v30 = vpop.f32.mrf.mxu2  ;;  %v1698_v36 = vpop.f32.mrf.mxu0  ;;  %v2486_v26 = vadd.f32 %v2470_v45, %v2454_v50  ;;  %v2742_v9 = vadd.f32 %v2726_v43, %v2710_v3  ;;  %vm2793_vm11 = vcmp.eq.f32.partialorder %v5101_v16, 0.0 }
 0x28a   : > { %v2520_v38 = vsub.f32 1.5, %v2519_v8  ;;  %v2291_v60 = vpop.f32.mrf.mxu3  ;;  %v2343_v23 = vadd.f32 %v2170_v30, %v1868_v20  ;;  %v1819_v62 = vpop.f32.mrf.mxu1  ;;  %v1869_v57 = vadd.f32 %v1698_v36, %v5835_v19 }
 0x28b   : > { %v2776_v1 = vsub.f32 1.5, %v2775_v34  ;;  %v2375_v35 = vadd.f32 %v2291_v60, %v1900_v61  ;;  %v3859_v41 = vpop.eup %3858  ;;  %v5118_v61 = vadd.f32 1e-24, %v2486_v26 }
 0x28c   : > { %v2521_v0 = vmul.f32 %v3855_v4, %v2520_v38  ;;  %v2391_v55 = vadd.f32 %v2343_v23, %v4931_v2  ;;  %v2423_v28 = vsub.f32 %v4931_v2, %v2343_v23  ;;  %v3861_v8 = vpop.eup %3860  ;;  %v2529_v20 = vmul.f32 %v3859_v41, %v5099_v44 }
 0x28d   : > { %v2777_v7 = vmul.f32 %v3857_v11, %v2776_v1  ;;  %v2407_v12 = vadd.f32 %v2375_v35, %v4933_v31  ;;  %v5120_v4 = vadd.f32 1e-24, %v2742_v9  ;;  %v2785_v19 = vmul.f32 %v3861_v8, %v5101_v16 }
 0x28e   : > { %v2522_v34 = vmul.f32 %v2521_v0, %v5083_v46  ;;  %v2782_v11 = vand.u32 2147483648, %v5085_v53  ;;  %v2530_v38 = vmul.f32 %v3859_v41, %v2529_v20  ;;  %3862 = vrsqrt.f32 %v5118_v61  ;;  %v5838_v20 = vld [vmem:[#allocation32_spill] sm:$0xff] }
 0x28f   : > { %v2778_v50 = vmul.f32 %v2777_v7, %v5085_v53  ;;  %v2786_v43 = vmul.f32 %v3861_v8, %v2785_v19  ;;  %3864 = vrsqrt.f32 %v5120_v4  ;;  %v2455_v1 = vmul.f32 %v2391_v55, %v2391_v55 }
 0x290   : > { %v2524_v2 = vsel %vm2523_vm4, %v5083_v46, %v2522_v34  ;;  %v2531_v60 = vmul.f32 0.5, %v2530_v38  ;;  %v2538_v0 = vand.u32 2147483648, %v5099_v44  ;;  %v2439_v7 = vsub.f32 %v4933_v31, %v2375_v35 }
 0x291   : > { %v5133_v3 = vsel %vm2525_vm5, %v2526_v63, %v2524_v2  ;;  %v2780_v45 = vsel %vm2779_vm6, %v5085_v53, %v2778_v50  ;;  %v2173_v23 = vpop.f32.mrf.mxu2  ;;  %v2787_v46 = vmul.f32 0.5, %v2786_v43  ;;  %v2711_v63 = vmul.f32 %v2423_v28, %v2423_v28  ;;  %v1700_v53 = vpop.f32.mrf.mxu0 }
 0x292   : > { %5836 = vst [vmem:[#allocation12_spill] sm:$0xff] %v5133_v3  ;;  %v5137_v30 = vsel %vm2781_vm7, %v2782_v11, %v2780_v45  ;;  %v2294_v36 = vpop.f32.mrf.mxu3  ;;  %v1821_v26 = vpop.f32.mrf.mxu1  ;;  %v2532_v9 = vsub.f32 1.5, %v2531_v60  ;;  %v2471_v34 = vmul.f32 %v2407_v12, %v2407_v12  ;;  %v1901_v50 = vadd.f32 %v1819_v62, %v5838_v20 }
 0x293   : > { %5837 = vst [vmem:[#allocation13_spill] sm:$0xff] %v5137_v30  ;;  %v2788_v19 = vsub.f32 1.5, %v2787_v46  ;;  %v2344_v2 = vadd.f32 %v2173_v23, %v1869_v57  ;;  %v1870_v55 = vadd.f32 %v1700_v53, %v4775_v17  ;;  %v1902_v11 = vadd.f32 %v1821_v26, %v4777_v40 }
 0x294   : > { %v3863_v38 = vpop.eup %3862  ;;  %v2533_v45 = vmul.f32 %v3859_v41, %v2532_v9  ;;  %v2487_v43 = vadd.f32 %v2471_v34, %v2455_v1  ;;  %v2727_v30 = vmul.f32 %v2439_v7, %v2439_v7  ;;  %v2376_v3 = vadd.f32 %v2294_v36, %v1901_v50 }
 0x295   : > { %v2789_v28 = vmul.f32 %v3861_v8, %v2788_v19  ;;  %v2541_v5 = vmul.f32 %v3863_v38, %v5118_v61  ;;  %v2392_v60 = vadd.f32 %v2344_v2, %v4941_v47  ;;  %v2424_v31 = vsub.f32 %v4941_v47, %v2344_v2  ;;  %v3865_v35 = vpop.eup %3864 }
 0x296   : > { %v2534_v62 = vmul.f32 %v2533_v45, %v5099_v44  ;;  %v5151_v57 = vadd.f32 1e-24, %v2487_v43  ;;  %v2743_v17 = vadd.f32 %v2727_v30, %v2711_v63  ;;  %v2408_v40 = vadd.f32 %v2376_v3, %v4943_v42 }
 0x297   : > { %v2790_v41 = vmul.f32 %v2789_v28, %v5101_v16  ;;  %v2542_v12 = vmul.f32 %v3863_v38, %v2541_v5  ;;  %v2797_v8 = vmul.f32 %v3865_v35, %v5120_v4  ;;  %v2794_v47 = vand.u32 2147483648, %v5101_v16 }
 0x298   : > { %v2536_v1 = vsel %vm2535_vm8, %v5099_v44, %v2534_v62  ;;  %3866 = vrsqrt.f32 %v5151_v57  ;;  %v2456_v23 = vmul.f32 %v2392_v60, %v2392_v60  ;;  %vm2547_vm12 = vcmp.eq.f32.partialorder %v5118_v61, inf }
 0x299   : > { %v2175_v36 = vpop.f32.mrf.mxu2  ;;  %v5164_v30 = vsel %vm2537_vm9, %v2538_v0, %v2536_v1  ;;  %v2792_v5 = vsel %vm2791_vm10, %v5101_v16, %v2790_v41  ;;  %v2543_v46 = vmul.f32 0.5, %v2542_v12  ;;  %v2798_v63 = vmul.f32 %v3865_v35, %v2797_v8  ;;  %v1703_v0 = vpop.f32.mrf.mxu0 }
 0x29a   : > { %v5169_v53 = vsel %vm2793_vm11, %v2794_v47, %v2792_v5  ;;  %v5172_v26 = vadd.f32 1e-24, %v2743_v17  ;;  %v2296_v9 = vpop.f32.mrf.mxu3  ;;  %v2440_v20 = vsub.f32 %v4943_v42, %v2376_v3  ;;  %v2472_v44 = vmul.f32 %v2408_v40, %v2408_v40  ;;  %v1824_v50 = vpop.f32.mrf.mxu1  ;;  %v5839_v42 = vld [vmem:[#allocation33_spill] sm:$0xff] }
 0x29b   : > { %v2544_v7 = vsub.f32 1.5, %v2543_v46  ;;  %v2799_v34 = vmul.f32 0.5, %v2798_v63  ;;  %vm2549_vm13 = vcmp.eq.f32.partialorder %v5118_v61, 0.0  ;;  %v2550_v16 = vand.u32 2147483648, %v5118_v61 }
 0x29c   : > { %3868 = vrsqrt.f32 %v5172_v26  ;;  %v2712_v19 = vmul.f32 %v2424_v31, %v2424_v31  ;;  %v2488_v43 = vadd.f32 %v2472_v44, %v2456_v23  ;;  %v2728_v28 = vmul.f32 %v2440_v20, %v2440_v20 }
 0x29d   : > { %v2545_v2 = vmul.f32 %v3863_v38, %v2544_v7  ;;  %v2800_v45 = vsub.f32 1.5, %v2799_v34  ;;  %v2345_v62 = vadd.f32 %v2175_v36, %v1870_v55  ;;  %v2377_v17 = vadd.f32 %v2296_v9, %v1902_v11 }
 0x29e   : > { %v3867_v60 = vpop.eup %3866  ;;  %v1871_v41 = vadd.f32 %v1703_v0, %v4784_v27  ;;  %v1903_v3 = vadd.f32 %v1824_v50, %v5839_v42  ;;  %v5182_v1 = vadd.f32 1e-24, %v2488_v43  ;;  %v2744_v47 = vadd.f32 %v2728_v28, %v2712_v19 }
 0x29f   : > { %v2546_v40 = vmul.f32 %v2545_v2, %v5118_v61  ;;  %v2801_v12 = vmul.f32 %v3865_v35, %v2800_v45  ;;  %v2553_v8 = vmul.f32 %v3867_v60, %v5151_v57  ;;  %v2393_v38 = vadd.f32 %v2345_v62, %v4955_v32 }
 0x2a0   : > { %v2425_v31 = vsub.f32 %v4955_v32, %v2345_v62  ;;  %v2409_v55 = vadd.f32 %v2377_v17, %v4957_v24  ;;  %3870 = vrsqrt.f32 %v5182_v1  ;;  %vm2803_vm14 = vcmp.eq.f32.partialorder %v5120_v4, inf }
 0x2a1   : > { %v2178_v11 = vpop.f32.mrf.mxu2  ;;  %v2548_v27 = vsel %vm2547_vm12, %v5118_v61, %v2546_v40  ;;  %v2802_v23 = vmul.f32 %v2801_v12, %v5120_v4  ;;  %v2554_v35 = vmul.f32 %v3867_v60, %v2553_v8  ;;  %vm2805_vm15 = vcmp.eq.f32.partialorder %v5120_v4, 0.0 }
 0x2a2   : > { %v3869_v36 = vpop.eup %3868  ;;  %v5194_v5 = vsel %vm2549_vm13, %v2550_v16, %v2548_v27  ;;  %v2806_v32 = vand.u32 2147483648, %v5120_v4  ;;  %v5201_v7 = vadd.f32 1e-24, %v2744_v47  ;;  %v2457_v20 = vmul.f32 %v2393_v38, %v2393_v38  ;;  %v2299_v0 = vpop.f32.mrf.mxu3 }
 0x2a3   : > { %v2804_v46 = vsel %vm2803_vm14, %v5120_v4, %v2802_v23  ;;  %v2555_v63 = vmul.f32 0.5, %v2554_v35  ;;  %v2809_v9 = vmul.f32 %v3869_v36, %v5172_v26  ;;  %v2713_v61 = vmul.f32 %v2425_v31, %v2425_v31  ;;  %v1705_v4 = vpop.f32.mrf.mxu0 }
 0x2a4   : > { %v5204_v34 = vsel %vm2805_vm15, %v2806_v32, %v2804_v46  ;;  %v2441_v44 = vsub.f32 %v4957_v24, %v2377_v17  ;;  %vm2559_vm0 = vcmp.eq.f32.partialorder %v5151_v57, inf  ;;  %3872 = vrsqrt.f32 %v5201_v7  ;;  %v1826_v32 = vpop.f32.mrf.mxu1 }
 0x2a5   : > { %v2556_v50 = vsub.f32 1.5, %v2555_v63  ;;  %v2810_v16 = vmul.f32 %v3869_v36, %v2809_v9  ;;  %vm2561_vm1 = vcmp.eq.f32.partialorder %v5151_v57, 0.0  ;;  %v2562_v19 = vand.u32 2147483648, %v5151_v57 }
 0x2a6   : > { %v2473_v2 = vmul.f32 %v2409_v55, %v2409_v55  ;;  %v2729_v45 = vmul.f32 %v2441_v44, %v2441_v44  ;;  %v3871_v43 = vpop.eup %3870  ;;  %v2346_v42 = vadd.f32 %v2178_v11, %v1871_v41  ;;  %v2378_v24 = vadd.f32 %v2299_v0, %v1903_v3 }
 0x2a7   : > { %v2557_v28 = vmul.f32 %v3867_v60, %v2556_v50  ;;  %v2811_v62 = vmul.f32 0.5, %v2810_v16  ;;  %v2565_v17 = vmul.f32 %v3871_v43, %v5182_v1  ;;  %v1872_v8 = vadd.f32 %v1705_v4, %v4797_v29 }
 0x2a8   : > { %v2489_v40 = vadd.f32 %v2473_v2, %v2457_v20  ;;  %v2745_v12 = vadd.f32 %v2729_v45, %v2713_v61  ;;  %v2394_v31 = vadd.f32 %v2346_v42, %v4967_v13  ;;  %v2426_v55 = vsub.f32 %v4967_v13, %v2346_v42 }
 0x2a9   : > { %v2558_v47 = vmul.f32 %v2557_v28, %v5151_v57  ;;  %v2812_v38 = vsub.f32 1.5, %v2811_v62  ;;  %v2566_v60 = vmul.f32 %v3871_v43, %v2565_v17  ;;  %v2410_v3 = vadd.f32 %v2378_v24, %v4969_v54  ;;  %v2180_v11 = vpop.f32.mrf.mxu2 }
 0x2aa   : > { %v5220_v27 = vadd.f32 1e-24, %v2489_v40  ;;  %v5222_v41 = vadd.f32 1e-24, %v2745_v12  ;;  %v3873_v23 = vpop.eup %3872  ;;  %vm2815_vm2 = vcmp.eq.f32.partialorder %v5172_v26, inf  ;;  %vm2817_vm3 = vcmp.eq.f32.partialorder %v5172_v26, 0.0  ;;  %v2301_v44 = vpop.f32.mrf.mxu3 }
 0x2ab   : > { %v2560_v29 = vsel %vm2559_vm0, %v5151_v57, %v2558_v47  ;;  %v2813_v35 = vmul.f32 %v3869_v36, %v2812_v38  ;;  %v2567_v46 = vmul.f32 0.5, %v2566_v60  ;;  %v2821_v63 = vmul.f32 %v3873_v23, %v5201_v7 }
 0x2ac   : > { %v5232_v13 = vsel %vm2561_vm1, %v2562_v19, %v2560_v29  ;;  %3874 = vrsqrt.f32 %v5220_v27  ;;  %v2818_v20 = vand.u32 2147483648, %v5172_v26  ;;  %vm2571_vm4 = vcmp.eq.f32.partialorder %v5182_v1, inf }
 0x2ad   : > { %v2814_v9 = vmul.f32 %v2813_v35, %v5172_v26  ;;  %vm2573_vm5 = vcmp.eq.f32.partialorder %v5182_v1, 0.0  ;;  %v2568_v36 = vsub.f32 1.5, %v2567_v46  ;;  %v2822_v61 = vmul.f32 %v3873_v23, %v2821_v63 }
 0x2ae   : > { %3876 = vrsqrt.f32 %v5222_v41  ;;  %v2458_v57 = vmul.f32 %v2394_v31, %v2394_v31  ;;  %v2574_v50 = vand.u32 2147483648, %v5182_v1  ;;  %v2714_v16 = vmul.f32 %v2426_v55, %v2426_v55 }
 0x2af   : > { %v2816_v0 = vsel %vm2815_vm2, %v5172_v26, %v2814_v9  ;;  %v2442_v4 = vsub.f32 %v4969_v54, %v2378_v24  ;;  %v2569_v2 = vmul.f32 %v3871_v43, %v2568_v36  ;;  %v2823_v45 = vmul.f32 0.5, %v2822_v61  ;;  %v1708_v24 = vpop.f32.mrf.mxu0  ;;  %v5840_v61 = vld [vmem:[#allocation34_spill] sm:$0xff] }
 0x2b0   : > { %v5248_v19 = vsel %vm2817_vm3, %v2818_v20, %v2816_v0  ;;  %v2474_v28 = vmul.f32 %v2410_v3, %v2410_v3  ;;  %vm2827_vm6 = vcmp.eq.f32.partialorder %v5201_v7, inf  ;;  %v1904_v42 = vadd.f32 %v1826_v32, %v4799_v10 }
 0x2b1   : > { %v2730_v62 = vmul.f32 %v2442_v4, %v2442_v4  ;;  %v2347_v17 = vadd.f32 %v2180_v11, %v1872_v8  ;;  %v2570_v12 = vmul.f32 %v2569_v2, %v5182_v1  ;;  %v2824_v47 = vsub.f32 1.5, %v2823_v45  ;;  %v2183_v11 = vpop.f32.mrf.mxu2 }
 0x2b2   : > { %v3875_v40 = vpop.eup %3874  ;;  %vm2829_vm7 = vcmp.eq.f32.partialorder %v5201_v7, 0.0  ;;  %v2490_v54 = vadd.f32 %v2474_v28, %v2458_v57  ;;  %v2379_v3 = vadd.f32 %v2301_v44, %v1904_v42  ;;  %v2830_v9 = vand.u32 2147483648, %v5201_v7  ;;  %v5841_v44 = vld [vmem:[#allocation35_spill] sm:$0xff] }
 0x2b3   : > { %v2577_v26 = vmul.f32 %v3875_v40, %v5220_v27  ;;  %v2746_v38 = vadd.f32 %v2730_v62, %v2714_v16  ;;  %v2395_v43 = vadd.f32 %v2347_v17, %v4981_v14  ;;  %v2427_v31 = vsub.f32 %v4981_v14, %v2347_v17  ;;  %v1829_v14 = vpop.f32.mrf.mxu1 }
 0x2b4   : > { %v3877_v55 = vpop.eup %3876  ;;  %v2572_v10 = vsel %vm2571_vm4, %v5182_v1, %v2570_v12  ;;  %v2825_v8 = vmul.f32 %v3873_v23, %v2824_v47  ;;  %v5260_v60 = vadd.f32 1e-24, %v2490_v54  ;;  %vm2583_vm8 = vcmp.eq.f32.partialorder %v5220_v27, inf }
 0x2b5   : > { %v5264_v29 = vsel %vm2573_vm5, %v2574_v50, %v2572_v10  ;;  %v2578_v35 = vmul.f32 %v3875_v40, %v2577_v26  ;;  %v2833_v32 = vmul.f32 %v3877_v55, %v5222_v41  ;;  %v5267_v46 = vadd.f32 1e-24, %v2746_v38  ;;  %v2304_v50 = vpop.f32.mrf.mxu3 }
 0x2b6   : > { %v2826_v63 = vmul.f32 %v2825_v8, %v5201_v7  ;;  %3878 = vrsqrt.f32 %v5260_v60  ;;  %vm2585_vm9 = vcmp.eq.f32.partialorder %v5220_v27, 0.0  ;;  %v2586_v1 = vand.u32 2147483648, %v5220_v27 }
 0x2b7   : > { %v2579_v23 = vmul.f32 0.5, %v2578_v35  ;;  %v2834_v20 = vmul.f32 %v3877_v55, %v2833_v32  ;;  %3880 = vrsqrt.f32 %v5267_v46  ;;  %vm2839_vm10 = vcmp.eq.f32.partialorder %v5222_v41, inf  ;;  %v1710_v8 = vpop.f32.mrf.mxu0 }
 0x2b8   : > { %v2828_v36 = vsel %vm2827_vm6, %v5201_v7, %v2826_v63  ;;  %v1873_v57 = vadd.f32 %v1708_v24, %v5840_v61  ;;  %v1905_v0 = vadd.f32 %v1829_v14, %v5841_v44  ;;  %v2459_v45 = vmul.f32 %v2395_v43, %v2395_v43 }
 0x2b9   : > { %v5284_v16 = vsel %vm2829_vm7, %v2830_v9, %v2828_v36  ;;  %v2580_v4 = vsub.f32 1.5, %v2579_v23  ;;  %v2835_v2 = vmul.f32 0.5, %v2834_v20  ;;  %v2715_v28 = vmul.f32 %v2427_v31, %v2427_v31  ;;  %v2185_v63 = vpop.f32.mrf.mxu2 }
 0x2ba   : > { %v2411_v62 = vadd.f32 %v2379_v3, %v4983_v6  ;;  %v2443_v42 = vsub.f32 %v4983_v6, %v2379_v3  ;;  %v2348_v17 = vadd.f32 %v2183_v11, %v1873_v57  ;;  %vm2841_vm11 = vcmp.eq.f32.partialorder %v5222_v41, 0.0 }
 0x2bb   : > { %v2581_v12 = vmul.f32 %v3875_v40, %v2580_v4  ;;  %v2836_v47 = vsub.f32 1.5, %v2835_v2  ;;  %v2380_v54 = vadd.f32 %v2304_v50, %v1905_v0  ;;  %v2842_v3 = vand.u32 2147483648, %v5222_v41  ;;  %v1831_v44 = vpop.f32.mrf.mxu1 }
 0x2bc   : > { %v3879_v24 = vpop.eup %3878  ;;  %v2475_v26 = vmul.f32 %v2411_v62, %v2411_v62  ;;  %v2731_v38 = vmul.f32 %v2443_v42, %v2443_v42  ;;  %v2396_v7 = vadd.f32 %v2348_v17, %v4991_v59  ;;  %v2428_v10 = vsub.f32 %v4991_v59, %v2348_v17 }
 0x2bd   : > { %v3881_v43 = vpop.eup %3880  ;;  %v2582_v31 = vmul.f32 %v2581_v12, %v5220_v27  ;;  %v2837_v35 = vmul.f32 %v3877_v55, %v2836_v47  ;;  %v2589_v6 = vmul.f32 %v3879_v24, %v5260_v60  ;;  %v2412_v40 = vadd.f32 %v2380_v54, %v4993_v21 }
 0x2be   : > { %v2845_v11 = vmul.f32 %v3881_v43, %v5267_v46  ;;  %v2491_v32 = vadd.f32 %v2475_v26, %v2459_v45  ;;  %v2747_v14 = vadd.f32 %v2731_v38, %v2715_v28  ;;  %v2460_v20 = vmul.f32 %v2396_v7, %v2396_v7 }
 0x2bf   : > { %v2584_v59 = vsel %vm2583_vm8, %v5220_v27, %v2582_v31  ;;  %v2838_v9 = vmul.f32 %v2837_v35, %v5222_v41  ;;  %v2590_v23 = vmul.f32 %v3879_v24, %v2589_v6  ;;  %v2444_v4 = vsub.f32 %v4993_v21, %v2380_v54  ;;  %v1713_v7 = vpop.f32.mrf.mxu0 }
 0x2c0   : > { %v5302_v55 = vsel %vm2585_vm9, %v2586_v1, %v2584_v59  ;;  %v2846_v36 = vmul.f32 %v3881_v43, %v2845_v11  ;;  %v5304_v61 = vadd.f32 1e-24, %v2491_v32  ;;  %v5306_v57 = vadd.f32 1e-24, %v2747_v14  ;;  %v2306_v1 = vpop.f32.mrf.mxu3 }
 0x2c1   : > { %v2840_v0 = vsel %vm2839_vm10, %v5222_v41, %v2838_v9  ;;  %v2591_v50 = vmul.f32 0.5, %v2590_v23  ;;  %v2476_v2 = vmul.f32 %v2412_v40, %v2412_v40  ;;  %v2716_v62 = vmul.f32 %v2428_v10, %v2428_v10 }
 0x2c2   : > { %v5314_v45 = vsel %vm2841_vm11, %v2842_v3, %v2840_v0  ;;  %v2847_v27 = vmul.f32 0.5, %v2846_v36  ;;  %3882 = vrsqrt.f32 %v5304_v61  ;;  %vm2595_vm12 = vcmp.eq.f32.partialorder %v5260_v60, inf  ;;  %v2188_v3 = vpop.f32.mrf.mxu2 }
 0x2c3   : > { %v2592_v28 = vsub.f32 1.5, %v2591_v50  ;;  %3884 = vrsqrt.f32 %v5306_v57  ;;  %vm2597_vm13 = vcmp.eq.f32.partialorder %v5260_v60, 0.0  ;;  %v1874_v21 = vadd.f32 %v1710_v8, %v4817_v39  ;;  %v1834_v9 = vpop.f32.mrf.mxu1 }
 0x2c4   : > { %v2848_v42 = vsub.f32 1.5, %v2847_v27  ;;  %v2598_v41 = vand.u32 2147483648, %v5260_v60  ;;  %v2492_v12 = vadd.f32 %v2476_v2, %v2460_v20  ;;  %v2732_v47 = vmul.f32 %v2444_v4, %v2444_v4  ;;  %v5842_v2 = vld [vmem:[#allocation36_spill] sm:$0xff] }
 0x2c5   : > { %v2593_v17 = vmul.f32 %v3879_v24, %v2592_v28  ;;  %vm2851_vm14 = vcmp.eq.f32.partialorder %v5267_v46, inf  ;;  %v1906_v26 = vadd.f32 %v1831_v44, %v4819_v18  ;;  %v2349_v38 = vadd.f32 %v2185_v63, %v1874_v21 }
 0x2c6   : > { %v2849_v54 = vmul.f32 %v3881_v43, %v2848_v42  ;;  %v2854_v31 = vand.u32 2147483648, %v5267_v46  ;;  %v5326_v35 = vadd.f32 1e-24, %v2492_v12  ;;  %v2748_v6 = vadd.f32 %v2732_v47, %v2716_v62 }
 0x2c7   : > { %v2594_v10 = vmul.f32 %v2593_v17, %v5260_v60  ;;  %v2397_v8 = vadd.f32 %v2349_v38, %v5005_v56  ;;  %v2429_v43 = vsub.f32 %v5005_v56, %v2349_v38  ;;  %v2381_v40 = vadd.f32 %v2306_v1, %v1906_v26 }
 0x2c8   : > { %v3883_v39 = vpop.eup %3882  ;;  %v2850_v24 = vmul.f32 %v2849_v54, %v5267_v46  ;;  %3886 = vrsqrt.f32 %v5326_v35  ;;  %v1875_v14 = vadd.f32 %v1713_v7, %v4826_v49  ;;  %vm2853_vm15 = vcmp.eq.f32.partialorder %v5267_v46, 0.0  ;;  %v2309_v50 = vpop.f32.mrf.mxu3 }
 0x2c9   : > { %v3885_v11 = vpop.eup %3884  ;;  %v2596_v18 = vsel %vm2595_vm12, %v5260_v60, %v2594_v10  ;;  %v2601_v32 = vmul.f32 %v3883_v39, %v5304_v61  ;;  %v5348_v36 = vadd.f32 1e-24, %v2748_v6  ;;  %vm2607_vm0 = vcmp.eq.f32.partialorder %v5304_v61, inf }
 0x2ca   : > { %v5339_v63 = vsel %vm2597_vm13, %v2598_v41, %v2596_v18  ;;  %v2852_v56 = vsel %vm2851_vm14, %v5267_v46, %v2850_v24  ;;  %v2857_v59 = vmul.f32 %v3885_v11, %v5306_v57  ;;  %v2350_v44 = vadd.f32 %v2188_v3, %v1875_v14 }
 0x2cb   : > { %v5346_v23 = vsel %vm2853_vm15, %v2854_v31, %v2852_v56  ;;  %v2602_v20 = vmul.f32 %v3883_v39, %v2601_v32  ;;  %v2461_v60 = vmul.f32 %v2397_v8, %v2397_v8  ;;  %v2413_v0 = vadd.f32 %v2381_v40, %v5007_v22 }
 0x2cc   : > { %v2858_v49 = vmul.f32 %v3885_v11, %v2857_v59  ;;  %vm2609_vm1 = vcmp.eq.f32.partialorder %v5304_v61, 0.0  ;;  %v2610_v46 = vand.u32 2147483648, %v5304_v61  ;;  %3888 = vrsqrt.f32 %v5348_v36 }
 0x2cd   : > { %v2603_v4 = vmul.f32 0.5, %v2602_v20  ;;  %v1907_v27 = vadd.f32 %v1834_v9, %v5842_v2  ;;  %v2717_v28 = vmul.f32 %v2429_v43, %v2429_v43  ;;  %v2445_v62 = vsub.f32 %v5007_v22, %v2381_v40  ;;  %v1715_v43 = vpop.f32.mrf.mxu0 }
 0x2ce   : > { %v2859_v1 = vmul.f32 0.5, %v2858_v49  ;;  %v2477_v42 = vmul.f32 %v2413_v0, %v2413_v0  ;;  %v3887_v21 = vpop.eup %3886  ;;  %v2398_v41 = vadd.f32 %v2350_v44, %v5017_v33  ;;  %v2430_v12 = vsub.f32 %v5017_v33, %v2350_v44  ;;  %v2190_v49 = vpop.f32.mrf.mxu2 }
 0x2cf   : > { %v2604_v17 = vsub.f32 1.5, %v2603_v4  ;;  %v2382_v47 = vadd.f32 %v2309_v50, %v1907_v27  ;;  %v2613_v26 = vmul.f32 %v3887_v21, %v5326_v35  ;;  %v2733_v7 = vmul.f32 %v2445_v62, %v2445_v62 }
 0x2d0   : > { %v2860_v54 = vsub.f32 1.5, %v2859_v1  ;;  %v2493_v38 = vadd.f32 %v2477_v42, %v2461_v60  ;;  %vm2863_vm2 = vcmp.eq.f32.partialorder %v5306_v57, inf  ;;  %vm2865_vm3 = vcmp.eq.f32.partialorder %v5306_v57, 0.0  ;;  %v2311_v4 = vpop.f32.mrf.mxu3 }
 0x2d1   : > { %v2605_v10 = vmul.f32 %v3883_v39, %v2604_v17  ;;  %v2414_v22 = vadd.f32 %v2382_v47, %v5019_v37  ;;  %v2614_v6 = vmul.f32 %v3887_v21, %v2613_v26  ;;  %v2749_v8 = vadd.f32 %v2733_v7, %v2717_v28 }
 0x2d2   : > { %v2861_v31 = vmul.f32 %v3885_v11, %v2860_v54  ;;  %v5363_v24 = vadd.f32 1e-24, %v2493_v38  ;;  %v3889_v33 = vpop.eup %3888  ;;  %v2462_v3 = vmul.f32 %v2398_v41, %v2398_v41  ;;  %v2446_v18 = vsub.f32 %v5019_v37, %v2382_v47  ;;  %v1836_v11 = vpop.f32.mrf.mxu1 }
 0x2d3   : > { %v2606_v40 = vmul.f32 %v2605_v10, %v5304_v61  ;;  %v2478_v32 = vmul.f32 %v2414_v22, %v2414_v22  ;;  %v2615_v14 = vmul.f32 0.5, %v2614_v6  ;;  %v2869_v56 = vmul.f32 %v3889_v33, %v5348_v36 }
 0x2d4   : > { %v2862_v39 = vmul.f32 %v2861_v31, %v5306_v57  ;;  %3890 = vrsqrt.f32 %v5363_v24  ;;  %v2866_v9 = vand.u32 2147483648, %v5306_v57  ;;  %v2718_v20 = vmul.f32 %v2430_v12, %v2430_v12 }
 0x2d5   : > { %v2608_v59 = vsel %vm2607_vm0, %v5304_v61, %v2606_v40  ;;  %v1876_v44 = vadd.f32 %v1715_v43, %v4839_v48  ;;  %v2616_v0 = vsub.f32 1.5, %v2615_v14  ;;  %v2870_v50 = vmul.f32 %v3889_v33, %v2869_v56  ;;  %v1718_v31 = vpop.f32.mrf.mxu0 }
 0x2d6   : > { %v5377_v37 = vsel %vm2609_vm1, %v2610_v46, %v2608_v59  ;;  %v2864_v60 = vsel %vm2863_vm2, %v5306_v57, %v2862_v39  ;;  %v5386_v27 = vadd.f32 1e-24, %v2749_v8  ;;  %v2494_v1 = vadd.f32 %v2478_v32, %v2462_v3  ;;  %v2193_v32 = vpop.f32.mrf.mxu2 }
 0x2d7   : > { %v5384_v2 = vsel %vm2865_vm3, %v2866_v9, %v2864_v60  ;;  %v2734_v48 = vmul.f32 %v2446_v18, %v2446_v18  ;;  %v2617_v28 = vmul.f32 %v3887_v21, %v2616_v0  ;;  %v2871_v62 = vmul.f32 0.5, %v2870_v50  ;;  %v5844_v50 = vld [vmem:[#allocation38_spill] sm:$0xff] }
 0x2d8   : > { %v2351_v61 = vadd.f32 %v2190_v49, %v1876_v44  ;;  %vm2619_vm4 = vcmp.eq.f32.partialorder %v5326_v35, inf  ;;  %v2622_v46 = vand.u32 2147483648, %v5326_v35  ;;  %3892 = vrsqrt.f32 %v5386_v27 }
 0x2d9   : > { %v1908_v42 = vadd.f32 %v1836_v11, %v4841_v52  ;;  %v2618_v57 = vmul.f32 %v2617_v28, %v5326_v35  ;;  %v2872_v41 = vsub.f32 1.5, %v2871_v62  ;;  %v5393_v12 = vadd.f32 1e-24, %v2494_v1  ;;  %v2314_v11 = vpop.f32.mrf.mxu3 }
 0x2da   : > { %v3891_v17 = vpop.eup %3890  ;;  %v2750_v47 = vadd.f32 %v2734_v48, %v2718_v20  ;;  %v2399_v21 = vadd.f32 %v2351_v61, %v5031_v25  ;;  %v2431_v26 = vsub.f32 %v5031_v25, %v2351_v61  ;;  %vm2621_vm5 = vcmp.eq.f32.partialorder %v5326_v35, 0.0  ;;  %v5843_v20 = vld [vmem:[#allocation37_spill] sm:$0xff] }
 0x2db   : > { %v2625_v54 = vmul.f32 %v3891_v17, %v5363_v24  ;;  %v2383_v38 = vadd.f32 %v2311_v4, %v1908_v42  ;;  %v2620_v7 = vsel %vm2619_vm4, %v5326_v35, %v2618_v57  ;;  %v2873_v10 = vmul.f32 %v3889_v33, %v2872_v41  ;;  %v1839_v35 = vpop.f32.mrf.mxu1 }
 0x2dc   : > { %3894 = vrsqrt.f32 %v5393_v12  ;;  %v5401_v52 = vsel %vm2621_vm5, %v2622_v46, %v2620_v7  ;;  %vm2875_vm6 = vcmp.eq.f32.partialorder %v5348_v36, inf  ;;  %vm2877_vm7 = vcmp.eq.f32.partialorder %v5348_v36, 0.0 }
 0x2dd   : > { %v2626_v22 = vmul.f32 %v3891_v17, %v2625_v54  ;;  %v2874_v6 = vmul.f32 %v2873_v10, %v5348_v36  ;;  %v2878_v25 = vand.u32 2147483648, %v5348_v36  ;;  %vm2631_vm8 = vcmp.eq.f32.partialorder %v5363_v24, inf  ;;  %v5846_v10 = vld [vmem:[#allocation4_spill] sm:$0xff] }
 0x2de   : > { %v5408_v8 = vadd.f32 1e-24, %v2750_v47  ;;  %v3893_v43 = vpop.eup %3892  ;;  %v2463_v40 = vmul.f32 %v2399_v21, %v2399_v21  ;;  %v2415_v3 = vadd.f32 %v2383_v38, %v5033_v51  ;;  %v2447_v18 = vsub.f32 %v5033_v51, %v2383_v38  ;;  %v5845_v47 = vld [vmem:[#allocation7_spill] sm:$0xff] }
 0x2df   : > { %v2627_v33 = vmul.f32 0.5, %v2626_v22  ;;  %v2876_v39 = vsel %vm2875_vm6, %v5348_v36, %v2874_v6  ;;  %v2881_v14 = vmul.f32 %v3893_v43, %v5386_v27  ;;  %v2719_v56 = vmul.f32 %v2431_v26, %v2431_v26 }
 0x2e0   : > { %3896 = vrsqrt.f32 %v5408_v8  ;;  %v5417_v59 = vsel %vm2877_vm7, %v2878_v25, %v2876_v39  ;;  %vm2633_vm9 = vcmp.eq.f32.partialorder %v5363_v24, 0.0  ;;  %v1877_v44 = vadd.f32 %v1718_v31, %v5843_v20 }
 0x2e1   : > { %v2628_v9 = vsub.f32 1.5, %v2627_v33  ;;  %v2882_v51 = vmul.f32 %v3893_v43, %v2881_v14  ;;  %v2479_v60 = vmul.f32 %v2415_v3, %v2415_v3  ;;  %v2735_v0 = vmul.f32 %v2447_v18, %v2447_v18  ;;  %v2195_v14 = vpop.f32.mrf.mxu2 }
 0x2e2   : > { %v3895_v49 = vpop.eup %3894  ;;  %v1909_v4 = vadd.f32 %v1839_v35, %v5844_v50  ;;  %v2634_v48 = vand.u32 2147483648, %v5363_v24  ;;  %v2352_v62 = vadd.f32 %v2193_v32, %v1877_v44  ;;  %vm2887_vm10 = vcmp.eq.f32.partialorder %v5386_v27, inf  ;;  %v1720_v35 = vpop.f32.mrf.mxu0  ;;  %v5847_v44 = vld [vmem:[#allocation39_spill] sm:$0xff] }
 0x2e3   : > { %v2629_v1 = vmul.f32 %v3891_v17, %v2628_v9  ;;  %v2637_v28 = vmul.f32 %v3895_v49, %v5393_v12  ;;  %v2883_v36 = vmul.f32 0.5, %v2882_v51  ;;  %v2495_v61 = vadd.f32 %v2479_v60, %v2463_v40  ;;  %v1841_v3 = vpop.f32.mrf.mxu1 }
 0x2e4   : > { %v2751_v46 = vadd.f32 %v2735_v0, %v2719_v56  ;;  %v2384_v42 = vadd.f32 %v2314_v11, %v1909_v4  ;;  %v2400_v54 = vadd.f32 %v2352_v62, %v5845_v47  ;;  %v2432_v21 = vsub.f32 %v5845_v47, %v2352_v62  ;;  %v5848_v4 = vld [vmem:[#allocation40_spill] sm:$0xff] }
 0x2e5   : > { %v2630_v57 = vmul.f32 %v2629_v1, %v5363_v24  ;;  %v2638_v41 = vmul.f32 %v3895_v49, %v2637_v28  ;;  %v2884_v38 = vsub.f32 1.5, %v2883_v36  ;;  %v5427_v7 = vadd.f32 1e-24, %v2495_v61 }
 0x2e6   : > { %v3897_v26 = vpop.eup %3896  ;;  %v5429_v17 = vadd.f32 1e-24, %v2751_v46  ;;  %v2416_v22 = vadd.f32 %v2384_v42, %v5846_v10  ;;  %vm2889_vm11 = vcmp.eq.f32.partialorder %v5386_v27, 0.0  ;;  %v2890_v18 = vand.u32 2147483648, %v5386_v27 }
 0x2e7   : > { %v2632_v31 = vsel %vm2631_vm8, %v5363_v24, %v2630_v57  ;;  %v2639_v6 = vmul.f32 0.5, %v2638_v41  ;;  %v2893_v25 = vmul.f32 %v3897_v26, %v5408_v8  ;;  %v2885_v40 = vmul.f32 %v3893_v43, %v2884_v38  ;;  %v2316_v43 = vpop.f32.mrf.mxu3 }
 0x2e8   : > { %v5439_v33 = vsel %vm2633_vm9, %v2634_v48, %v2632_v31  ;;  %3898 = vrsqrt.f32 %v5427_v7  ;;  %vm2643_vm12 = vcmp.eq.f32.partialorder %v5393_v12, inf  ;;  %vm2645_vm13 = vcmp.eq.f32.partialorder %v5393_v12, 0.0 }
 0x2e9   : > { %v2640_v32 = vsub.f32 1.5, %v2639_v6  ;;  %v2894_v39 = vmul.f32 %v3897_v26, %v2893_v25  ;;  %v2886_v56 = vmul.f32 %v2885_v40, %v5386_v27  ;;  %3900 = vrsqrt.f32 %v5429_v17 }
 0x2ea   : > { %v2464_v24 = vmul.f32 %v2400_v54, %v2400_v54  ;;  %v2720_v20 = vmul.f32 %v2432_v21, %v2432_v21  ;;  %v1878_v51 = vadd.f32 %v1720_v35, %v5847_v44  ;;  %v2448_v0 = vsub.f32 %v5846_v10, %v2384_v42  ;;  %v1723_v35 = vpop.f32.mrf.mxu0 }
 0x2eb   : > { %v2641_v11 = vmul.f32 %v3895_v49, %v2640_v32  ;;  %v2895_v9 = vmul.f32 0.5, %v2894_v39  ;;  %v2888_v60 = vsel %vm2887_vm10, %v5386_v27, %v2886_v56  ;;  %v2480_v50 = vmul.f32 %v2416_v22, %v2416_v22 }
 0x2ec   : > { %v1910_v1 = vadd.f32 %v1841_v3, %v5848_v4  ;;  %v5456_v48 = vsel %vm2889_vm11, %v2890_v18, %v2888_v60  ;;  %v2353_v62 = vadd.f32 %v2195_v14, %v1878_v51  ;;  %v2646_v61 = vand.u32 2147483648, %v5393_v12  ;;  %v1844_v3 = vpop.f32.mrf.mxu1  ;;  %v2198_v14 = vpop.f32.mrf.mxu2  ;;  %v5849_v51 = vld [vmem:[#allocation41_spill] sm:$0xff] }
 0x2ed   : > { %v2642_v28 = vmul.f32 %v2641_v11, %v5393_v12  ;;  %v2896_v49 = vsub.f32 1.5, %v2895_v9  ;;  %v2496_v46 = vadd.f32 %v2480_v50, %v2464_v24  ;;  %v2736_v57 = vmul.f32 %v2448_v0, %v2448_v0 }
 0x2ee   : > { %v3899_v36 = vpop.eup %3898  ;;  %v2385_v41 = vadd.f32 %v2316_v43, %v1910_v1  ;;  %v2401_v27 = vadd.f32 %v2353_v62, %v5055_v15  ;;  %v2433_v31 = vsub.f32 %v5055_v15, %v2353_v62  ;;  %vm2899_vm14 = vcmp.eq.f32.partialorder %v5408_v8, inf }
 0x2ef   : > { %v2644_v42 = vsel %vm2643_vm12, %v5393_v12, %v2642_v28  ;;  %v2897_v47 = vmul.f32 %v3897_v26, %v2896_v49  ;;  %v2649_v54 = vmul.f32 %v3899_v36, %v5427_v7  ;;  %v3901_v21 = vpop.eup %3900  ;;  %v5469_v10 = vadd.f32 1e-24, %v2496_v46  ;;  %v2319_v9 = vpop.f32.mrf.mxu3 }
 0x2f0   : > { %v5467_v38 = vsel %vm2645_vm13, %v2646_v61, %v2644_v42  ;;  %v2752_v22 = vadd.f32 %v2736_v57, %v2720_v20  ;;  %v2905_v26 = vmul.f32 %v3901_v21, %v5429_v17  ;;  %vm2901_vm15 = vcmp.eq.f32.partialorder %v5408_v8, 0.0 }
 0x2f1   : > { %v2898_v6 = vmul.f32 %v2897_v47, %v5408_v8  ;;  %v2650_v25 = vmul.f32 %v3899_v36, %v2649_v54  ;;  %v2902_v40 = vand.u32 2147483648, %v5408_v8  ;;  %3902 = vrsqrt.f32 %v5469_v10  ;;  %v5851_v54 = vld [vmem:[#allocation42_spill] sm:$0xff] }
 0x2f2   : > { %v2465_v12 = vmul.f32 %v2401_v27, %v2401_v27  ;;  %v2906_v15 = vmul.f32 %v3901_v21, %v2905_v26  ;;  %v5479_v39 = vadd.f32 1e-24, %v2752_v22  ;;  %v2721_v24 = vmul.f32 %v2433_v31, %v2433_v31 }
 0x2f3   : > { %v2900_v18 = vsel %vm2899_vm14, %v5408_v8, %v2898_v6  ;;  %v2651_v32 = vmul.f32 0.5, %v2650_v25  ;;  %v2417_v43 = vadd.f32 %v2385_v41, %v5057_v58  ;;  %v2449_v11 = vsub.f32 %v5057_v58, %v2385_v41  ;;  %v5850_v41 = vld [vmem:[#allocation5_spill] sm:$0xff] }
 0x2f4   : > { %v5481_v56 = vsel %vm2901_vm15, %v2902_v40, %v2900_v18  ;;  %v2907_v44 = vmul.f32 0.5, %v2906_v15  ;;  %3904 = vrsqrt.f32 %v5479_v39  ;;  %v1879_v60 = vadd.f32 %v1723_v35, %v5849_v51  ;;  %v1725_v35 = vpop.f32.mrf.mxu0  ;;  %v1846_v18 = vpop.f32.mrf.mxu1 }
 0x2f5   : > { %v2652_v20 = vsub.f32 1.5, %v2651_v32  ;;  %vm2655_vm0 = vcmp.eq.f32.partialorder %v5427_v7, inf  ;;  %vm2657_vm1 = vcmp.eq.f32.partialorder %v5427_v7, 0.0  ;;  %v2481_v8 = vmul.f32 %v2417_v43, %v2417_v43  ;;  %v5852_v43 = vld [vmem:[#allocation43_spill] sm:$0xff] }
 0x2f6   : > { %v2737_v0 = vmul.f32 %v2449_v11, %v2449_v11  ;;  %v2658_v4 = vand.u32 2147483648, %v5427_v7  ;;  %v2908_v1 = vsub.f32 1.5, %v2907_v44  ;;  %v2354_v28 = vadd.f32 %v2198_v14, %v1879_v60  ;;  %v2200_v14 = vpop.f32.mrf.mxu2  ;;  %v5853_v60 = vld [vmem:[#allocation44_spill] sm:$0xff] }
 0x2f7   : > { %v2653_v50 = vmul.f32 %v3899_v36, %v2652_v20  ;;  %v3903_v49 = vpop.eup %3902  ;;  %vm2911_vm2 = vcmp.eq.f32.partialorder %v5429_v17, inf  ;;  %vm2913_vm3 = vcmp.eq.f32.partialorder %v5429_v17, 0.0  ;;  %v2497_v58 = vadd.f32 %v2481_v8, %v2465_v12 }
 0x2f8   : > { %v2753_v62 = vadd.f32 %v2737_v0, %v2721_v24  ;;  %v2909_v46 = vmul.f32 %v3901_v21, %v2908_v1  ;;  %v2661_v57 = vmul.f32 %v3903_v49, %v5469_v10  ;;  %v2402_v42 = vadd.f32 %v2354_v28, %v5850_v41 }
 0x2f9   : > { %v2654_v61 = vmul.f32 %v2653_v50, %v5427_v7  ;;  %v5495_v47 = vadd.f32 1e-24, %v2497_v58  ;;  %v1911_v27 = vadd.f32 %v1844_v3, %v5851_v54  ;;  %v2434_v22 = vsub.f32 %v5850_v41, %v2354_v28  ;;  %v5854_v50 = vld [vmem:[#allocation6_spill] sm:$0xff] }
 0x2fa   : > { %v5497_v36 = vadd.f32 1e-24, %v2753_v62  ;;  %v3905_v31 = vpop.eup %3904  ;;  %v2910_v25 = vmul.f32 %v2909_v46, %v5429_v17  ;;  %v2914_v21 = vand.u32 2147483648, %v5429_v17  ;;  %v2662_v26 = vmul.f32 %v3903_v49, %v2661_v57 }
 0x2fb   : > { %v2656_v6 = vsel %vm2655_vm0, %v5427_v7, %v2654_v61  ;;  %v2917_v12 = vmul.f32 %v3905_v31, %v5479_v39  ;;  %3906 = vrsqrt.f32 %v5495_v47  ;;  %v2386_v3 = vadd.f32 %v2319_v9, %v1911_v27  ;;  %v2321_v9 = vpop.f32.mrf.mxu3 }
 0x2fc   : > { %v5508_v40 = vsel %vm2657_vm1, %v2658_v4, %v2656_v6  ;;  %v2912_v32 = vsel %vm2911_vm2, %v5429_v17, %v2910_v25  ;;  %v2663_v15 = vmul.f32 0.5, %v2662_v26  ;;  %vm2667_vm4 = vcmp.eq.f32.partialorder %v5469_v10, inf  ;;  %v5856_v25 = vld [vmem:[#allocation9_spill] sm:$0xff] }
 0x2fd   : > { %vm2669_vm5 = vcmp.eq.f32.partialorder %v5469_v10, 0.0  ;;  %v5519_v7 = vsel %vm2913_vm3, %v2914_v21, %v2912_v32  ;;  %v2918_v24 = vmul.f32 %v3905_v31, %v2917_v12  ;;  %3908 = vrsqrt.f32 %v5497_v36 }
 0x2fe   : > { %v1880_v11 = vadd.f32 %v1725_v35, %v5852_v43  ;;  %v2664_v20 = vsub.f32 1.5, %v2663_v15  ;;  %v2466_v44 = vmul.f32 %v2402_v42, %v2402_v42  ;;  %v2722_v51 = vmul.f32 %v2434_v22, %v2434_v22  ;;  %v5855_v42 = vld [vmem:[#allocation8_spill] sm:$0xff] }
 0x2ff   : > { %v1912_v8 = vadd.f32 %v1846_v18, %v5853_v60  ;;  %v2919_v0 = vmul.f32 0.5, %v2918_v24  ;;  %v2418_v4 = vadd.f32 %v2386_v3, %v5854_v50  ;;  %v2450_v1 = vsub.f32 %v5854_v50, %v2386_v3 }
 0x300   : > { %v2355_v28 = vadd.f32 %v2200_v14, %v1880_v11  ;;  %v2665_v17 = vmul.f32 %v3903_v49, %v2664_v20  ;;  %v2670_v58 = vand.u32 2147483648, %v5469_v10  ;;  %vm2923_vm6 = vcmp.eq.f32.partialorder %v5479_v39, inf }
 0x301   : > { %v2387_v62 = vadd.f32 %v2321_v9, %v1912_v8  ;;  %v3907_v61 = vpop.eup %3906  ;;  %v2920_v46 = vsub.f32 1.5, %v2919_v0  ;;  %v2482_v57 = vmul.f32 %v2418_v4, %v2418_v4  ;;  %v2738_v41 = vmul.f32 %v2450_v1, %v2450_v1 }
 0x302   : > { %v2403_v54 = vadd.f32 %v2355_v28, %v5855_v42  ;;  %v2666_v27 = vmul.f32 %v2665_v17, %v5469_v10  ;;  %v2673_v22 = vmul.f32 %v3907_v61, %v5495_v47  ;;  %v2435_v6 = vsub.f32 %v5855_v42, %v2355_v28 }
 0x303   : > { %v2419_v21 = vadd.f32 %v2387_v62, %v5856_v25  ;;  %v3909_v49 = vpop.eup %3908  ;;  %v2921_v26 = vmul.f32 %v3905_v31, %v2920_v46  ;;  %v2926_v35 = vand.u32 2147483648, %v5479_v39  ;;  %v2498_v12 = vadd.f32 %v2482_v57, %v2466_v44 }
 0x304   : > { %v2754_v3 = vadd.f32 %v2738_v41, %v2722_v51  ;;  %v2668_v18 = vsel %vm2667_vm4, %v5469_v10, %v2666_v27  ;;  %v2674_v32 = vmul.f32 %v3907_v61, %v2673_v22  ;;  %v2929_v15 = vmul.f32 %v3909_v49, %v5497_v36 }
 0x305   : > { %v2467_v14 = vmul.f32 %v2403_v54, %v2403_v54  ;;  %v5540_v24 = vsel %vm2669_vm5, %v2670_v58, %v2668_v18  ;;  %v2922_v43 = vmul.f32 %v2921_v26, %v5479_v39  ;;  %v5543_v11 = vadd.f32 1e-24, %v2498_v12 }
 0x306   : > { %v5545_v31 = vadd.f32 1e-24, %v2754_v3  ;;  %v2675_v9 = vmul.f32 0.5, %v2674_v32  ;;  %v2930_v20 = vmul.f32 %v3909_v49, %v2929_v15  ;;  %v2451_v44 = vsub.f32 %v5856_v25, %v2387_v62 }
 0x307   : > { %v2483_v51 = vmul.f32 %v2419_v21, %v2419_v21  ;;  %v2924_v60 = vsel %vm2923_vm6, %v5479_v39, %v2922_v43  ;;  %vm2925_vm7 = vcmp.eq.f32.partialorder %v5479_v39, 0.0  ;;  %3910 = vrsqrt.f32 %v5543_v11 }
 0x308   : > { %v5553_v10 = vsel %vm2925_vm7, %v2926_v35, %v2924_v60  ;;  %v2676_v8 = vsub.f32 1.5, %v2675_v9  ;;  %v2931_v0 = vmul.f32 0.5, %v2930_v20  ;;  %v2723_v50 = vmul.f32 %v2435_v6, %v2435_v6 }
 0x309   : > { %3912 = vrsqrt.f32 %v5545_v31  ;;  %v2499_v28 = vadd.f32 %v2483_v51, %v2467_v14  ;;  %v2739_v17 = vmul.f32 %v2451_v44, %v2451_v44  ;;  %vm2679_vm8 = vcmp.eq.f32.partialorder %v5495_v47, inf }
 0x30a   : > { %v2677_v4 = vmul.f32 %v3907_v61, %v2676_v8  ;;  %v2932_v1 = vsub.f32 1.5, %v2931_v0  ;;  %vm2681_vm9 = vcmp.eq.f32.partialorder %v5495_v47, 0.0  ;;  %v2682_v39 = vand.u32 2147483648, %v5495_v47 }
 0x30b   : > { %v2515_v46 = vadd.f32 1e-24, %v2499_v28  ;;  %v2755_v57 = vadd.f32 %v2739_v17, %v2723_v50  ;;  %vm2935_vm10 = vcmp.eq.f32.partialorder %v5497_v36, inf  ;;  %vm2937_vm11 = vcmp.eq.f32.partialorder %v5497_v36, 0.0 }
 0x30c   : > { %v2678_v58 = vmul.f32 %v2677_v4, %v5495_v47  ;;  %v2933_v62 = vmul.f32 %v3909_v49, %v2932_v1  ;;  %v2938_v6 = vand.u32 2147483648, %v5497_v36  ;;  %vm2691_vm12 = vcmp.eq.f32.partialorder %v5543_v11, inf }
 0x30d   : > { %v3911_v41 = vpop.eup %3910  ;;  %3914 = vrsqrt.f32 %v2515_v46  ;;  %v2694_v51 = vand.u32 2147483648, %v5543_v11  ;;  %vm2693_vm13 = vcmp.eq.f32.partialorder %v5543_v11, 0.0  ;;  %vm2947_vm14 = vcmp.eq.f32.partialorder %v5545_v31, inf }
 0x30e   : > { %v2680_v42 = vsel %vm2679_vm8, %v5495_v47, %v2678_v58  ;;  %v2934_v54 = vmul.f32 %v2933_v62, %v5497_v36  ;;  %v2685_v61 = vmul.f32 %v3911_v41, %v5543_v11  ;;  %v2771_v47 = vadd.f32 1e-24, %v2755_v57 }
 0x30f   : > { %v3913_v27 = vpop.eup %3912  ;;  %v5563_v22 = vsel %vm2681_vm9, %v2682_v39, %v2680_v42  ;;  %v2950_v1 = vand.u32 2147483648, %v5545_v31  ;;  %vm2949_vm15 = vcmp.eq.f32.partialorder %v5545_v31, 0.0  ;;  %vm2703_vm0 = vcmp.eq.f32.partialorder %v2515_v46, inf }
 0x310   : > { %v2936_v25 = vsel %vm2935_vm10, %v5497_v36, %v2934_v54  ;;  %v2686_v21 = vmul.f32 %v3911_v41, %v2685_v61  ;;  %v2941_v49 = vmul.f32 %v3913_v27, %v5545_v31  ;;  %3916 = vrsqrt.f32 %v2771_v47 }
 0x311   : > { %v5570_v26 = vsel %vm2937_vm11, %v2938_v6, %v2936_v25  ;;  %v2706_v42 = vand.u32 2147483648, %v2515_v46  ;;  %vm2705_vm1 = vcmp.eq.f32.partialorder %v2515_v46, 0.0  ;;  %vm2959_vm2 = vcmp.eq.f32.partialorder %v2771_v47, inf }
 0x312   : > { %v2687_v35 = vmul.f32 0.5, %v2686_v21  ;;  %v2942_v12 = vmul.f32 %v3913_v27, %v2941_v49  ;;  %v2962_v25 = vand.u32 2147483648, %v2771_v47  ;;  %vm2961_vm3 = vcmp.eq.f32.partialorder %v2771_v47, 0.0 }
 0x313   : > { %v3915_v3 = vpop.eup %3914 }
 0x314   : > { %v2688_v18 = vsub.f32 1.5, %v2687_v35  ;;  %v2943_v32 = vmul.f32 0.5, %v2942_v12  ;;  %v2697_v15 = vmul.f32 %v3915_v3, %v2515_v46 }
 0x316   : > { %v2689_v14 = vmul.f32 %v3911_v41, %v2688_v18  ;;  %v2944_v43 = vsub.f32 1.5, %v2943_v32  ;;  %v2698_v9 = vmul.f32 %v3915_v3, %v2697_v15  ;;  %v3917_v20 = vpop.eup %3916 }
 0x317   : > { %v2953_v8 = vmul.f32 %v3917_v20, %v2771_v47 }
 0x318   : > { %v2690_v44 = vmul.f32 %v2689_v14, %v5543_v11  ;;  %v2945_v36 = vmul.f32 %v3913_v27, %v2944_v43  ;;  %v2699_v60 = vmul.f32 0.5, %v2698_v9 }
 0x319   : > { %v2954_v17 = vmul.f32 %v3917_v20, %v2953_v8 }
 0x31a   : > { %v2692_v0 = vsel %vm2691_vm12, %v5543_v11, %v2690_v44  ;;  %v2946_v50 = vmul.f32 %v2945_v36, %v5545_v31  ;;  %v2700_v28 = vsub.f32 1.5, %v2699_v60 }
 0x31b   : > { %v5579_v4 = vsel %vm2693_vm13, %v2694_v51, %v2692_v0  ;;  %v2955_v41 = vmul.f32 0.5, %v2954_v17 }
 0x31c   : > { %v2948_v58 = vsel %vm2947_vm14, %v5545_v31, %v2946_v50  ;;  %v2701_v57 = vmul.f32 %v3915_v3, %v2700_v28 }
 0x31d   : > { %v5584_v62 = vsel %vm2949_vm15, %v2950_v1, %v2948_v58  ;;  %v2956_v11 = vsub.f32 1.5, %v2955_v41 }
 0x31e   : > { %5857 = vst [vmem:[#allocation10_spill] sm:$0xff] %v5584_v62  ;;  %v2702_v39 = vmul.f32 %v2701_v57, %v2515_v46 }
 0x31f   : > { %v2957_v61 = vmul.f32 %v3917_v20, %v2956_v11 }
 0x320   : > { %v2704_v54 = vsel %vm2703_vm0, %v2515_v46, %v2702_v39 }
 0x321   : > { %v5586_v27 = vsel %vm2705_vm1, %v2706_v42, %v2704_v54  ;;  %v2958_v6 = vmul.f32 %v2957_v61, %v2771_v47  ;;  %2968 = sbr.rel (%p3689_p1) target bundleno = 832 (0x340), region = 134 }
 0x323   : > { %v2960_v21 = vsel %vm2959_vm2, %v2771_v47, %v2958_v6 }
 0x324   : > { %v5588_v49 = vsel %vm2961_vm3, %v2962_v25, %v2960_v21 }
 0x325   : > { %5858 = vst [vmem:[#allocation11_spill] sm:$0xff] %v5588_v49 }
 0x326   : > { %v5859_v31 = vld [vmem:[#allocation12_spill] sm:$0xff]  ;;  %v2978_v12 = vadd.f32 %v5302_v55, %v5264_v29  ;;  %v2987_v46 = vadd.f32 %v5439_v33, %v5401_v52  ;;  %v2996_v3 = vadd.f32 %v5563_v22, %v5540_v24  ;;  %v5860_v18 = vld [vmem:[#allocation13_spill] sm:$0xff]  ;;  %v3014_v32 = vadd.f32 %v5314_v45, %v5284_v16 }
 0x327   : > { %v2969_v35 = vadd.f32 %v5164_v30, %v5859_v31  ;;  %v3005_v47 = vadd.f32 %v5169_v53, %v5860_v18  ;;  %v3023_v15 = vadd.f32 %v5456_v48, %v5417_v59  ;;  %v3032_v14 = vadd.f32 %v5570_v26, %v5553_v10 }
 0x328   : > { %v2979_v9 = vadd.f32 %v2978_v12, %v5339_v63  ;;  %v2988_v20 = vadd.f32 %v2987_v46, %v5467_v38  ;;  %v2997_v44 = vadd.f32 %v2996_v3, %v5579_v4  ;;  %v3015_v51 = vadd.f32 %v3014_v32, %v5346_v23 }
 0x329   : > { %v2970_v43 = vadd.f32 %v2969_v35, %v5194_v5  ;;  %v3006_v36 = vadd.f32 %v3005_v47, %v5204_v34  ;;  %v3024_v60 = vadd.f32 %v3023_v15, %v5481_v56  ;;  %v3033_v8 = vadd.f32 %v3032_v14, %v5584_v62 }
 0x32a   : > { %v2980_v50 = vadd.f32 %v2979_v9, %v5377_v37  ;;  %v2989_v1 = vadd.f32 %v2988_v20, %v5508_v40  ;;  %v2998_v28 = vadd.f32 %v2997_v44, %v5586_v27  ;;  %v3016_v58 = vadd.f32 %v3015_v51, %v5384_v2 }
 0x32b   : > { %v2971_v0 = vadd.f32 %v2970_v43, %v5232_v13  ;;  %v3007_v17 = vadd.f32 %v3006_v36, %v5248_v19  ;;  %v3025_v57 = vadd.f32 %v3024_v60, %v5519_v7  ;;  %v3034_v41 = vadd.f32 %v3033_v8, %v5588_v49 }
 0x32c   : > { %v2981_v11 = vrot.slane %v2980_v50, 4  ;;  %v2990_v42 = vrot.slane %v2989_v1, 4  ;;  %v2999_v54 = vrot.slane %v2998_v28, 4  ;;  %v3017_v6 = vrot.slane %v3016_v58, 4 }
 0x32d   : > { %v2972_v39 = vrot.slane %v2971_v0, 4  ;;  %v3008_v61 = vrot.slane %v3007_v17, 4  ;;  %v3026_v25 = vrot.slane %v3025_v57, 4  ;;  %v3035_v21 = vrot.slane %v3034_v41, 4 }
 0x32e   : > { %v2982_v35 = vadd.f32 %v2981_v11, %v2980_v50  ;;  %v2991_v12 = vadd.f32 %v2990_v42, %v2989_v1  ;;  %v3000_v46 = vadd.f32 %v2999_v54, %v2998_v28  ;;  %v3018_v18 = vadd.f32 %v3017_v6, %v3016_v58 }
 0x32f   : > { %v2973_v31 = vadd.f32 %v2972_v39, %v2971_v0  ;;  %v3009_v3 = vadd.f32 %v3008_v61, %v3007_v17  ;;  %v3027_v47 = vadd.f32 %v3026_v25, %v3025_v57  ;;  %v3036_v32 = vadd.f32 %v3035_v21, %v3034_v41 }
 0x330   : > { %v2983_v14 = vrot.slane %v2982_v35, 2  ;;  %v2992_v43 = vrot.slane %v2991_v12, 2  ;;  %v3001_v9 = vrot.slane %v3000_v46, 2  ;;  %v3019_v44 = vrot.slane %v3018_v18, 2 }
 0x331   : > { %v2974_v15 = vrot.slane %v2973_v31, 2  ;;  %v3010_v20 = vrot.slane %v3009_v3, 2  ;;  %v3028_v36 = vrot.slane %v3027_v47, 2  ;;  %v3037_v51 = vrot.slane %v3036_v32, 2 }
 0x332   : > { %v2984_v8 = vadd.f32 %v2983_v14, %v2982_v35  ;;  %v2993_v49 = vadd.f32 %v2992_v43, %v2991_v12  ;;  %v3002_v62 = vadd.f32 %v3001_v9, %v3000_v46  ;;  %v3020_v50 = vadd.f32 %v3019_v44, %v3018_v18 }
 0x333   : > { %v2975_v60 = vadd.f32 %v2974_v15, %v2973_v31  ;;  %v3011_v0 = vadd.f32 %v3010_v20, %v3009_v3  ;;  %v3029_v1 = vadd.f32 %v3028_v36, %v3027_v47  ;;  %v3038_v28 = vadd.f32 %v3037_v51, %v3036_v32  ;;  %v3041_v47 = vld [vmem:[%s5727_s4] sm:$0xff] }
 0x334   : > { %v2985_v58 = vrot.slane %v2984_v8, 1  ;;  %v2994_v57 = vrot.slane %v2993_v49, 1  ;;  %v3003_v41 = vrot.slane %v3002_v62, 1  ;;  %v3021_v11 = vrot.slane %v3020_v50, 1 }
 0x335   : > { %v2976_v17 = vrot.slane %v2975_v60, 1  ;;  %v3012_v39 = vrot.slane %v3011_v0, 1  ;;  %v3030_v42 = vrot.slane %v3029_v1, 1  ;;  %v3039_v54 = vrot.slane %v3038_v28, 1 }
 0x336   : > { %v2986_v6 = vadd.f32 %v2985_v58, %v2984_v8  ;;  %v2995_v25 = vadd.f32 %v2994_v57, %v2993_v49  ;;  %v3004_v21 = vadd.f32 %v3003_v41, %v3002_v62  ;;  %v3022_v35 = vadd.f32 %v3021_v11, %v3020_v50 }
 0x337   : > { %v2977_v61 = vadd.f32 %v2976_v17, %v2975_v60  ;;  %v3013_v31 = vadd.f32 %v3012_v39, %v3011_v0  ;;  %v3031_v12 = vadd.f32 %v3030_v42, %v3029_v1  ;;  %v3040_v46 = vadd.f32 %v3039_v54, %v3038_v28 }
 0x338   : > { %vm3046_vm4 = vcmask 1041409   ;;  %vm3048_vm5 = vcmask 1042434   ;;  %vm3050_vm6 = vcmask 1043459   ;;  %vm3057_vm7 = vcmask 1045509  }
 0x339   : > { %v3047_v3 = vsel %vm3046_vm4, %v2986_v6, %v2977_v61  ;;  %v3058_v18 = vsel %vm3057_vm7, %v3022_v35, %v3013_v31  ;;  %vm3059_vm8 = vcmask 1046534   ;;  %vm3061_vm9 = vcmask 1047559  }
 0x33a   : > { %v3049_v32 = vsel %vm3048_vm5, %v2995_v25, %v3047_v3  ;;  %v3060_v15 = vsel %vm3059_vm8, %v3031_v12, %v3058_v18  ;;  %vm3064_vm10 = vcmask 1043456  }
 0x33b   : > { %v3051_v62 = vsel %vm3050_vm6, %v3004_v21, %v3049_v32  ;;  %v3062_v49 = vsel %vm3061_vm9, %v3040_v46, %v3060_v15 }
 0x33c   : > { %v3065_v14 = vsel %vm3064_vm10, %v3051_v62, %v3062_v49 }
 0x33d   : > { %v3066_v43 = vadd.f32 %v3065_v14, %v3041_v47 }
 0x33f   : > { %3067 = vst [vmem:[%s5727_s4] sm:$0xff] %v3066_v43 }
 0x340 PF: > { %p3690_p2 = scmp.le.s32.totalorder %s5213_s25, 65 }
 0x342   : > { %3071 = sbr.rel (%p3690_p2) target bundleno = 885 (0x375), region = 138 }
 0x347   : > { %v3072_v9 = vlaneseq  ;;  %v3077_v20 = vstv %s3432_s24  ;;  %v5861_v28 = vld [vmem:[#allocation12_spill] sm:$0xff]  ;;  %v5862_v39 = vld [vmem:[#allocation13_spill] sm:$0xff]  ;;  %v5863_v43 = vld [vmem:[#allocation10_spill] sm:$0xff]  ;;  %vm3195_vm15 = vcmask 1041409   ;;  %vm3197_vm0 = vcmask 1042434  }
 0x348   : > { %vm3199_vm1 = vcmask 1043459   ;;  %vm3206_vm2 = vcmask 1045509   ;;  %vm3208_vm3 = vcmask 1046534   ;;  %vm3210_vm4 = vcmask 1047559  }
 0x349   : > { %v3073_v44 = vshrl.u32 %v3072_v9, 7  ;;  %vm3213_vm5 = vcmask 1043456  }
 0x34b   : > { %v3074_v36 = vadd.s32 8, %v3073_v44  ;;  %v3075_v51 = vadd.s32 16, %v3073_v44  ;;  %v3076_v60 = vadd.s32 24, %v3073_v44  ;;  %v3078_v8 = vadd.s32 %v3077_v20, %v3073_v44 }
 0x34d   : > { %v3079_v0 = vadd.s32 %v3077_v20, %v3074_v36  ;;  %v3080_v50 = vadd.s32 %v3077_v20, %v3075_v51  ;;  %v3081_v1 = vadd.s32 %v3077_v20, %v3076_v60  ;;  %vm3082_vm11 = vcmp.lt.s32.totalorder %v3078_v8, 65 }
 0x34e   : > { %v3086_v17 = vsel %vm3082_vm11, %v5861_v28, 0.0  ;;  %v3090_v58 = vsel %vm3082_vm11, %v5264_v29, 0.0  ;;  %v3094_v57 = vsel %vm3082_vm11, %v5401_v52, 0.0  ;;  %v3098_v41 = vsel %vm3082_vm11, %v5540_v24, 0.0 }
 0x34f   : > { %vm3083_vm12 = vcmp.lt.s32.totalorder %v3079_v0, 65  ;;  %vm3084_vm13 = vcmp.lt.s32.totalorder %v3080_v50, 65  ;;  %vm3085_vm14 = vcmp.lt.s32.totalorder %v3081_v1, 65  ;;  %v3138_v11 = vsel %vm3082_vm11, %v5862_v39, 0.0 }
 0x350   : > { %v3087_v42 = vsel %vm3083_vm12, %v5164_v30, 0.0  ;;  %v3088_v54 = vsel %vm3084_vm13, %v5194_v5, 0.0  ;;  %v3089_v29 = vsel %vm3085_vm14, %v5232_v13, 0.0  ;;  %v3091_v52 = vsel %vm3083_vm12, %v5302_v55, 0.0 }
 0x351   : > { %v3092_v24 = vsel %vm3084_vm13, %v5339_v63, 0.0  ;;  %v3093_v61 = vsel %vm3085_vm14, %v5377_v37, 0.0  ;;  %v3095_v6 = vsel %vm3083_vm12, %v5439_v33, 0.0  ;;  %v3096_v30 = vsel %vm3084_vm13, %v5467_v38, 0.0 }
 0x352   : > { %v3097_v5 = vsel %vm3085_vm14, %v5508_v40, 0.0  ;;  %v3099_v13 = vsel %vm3083_vm12, %v5563_v22, 0.0  ;;  %v3100_v55 = vsel %vm3084_vm13, %v5579_v4, 0.0  ;;  %v3101_v63 = vsel %vm3085_vm14, %v5586_v27, 0.0 }
 0x353   : > { %v3102_v25 = vadd.f32 %v3087_v42, %v3086_v17  ;;  %v3111_v37 = vadd.f32 %v3091_v52, %v3090_v58  ;;  %v3120_v21 = vadd.f32 %v3095_v6, %v3094_v57  ;;  %v3129_v31 = vadd.f32 %v3099_v13, %v3098_v41 }
 0x354   : > { %v3139_v33 = vsel %vm3083_vm12, %v5169_v53, 0.0  ;;  %v3140_v38 = vsel %vm3084_vm13, %v5204_v34, 0.0  ;;  %v3141_v40 = vsel %vm3085_vm14, %v5248_v19, 0.0  ;;  %v3142_v22 = vsel %vm3082_vm11, %v5284_v16, 0.0 }
 0x355   : > { %v3103_v4 = vadd.f32 %v3102_v25, %v3088_v54  ;;  %v3112_v35 = vadd.f32 %v3111_v37, %v3092_v24  ;;  %v3121_v12 = vadd.f32 %v3120_v21, %v3096_v30  ;;  %v3130_v27 = vadd.f32 %v3129_v31, %v3100_v55 }
 0x356   : > { %v3143_v46 = vsel %vm3083_vm12, %v5314_v45, 0.0  ;;  %v3144_v3 = vsel %vm3084_vm13, %v5346_v23, 0.0  ;;  %v3145_v53 = vsel %vm3085_vm14, %v5384_v2, 0.0  ;;  %v3146_v34 = vsel %vm3082_vm11, %v5417_v59, 0.0 }
 0x357   : > { %v3104_v19 = vadd.f32 %v3103_v4, %v3089_v29  ;;  %v3113_v18 = vadd.f32 %v3112_v35, %v3093_v61  ;;  %v3122_v47 = vadd.f32 %v3121_v12, %v3097_v5  ;;  %v3131_v16 = vadd.f32 %v3130_v27, %v3101_v63 }
 0x358   : > { %v3147_v32 = vsel %vm3083_vm12, %v5456_v48, 0.0  ;;  %v3148_v15 = vsel %vm3084_vm13, %v5481_v56, 0.0  ;;  %v3149_v45 = vsel %vm3085_vm14, %v5519_v7, 0.0  ;;  %v3150_v23 = vsel %vm3082_vm11, %v5553_v10, 0.0  ;;  %v5864_v48 = vld [vmem:[#allocation11_spill] sm:$0xff] }
 0x359   : > { %v3105_v2 = vrot.slane %v3104_v19, 4  ;;  %v3114_v62 = vrot.slane %v3113_v18, 4  ;;  %v3123_v49 = vrot.slane %v3122_v47, 4  ;;  %v3132_v59 = vrot.slane %v3131_v16, 4 }
 0x35a   : > { %v3151_v14 = vsel %vm3083_vm12, %v5570_v26, 0.0  ;;  %v3152_v9 = vsel %vm3084_vm13, %v5863_v43, 0.0  ;;  %v3153_v20 = vsel %vm3085_vm14, %v5864_v48, 0.0  ;;  %v3154_v56 = vadd.f32 %v3139_v33, %v3138_v11  ;;  %v3190_v43 = vld [vmem:[%s5727_s4] sm:$0xff] }
 0x35b   : > { %v3106_v44 = vadd.f32 %v3105_v2, %v3104_v19  ;;  %v3115_v36 = vadd.f32 %v3114_v62, %v3113_v18  ;;  %v3124_v7 = vadd.f32 %v3123_v49, %v3122_v47  ;;  %v3133_v51 = vadd.f32 %v3132_v59, %v3131_v16 }
 0x35c   : > { %v3155_v60 = vadd.f32 %v3154_v56, %v3140_v38  ;;  %v3163_v10 = vadd.f32 %v3143_v46, %v3142_v22  ;;  %v3172_v8 = vadd.f32 %v3147_v32, %v3146_v34  ;;  %v3181_v28 = vadd.f32 %v3151_v14, %v3150_v23 }
 0x35d   : > { %v3107_v17 = vrot.slane %v3106_v44, 2  ;;  %v3116_v58 = vrot.slane %v3115_v36, 2  ;;  %v3125_v57 = vrot.slane %v3124_v7, 2  ;;  %v3134_v0 = vrot.slane %v3133_v51, 2 }
 0x35e   : > { %v3156_v26 = vadd.f32 %v3155_v60, %v3141_v40  ;;  %v3164_v41 = vadd.f32 %v3163_v10, %v3144_v3  ;;  %v3173_v50 = vadd.f32 %v3172_v8, %v3148_v15  ;;  %v3182_v39 = vadd.f32 %v3181_v28, %v3152_v9 }
 0x35f   : > { %v3108_v42 = vadd.f32 %v3107_v17, %v3106_v44  ;;  %v3117_v1 = vadd.f32 %v3116_v58, %v3115_v36  ;;  %v3126_v54 = vadd.f32 %v3125_v57, %v3124_v7  ;;  %v3135_v30 = vadd.f32 %v3134_v0, %v3133_v51 }
 0x360   : > { %v3157_v11 = vrot.slane %v3156_v26, 4  ;;  %v3165_v29 = vadd.f32 %v3164_v41, %v3145_v53  ;;  %v3174_v52 = vadd.f32 %v3173_v50, %v3149_v45  ;;  %v3183_v24 = vadd.f32 %v3182_v39, %v3153_v20 }
 0x361   : > { %v3109_v61 = vrot.slane %v3108_v42, 1  ;;  %v3118_v6 = vrot.slane %v3117_v1, 1  ;;  %v3127_v21 = vrot.slane %v3126_v54, 1  ;;  %v3136_v22 = vrot.slane %v3135_v30, 1 }
 0x362   : > { %v3158_v5 = vadd.f32 %v3157_v11, %v3156_v26  ;;  %v3166_v13 = vrot.slane %v3165_v29, 4  ;;  %v3175_v55 = vrot.slane %v3174_v52, 4  ;;  %v3184_v63 = vrot.slane %v3183_v24, 4 }
 0x363   : > { %v3110_v25 = vadd.f32 %v3109_v61, %v3108_v42  ;;  %v3119_v37 = vadd.f32 %v3118_v6, %v3117_v1  ;;  %v3128_v46 = vadd.f32 %v3127_v21, %v3126_v54  ;;  %v3137_v47 = vadd.f32 %v3136_v22, %v3135_v30 }
 0x364   : > { %v3159_v31 = vrot.slane %v3158_v5, 2  ;;  %v3167_v33 = vadd.f32 %v3166_v13, %v3165_v29  ;;  %v3176_v38 = vadd.f32 %v3175_v55, %v3174_v52  ;;  %v3185_v40 = vadd.f32 %v3184_v63, %v3183_v24 }
 0x365   : > { %v3196_v3 = vsel %vm3195_vm15, %v3119_v37, %v3110_v25 }
 0x366   : > { %v3160_v4 = vadd.f32 %v3159_v31, %v3158_v5  ;;  %v3168_v35 = vrot.slane %v3167_v33, 2  ;;  %v3177_v12 = vrot.slane %v3176_v38, 2  ;;  %v3186_v27 = vrot.slane %v3185_v40, 2 }
 0x367   : > { %v3198_v23 = vsel %vm3197_vm0, %v3128_v46, %v3196_v3 }
 0x368   : > { %v3161_v53 = vrot.slane %v3160_v4, 1  ;;  %v3169_v34 = vadd.f32 %v3168_v35, %v3167_v33  ;;  %v3178_v19 = vadd.f32 %v3177_v12, %v3176_v38  ;;  %v3187_v18 = vadd.f32 %v3186_v27, %v3185_v40 }
 0x369   : > { %v3200_v59 = vsel %vm3199_vm1, %v3137_v47, %v3198_v23 }
 0x36a   : > { %v3162_v16 = vadd.f32 %v3161_v53, %v3160_v4  ;;  %v3170_v32 = vrot.slane %v3169_v34, 1  ;;  %v3179_v15 = vrot.slane %v3178_v19, 1  ;;  %v3188_v45 = vrot.slane %v3187_v18, 1 }
 0x36c   : > { %v3171_v2 = vadd.f32 %v3170_v32, %v3169_v34  ;;  %v3180_v62 = vadd.f32 %v3179_v15, %v3178_v19  ;;  %v3189_v49 = vadd.f32 %v3188_v45, %v3187_v18 }
 0x36e   : > { %v3207_v14 = vsel %vm3206_vm2, %v3171_v2, %v3162_v16 }
 0x36f   : > { %v3209_v9 = vsel %vm3208_vm3, %v3180_v62, %v3207_v14 }
 0x370   : > { %v3211_v48 = vsel %vm3210_vm4, %v3189_v49, %v3209_v9 }
 0x371   : > { %v3214_v20 = vsel %vm3213_vm5, %v3200_v59, %v3211_v48 }
 0x372   : > { %v3215_v56 = vadd.f32 %v3214_v20, %v3190_v43 }
 0x374   : > { %3216 = vst [vmem:[%s5727_s4] sm:$0xff] %v3215_v56 }
 0x375 PF: > { %s14_s21 = sadd.s32 1, %s4009_s21   ;;  %s5865_s15 = smov %s3989_s16 }
 0x376   : > { %p11_p3 = scmp.ge.s32.totalorder %s14_s21, 5   ;;  %s5866_s16 = smov %s4112_s7 }
 0x377   : > { %s5867_s17 = smov %s3997_s18  ;;  %s5868_s18 = smov %s4107_s6 }
 0x378   : > { %s5869_s19 = smov %s4005_s20  ;;  %s5870_s20 = smov %s5872_s22 }
 0x379   :  { %13 = sbr.rel (!%p11_p3) target bundleno = 4 (0x4), region = 217 }

</bundles_post_ra>
